<compile_context>
chip_gen: v7x
topology: tpu7x:2x2x1
jax: 0.10.0
libtpu: 0.0.40
codegen_flags: <defaults>
</compile_context>

<pallas_src>
import functools

import numpy as np
import jax
import jax.numpy as jnp
from jax import lax
from jax.experimental import pallas as pl
from jax.experimental.pallas import tpu as pltpu

BN_EPS = 1e-5


# ---------------------------------------------------------------------------
# In-kernel helpers
# ---------------------------------------------------------------------------
def _im2col_pieces(x_ext, halo, tr, W, dilations):
    """bf16 im2col taps of a zero/neighbour-extended (tr + 2*halo, C) window.

    Output row i corresponds to the i-th pixel of the current TR-pixel tile.
    Row shifts are static slices of the extended window; the wrap at the W
    boundary is killed with per-dx masks hoisted out of the tap loop.  Each tap
    is cast to bf16 immediately, so only bf16 pieces are ever concatenated.
    """
    x_idx = lax.broadcasted_iota(jnp.int32, (tr, 1), 0) % W
    masks = {}
    for d in dilations:
        for dx in (-d, d):
            if dx not in masks:
                masks[dx] = (x_idx + dx >= 0) & (x_idx + dx < W)
    pieces = []
    for d in dilations:
        for k in range(9):
            dy, dx = d * (k // 3 - 1), d * (k % 3 - 1)
            off = halo + dy * W + dx
            piece = x_ext[off:off + tr, :]
            if dx != 0:
                piece = jnp.where(masks[dx], piece, 0.0)
            pieces.append(piece.astype(jnp.bfloat16))
    return pieces


def _row_mask(tr, halo, total_rows):
    """(tr + 2*halo, 1) bool: True where the extended-window row is inside the
    image (global pixel index in [0, H*W)); zero-pads the conv at y-borders."""
    t = pl.program_id(1)
    g = lax.broadcasted_iota(jnp.int32, (tr + 2 * halo, 1), 0) + (t * tr - halo)
    return (g >= 0) & (g < total_rows)


def _sum_and_csq(x):
    """Per-tile BN partial stats: [sum, sum((x - tile_mean)^2)] -> (2, C)."""
    s = jnp.sum(x, axis=0, keepdims=True)
    m = s / x.shape[0]
    csq = jnp.sum((x - m) * (x - m), axis=0, keepdims=True)
    return jnp.concatenate([s, csq], axis=0)


# ---------------------------------------------------------------------------
# Kernels
# ---------------------------------------------------------------------------
def _fused_conv_kernel(xh_top_ref, xh_cur_ref, xh_bot_ref, xl_ref, w_ref,
                       hl_ref, stats_ref, *,
                       W, tr, halo, halo_pad, total_rows, multi_tile):
    """High path (18 dilated taps, conv0 folded) + low path 1x1 fused into one
    (tr, 600) x (600, 32) bf16 matmul.  Emits bf16 activations + BN stats."""
    f32 = jnp.float32
    cur = xh_cur_ref[...].astype(f32)                               # (tr, 32)
    if multi_tile:
        top = xh_top_ref[...].astype(f32)[halo_pad - halo:, :]       # (halo, 32)
        bot = xh_bot_ref[...].astype(f32)[:halo, :]
        ext = jnp.concatenate([top, cur, bot], axis=0)
        ext = jnp.where(_row_mask(tr, halo, total_rows), ext, 0.0)   # y zero-pad
    else:
        z = jnp.zeros((halo, cur.shape[1]), f32)
        ext = jnp.concatenate([z, cur, z], axis=0)

    cols = jnp.concatenate(
        _im2col_pieces(ext, halo, tr, W, (1, 2)) + [xl_ref[...]], axis=1)  # (tr,600) bf16
    hl = jnp.dot(cols, w_ref[...], preferred_element_type=f32)             # (tr, 32)
    hl_ref[...] = hl.astype(hl_ref.dtype)
    stats_ref[...] = _sum_and_csq(hl)                                      # (2, 32)


def _fuse_refine_kernel(hl_top_ref, hl_cur_ref, hl_bot_ref, w_ref, fold_ref, p_ref,
                        r_ref, stats_ref, *,
                        W, tr, halo, halo_pad, total_rows, multi_tile):
    """BN1(high)+BN2(low)+add as a block-diag scale matmul + bias, PReLU(16),
    then the refine 3x3 conv as a (tr, 144) x (144, 16) bf16 matmul."""
    f32 = jnp.float32
    cur = hl_cur_ref[...].astype(f32)                               # (tr, 32)
    if multi_tile:
        top = hl_top_ref[...].astype(f32)[halo_pad - halo:, :]
        bot = hl_bot_ref[...].astype(f32)[:halo, :]
        ext = jnp.concatenate([top, cur, bot], axis=0)
    else:
        z = jnp.zeros((halo, cur.shape[1]), f32)
        ext = jnp.concatenate([z, cur, z], axis=0)

    p = p_ref[...]                                                  # (2, 16)
    # s = high*sc1 + low*sc2 + (b1+b2); fold matrix = [diag(sc1); diag(sc2)].
    s = jnp.dot(ext, fold_ref[...], preferred_element_type=f32) + p[0:1, :]
    act = jnp.where(s > 0, s, s * p[1:2, :])                        # PReLU(16)
    # conv zero-padding at y-borders: act must be 0 outside the image.
    act = jnp.where(_row_mask(tr, halo, total_rows), act, 0.0)

    cols = jnp.concatenate(_im2col_pieces(act, halo, tr, W, (1,)), axis=1)  # (tr,144)
    r = jnp.dot(cols, w_ref[...], preferred_element_type=f32)               # (tr, 16)
    r_ref[...] = r.astype(r_ref.dtype)
    stats_ref[...] = _sum_and_csq(r)                                        # (2, 16)


def _bn_prelu_kernel(r_ref, sc_ref, b_ref, a_ref, out_ref):
    t = r_ref[...].astype(jnp.float32) * sc_ref[...] + b_ref[...]
    out_ref[...] = jnp.where(t > 0, t, t * a_ref[...])


# ---------------------------------------------------------------------------
# Wrapper-side helpers
# ---------------------------------------------------------------------------
def _round_up(x, m):
    return (x + m - 1) // m * m


def _pick_conv_tiles(R, W, halo, target_rows):
    """Choose (TR, halo_pad, nt) for row-tiling one image of R = H*W pixels.

    TR divides R and is a multiple of lcm(W, 8) (tile-invariant x-mask,
    sublane-aligned blocks); halo_pad is an 8-aligned chunk >= halo dividing TR,
    so a tile's halo is the tail/head of an aligned neighbouring block of the
    same array.  Falls back to one tile per image when no tiling is needed or
    no valid one exists (the single-tile kernel path zero-extends explicitly).
    """
    halo8 = _round_up(halo, 8)
    base = int(np.lcm(W, 8))
    valid = [c for c in range(base, R, base) if R % c == 0 and c >= halo8]
    if R <= target_rows or not valid:
        return R, 8, 1                      # single tile; halo refs are dummies
    under = [c for c in valid if c <= target_rows]
    tr = max(under) if under else min(valid)
    hp = next(c for c in range(halo8, tr + 1, 8) if tr % c == 0)
    return tr, hp, R // tr


def _pick_ew_tile(rows, target_rows):
    valid = [c for c in range(8, rows, 8) if rows % c == 0]
    if rows <= max(target_rows, 8) or not valid:
        return rows, 1
    under = [c for c in valid if c <= target_rows]
    tr = max(under) if under else min(valid)
    return tr, rows // tr


def _halo_index_maps(tr, halo_pad, nt):
    per = tr // halo_pad
    nh = nt * per

    def top(n, t):
        return (n, jnp.maximum(t * per - 1, 0), 0)

    def bot(n, t):
        return (n, jnp.minimum((t + 1) * per, nh - 1), 0)

    return top, bot


def _bn_scale_bias(sums, csqs, rows_per_block, gamma, beta):
    """Combine per-tile partial stats (parallel-variance formula) and fold
    gamma/beta into a per-channel scale & bias."""
    count = sums.shape[0] * rows_per_block
    m_i = sums / rows_per_block                                    # (M, C)
    mean = jnp.sum(sums, axis=0) / count                           # (C,)
    var = (jnp.sum(csqs, axis=0)
           + rows_per_block * jnp.sum((m_i - mean[None, :]) ** 2, axis=0)) / count
    scale = gamma * lax.rsqrt(var + BN_EPS)                        # (1, C)
    bias = beta - mean[None, :] * scale                            # (1, C)
    return scale, bias


def _compiler_params(block_bytes):
    """Generation-aware scoped-VMEM budget + megacore-friendly semantics."""
    try:
        cap = int(getattr(pltpu.get_tpu_info(), "vmem_capacity_bytes", 128 << 20))
    except Exception:  # pragma: no cover - defensive
        cap = 64 << 20
    limit = max(32 << 20, int(block_bytes) + (8 << 20))
    limit = min(limit, max(cap - (8 << 20), 16 << 20))
    return pltpu.CompilerParams(dimension_semantics=("parallel", "parallel"),
                                vmem_limit_bytes=int(limit))


# ---------------------------------------------------------------------------
# Public forward
# ---------------------------------------------------------------------------
@functools.partial(jax.jit, static_argnames=("max_rows_per_tile",))
def combine_feature(low_fea, high_fea, params, max_rows_per_tile=2048):
    """low_fea: (N,24,H,W), high_fea: (N,32,H,W) NCHW f32 -> (N,16,H,W) f32."""
    N, _, H, W = high_fea.shape
    R = H * W
    assert R % 8 == 0, "H*W must be a multiple of 8"

    def to_nrc(x):  # NCHW -> (N, H*W, C); bf16 cast fuses into this copy
        return (jnp.transpose(x, (0, 2, 3, 1))
                .reshape(N, R, x.shape[1]).astype(jnp.bfloat16))

    xh = to_nrc(high_fea)                     # (N, R, 32) bf16
    xl = to_nrc(low_fea)                      # (N, R, 24) bf16

    # Block-diagonal fused weights: 18 dilated taps (conv0 folded) -> out ch 0:16,
    # low-path 1x1 -> out ch 16:32; a single K=600 MXU contraction per tile.
    w_comb = jnp.zeros((600, 32), jnp.bfloat16)
    w_comb = w_comb.at[0:576, 0:16].set(params["w_high"])
    w_comb = w_comb.at[576:600, 16:32].set(params["w_low"])

    # -- pass 1: fused high+low conv, per-tile BN partial stats ---------------
    halo1 = 2 * W + 2                           # dilation-2 reach
    tr1, hp1, nt1 = _pick_conv_tiles(R, W, halo1, max_rows_per_tile)
    top1, bot1 = _halo_index_maps(tr1, hp1, nt1)
    p1_bytes = (2 * 2 * (tr1 * (32 + 24) + 2 * hp1 * 32)     # dbl-buffered bf16 inputs
                + 2 * (tr1 * 32 * 2 + 2 * 32 * 4)            # dbl-buffered outputs
                + (tr1 + 2 * halo1) * 32 * 4                 # f32 ext staging
                + 2 * tr1 * 600 * 2                          # bf16 im2col (+staging)
                + tr1 * 32 * 4 + (600 * 32 + 2 * 32) * 4)    # f32 result + weights
    hl, stats1 = pl.pallas_call(
        functools.partial(_fused_conv_kernel, W=W, tr=tr1, halo=halo1,
                          halo_pad=hp1, total_rows=R, multi_tile=nt1 > 1),
        grid=(N, nt1),
        in_specs=[
            pl.BlockSpec((None, hp1, 32), top1),                       # top halo
            pl.BlockSpec((None, tr1, 32), lambda n, t: (n, t, 0)),     # current tile
            pl.BlockSpec((None, hp1, 32), bot1),                       # bottom halo
            pl.BlockSpec((None, tr1, 24), lambda n, t: (n, t, 0)),     # low-path input
            pl.BlockSpec((600, 32), lambda n, t: (0, 0)),              # fused weights
        ],
        out_specs=[
            pl.BlockSpec((None, tr1, 32), lambda n, t: (n, t, 0)),
            pl.BlockSpec((None, None, 2, 32), lambda n, t: (n, t, 0, 0)),
        ],
        out_shape=[
            jax.ShapeDtypeStruct((N, R, 32), jnp.bfloat16),
            jax.ShapeDtypeStruct((N, nt1, 2, 32), jnp.float32),
        ],
        compiler_params=_compiler_params(p1_bytes),
    )(xh, xh, xh, xl, w_comb)

    st1 = stats1.reshape(N * nt1, 2, 32)
    sc1, b1 = _bn_scale_bias(st1[:, 0, 0:16], st1[:, 1, 0:16], tr1,
                             params["bn1g"], params["bn1b"])
    sc2, b2 = _bn_scale_bias(st1[:, 0, 16:32], st1[:, 1, 16:32], tr1,
                             params["bn2g"], params["bn2b"])
    foldsc = jnp.concatenate([jnp.diag(sc1[0]), jnp.diag(sc2[0])], axis=0)  # (32,16)
    pvec = jnp.concatenate([b1 + b2, params["a1"]], axis=0)                 # (2,16)

    # -- pass 2: BN1+BN2 -> add -> PReLU(16) -> refine 3x3 conv, BN3 stats ----
    halo2 = W + 1
    tr2, hp2, nt2 = _pick_conv_tiles(R, W, halo2, max_rows_per_tile)
    top2, bot2 = _halo_index_maps(tr2, hp2, nt2)
    p2_bytes = (2 * 2 * (tr2 * 32 + 2 * hp2 * 32)
                + 2 * (tr2 * 16 * 2 + 2 * 16 * 4)
                + (tr2 + 2 * halo2) * 32 * 4 * 2
                + (tr2 + 2 * halo2) * 16 * 4 * 2
                + 2 * tr2 * 144 * 2
                + tr2 * 16 * 4 + (144 * 16 + 32 * 16 + 2 * 16) * 4)
    r, stats2 = pl.pallas_call(
        functools.partial(_fuse_refine_kernel, W=W, tr=tr2, halo=halo2,
                          halo_pad=hp2, total_rows=R, multi_tile=nt2 > 1),
        grid=(N, nt2),
        in_specs=[
            pl.BlockSpec((None, hp2, 32), top2),
            pl.BlockSpec((None, tr2, 32), lambda n, t: (n, t, 0)),
            pl.BlockSpec((None, hp2, 32), bot2),
            pl.BlockSpec((144, 16), lambda n, t: (0, 0)),              # refine taps
            pl.BlockSpec((32, 16), lambda n, t: (0, 0)),               # [diag(sc1);diag(sc2)]
            pl.BlockSpec((2, 16), lambda n, t: (0, 0)),                # [b1+b2; a1]
        ],
        out_specs=[
            pl.BlockSpec((None, tr2, 16), lambda n, t: (n, t, 0)),
            pl.BlockSpec((None, None, 2, 16), lambda n, t: (n, t, 0, 0)),
        ],
        out_shape=[
            jax.ShapeDtypeStruct((N, R, 16), jnp.bfloat16),
            jax.ShapeDtypeStruct((N, nt2, 2, 16), jnp.float32),
        ],
        compiler_params=_compiler_params(p2_bytes),
    )(hl, hl, hl, params["w_refine"], foldsc, pvec)

    st2 = stats2.reshape(N * nt2, 2, 16)
    sc3, b3 = _bn_scale_bias(st2[:, 0], st2[:, 1], tr2,
                             params["bn3g"], params["bn3b"])

    # -- pass 3: BN3 + PReLU on a lane-dense (rows, 128) repack (bf16 input) --
    rows3 = R * 16 // 128                         # == R // 8
    tr3, nt3 = _pick_ew_tile(rows3, 4096)
    p3_bytes = 2 * tr3 * 128 * (2 + 4) + tr3 * 128 * 4 + 3 * 128 * 4
    r_packed = r.reshape(N, rows3, 128)           # contiguous bf16 reshape (free)
    out = pl.pallas_call(
        _bn_prelu_kernel,
        grid=(N, nt3),
        in_specs=[
            pl.BlockSpec((None, tr3, 128), lambda n, t: (n, t, 0)),
            pl.BlockSpec((1, 128), lambda n, t: (0, 0)),
            pl.BlockSpec((1, 128), lambda n, t: (0, 0)),
            pl.BlockSpec((1, 128), lambda n, t: (0, 0)),
        ],
        out_specs=pl.BlockSpec((None, tr3, 128), lambda n, t: (n, t, 0)),
        out_shape=jax.ShapeDtypeStruct((N, rows3, 128), jnp.float32),
        compiler_params=_compiler_params(p3_bytes),
    )(r_packed, jnp.tile(sc3, (1, 8)), jnp.tile(b3, (1, 8)),
      jnp.tile(params["a2"], (1, 128)))

    return jnp.transpose(out.reshape(N, H, W, 16), (0, 3, 1, 2))


# ---------------------------------------------------------------------------
# Parameters (fresh-PyTorch-style init), pre-fused for the kernels
# ---------------------------------------------------------------------------
def init_params(key):
    ks = jax.random.split(key, 8)

    def conv_w(k, shape, fan_in):
        bound = 1.0 / np.sqrt(fan_in)
        return jax.random.uniform(k, shape, jnp.float32, -bound, bound)

    w0 = conv_w(ks[0], (16, 32, 1, 1), 32)        # up2_high.conv0
    w1 = conv_w(ks[1], (8, 8, 3, 3), 8 * 9)       # up2_high.conv1 (d=1)
    w2 = conv_w(ks[2], (8, 8, 3, 3), 8 * 9)       # up2_high.conv2 (d=2)
    wl = conv_w(ks[3], (16, 24, 1, 1), 24)        # up2_low
    wr = conv_w(ks[4], (16, 16, 3, 3), 16 * 9)    # refine[0]

    w0m = jnp.transpose(w0[:, :, 0, 0])           # (32, 16): x @ w0m == conv0
    zeros8 = jnp.zeros((32, 8), jnp.float32)
    blocks = []
    for k in range(9):                            # d=1 branch -> output channels 0:8
        a = w0m[:, 0:8] @ jnp.transpose(w1[:, :, k // 3, k % 3])
        blocks.append(jnp.concatenate([a, zeros8], axis=1))
    for k in range(9):                            # d=2 branch -> output channels 8:16
        a = w0m[:, 8:16] @ jnp.transpose(w2[:, :, k // 3, k % 3])
        blocks.append(jnp.concatenate([zeros8, a], axis=1))
    w_high = jnp.concatenate(blocks, axis=0)      # (576, 16), conv0 folded in

    w_refine = jnp.concatenate(
        [jnp.transpose(wr[:, :, k // 3, k % 3]) for k in range(9)], axis=0)  # (144,16)
    w_low = jnp.transpose(wl[:, :, 0, 0])         # (24, 16)

    def bn_init(k, c):
        g = 1.0 + 0.1 * jax.random.normal(k, (1, c), jnp.float32)
        b = 0.1 * jax.random.normal(jax.random.fold_in(k, 1), (1, c), jnp.float32)
        return g, b

    bn1g, bn1b = bn_init(ks[5], 16)   # up2_high.bn
    bn2g, bn2b = bn_init(ks[6], 16)   # up2_bn2
    bn3g, bn3b = bn_init(ks[7], 16)   # refine BN
    return dict(
        w_high=w_high.astype(jnp.bfloat16),
        w_low=w_low.astype(jnp.bfloat16),
        w_refine=w_refine.astype(jnp.bfloat16),
        bn1g=bn1g, bn1b=bn1b, bn2g=bn2g, bn2b=bn2b, bn3g=bn3g, bn3b=bn3b,
        a1=0.25 * jnp.ones((1, 16), jnp.float32),   # PReLU(16) default
        a2=0.25 * jnp.ones((1, 1), jnp.float32),    # PReLU()   default
    )


# ---------------------------------------------------------------------------
# Pure-XLA reference (mirrors the kernels' bf16 rounding points)
# ---------------------------------------------------------------------------
def _reference_forward(low_fea, high_fea, params):
    f32 = jnp.float32
    HI = lax.Precision.HIGHEST
    xh = high_fea.astype(jnp.bfloat16).astype(f32)
    xl = low_fea.astype(jnp.bfloat16).astype(f32)

    def conv3(x, w, d):
        return lax.conv_general_dilated(
            x, w, window_strides=(1, 1), padding=((d, d), (d, d)),
            rhs_dilation=(d, d),
            dimension_numbers=("NCHW", "OIHW", "NCHW"), precision=HI)

    wh = params["w_high"].astype(f32).reshape(18, 32, 16)
    w_d1 = jnp.transpose(wh[0:9], (2, 1, 0)).reshape(16, 32, 3, 3)
    w_d2 = jnp.transpose(wh[9:18], (2, 1, 0)).reshape(16, 32, 3, 3)
    high = conv3(xh, w_d1, 1) + conv3(xh, w_d2, 2)
    low = jnp.einsum("nchw,cd->ndhw", xl, params["w_low"].astype(f32), precision=HI)

    def bn_scale_bias(x, g, b):
        m = jnp.mean(x, axis=(0, 2, 3), keepdims=True)
        v = jnp.mean((x - m) ** 2, axis=(0, 2, 3), keepdims=True)
        scale = g.reshape(1, -1, 1, 1) * lax.rsqrt(v + BN_EPS)
        return scale, b.reshape(1, -1, 1, 1) - m * scale

    def bf(x):  # mirrors the kernels' bf16 storage of inter-pass tensors
        return x.astype(jnp.bfloat16).astype(f32)

    s1, o1 = bn_scale_bias(high, params["bn1g"], params["bn1b"])
    s2, o2 = bn_scale_bias(low, params["bn2g"], params["bn2b"])
    s = bf(high) * s1 + o1 + bf(low) * s2 + o2
    act = jnp.where(s > 0, s, s * params["a1"].reshape(1, -1, 1, 1))

    wrm = params["w_refine"].astype(f32).reshape(9, 16, 16)
    w_r = jnp.transpose(wrm, (2, 1, 0)).reshape(16, 16, 3, 3)
    r = conv3(act.astype(jnp.bfloat16).astype(f32), w_r, 1)
    s3, o3 = bn_scale_bias(r, params["bn3g"], params["bn3b"])
    t = bf(r) * s3 + o3
    return jnp.where(t > 0, t, t * params["a2"].reshape(1, 1, 1, 1))


if __name__ == "__main__":
    key = jax.random.PRNGKey(0)
    k_low, k_high, k_par = jax.random.split(key, 3)
    params = init_params(k_par)

    # First case runs the single-tile-per-image path; the second forces the
    # row-tiled (halo) path so both code paths are exercised on-device.
    for (H, W, max_rows) in ((8, 8, 2048), (16, 16, 128)):
        N = 2
        low_fea = jax.random.normal(jax.random.fold_in(k_low, H),
                                    (N, 24, H, W), jnp.float32)
        high_fea = jax.random.normal(jax.random.fold_in(k_high, H),
                                     (N, 32, H, W), jnp.float32)
        out = jax.block_until_ready(
            combine_feature(low_fea, high_fea, params, max_rows_per_tile=max_rows))
        assert out.shape == (N, 16, H, W), out.shape
        assert bool(jnp.all(jnp.isfinite(out)))
        ref = _reference_forward(low_fea, high_fea, params)
        err = float(jnp.max(jnp.abs(out - ref)))
        assert err < 2e-2, f"mismatch vs reference (H={H}, W={W}): {err}"

    print("KERNEL_OK")
</pallas_src>

<mosaic_0001>
module attributes {stable_mosaic.version = 11 : i64} {
  func.func @_fused_conv_kernel(%arg0: i32, %arg1: i32, %arg2: memref<1x8x32xbf16, #tpu.memory_space<vmem>>, %arg3: memref<1x64x32xbf16, #tpu.memory_space<vmem>>, %arg4: memref<1x8x32xbf16, #tpu.memory_space<vmem>>, %arg5: memref<1x64x24xbf16, #tpu.memory_space<vmem>>, %arg6: memref<600x32xbf16, #tpu.memory_space<vmem>>, %arg7: memref<1x64x32xbf16, #tpu.memory_space<vmem>>, %arg8: memref<1x1x2x32xf32, #tpu.memory_space<vmem>>) attributes {dimension_semantics = [#tpu.dimension_semantics<parallel>, #tpu.dimension_semantics<parallel>], iteration_bounds = array<i64: 2, 1>, scalar_prefetch = 0 : i64, scratch_operands = 0 : i64, tpu.core_type = #tpu.core_type<tc>, window_params = [{transform_indices = @transform_0, window_bounds = array<i64: 1, 8, 32>}, {transform_indices = @transform_1, window_bounds = array<i64: 1, 64, 32>}, {transform_indices = @transform_2, window_bounds = array<i64: 1, 8, 32>}, {transform_indices = @transform_3, window_bounds = array<i64: 1, 64, 24>}, {pipeline_mode = #tpu.pipeline_mode<synchronous>, transform_indices = @transform_4, window_bounds = array<i64: 600, 32>}, {transform_indices = @transform_5, window_bounds = array<i64: 1, 64, 32>}, {transform_indices = @transform_6, window_bounds = array<i64: 1, 1, 2, 32>}]} {
    %c0 = arith.constant 0 : index
    %c0_0 = arith.constant 0 : index
    %c0_1 = arith.constant 0 : index
    %0 = vector.load %arg3[%c0, %c0_0, %c0_1] : memref<1x64x32xbf16, #tpu.memory_space<vmem>>, vector<1x64x32xbf16>
    %1 = vector.shape_cast %0 : vector<1x64x32xbf16> to vector<64x32xbf16>
    %2 = arith.extf %1 : vector<64x32xbf16> to vector<64x32xf32>
    %cst = arith.constant 0.000000e+00 : f32
    %3 = vector.broadcast %cst : f32 to vector<18x32xf32>
    %4 = tpu.concatenate %3, %2, %3 in 0 : vector<18x32xf32>, vector<64x32xf32>, vector<18x32xf32> -> vector<100x32xf32>
    %5 = tpu.iota {dimensions = array<i32: 0>} : vector<64x1xi32>
    %c8_i32 = arith.constant 8 : i32
    %c0_i32 = arith.constant 0 : i32
    %6 = arith.cmpi eq, %c8_i32, %c0_i32 : i32
    %c1_i32 = arith.constant 1 : i32
    %7 = arith.select %6, %c1_i32, %c8_i32 : i32
    %8 = vector.broadcast %7 : i32 to vector<64x1xi32>
    %9 = arith.remsi %5, %8 : vector<64x1xi32>
    %c0_i32_2 = arith.constant 0 : i32
    %10 = vector.broadcast %c0_i32_2 : i32 to vector<64x1xi32>
    %11 = arith.cmpi ne, %9, %10 : vector<64x1xi32>
    %c0_i32_3 = arith.constant 0 : i32
    %12 = vector.broadcast %c0_i32_3 : i32 to vector<64x1xi32>
    %13 = arith.cmpi slt, %9, %12 : vector<64x1xi32>
    %c0_i32_4 = arith.constant 0 : i32
    %14 = arith.cmpi slt, %7, %c0_i32_4 : i32
    %15 = vector.broadcast %14 : i1 to vector<64x1xi1>
    %16 = vector.broadcast %15 : vector<64x1xi1> to vector<64x1xi1>
    %17 = arith.xori %13, %16 : vector<64x1xi1>
    %18 = arith.andi %17, %11 : vector<64x1xi1>
    %19 = vector.broadcast %7 : i32 to vector<64x1xi32>
    %20 = arith.addi %9, %19 : vector<64x1xi32>
    %21 = arith.select %18, %20, %9 : vector<64x1xi1>, vector<64x1xi32>
    %c-1_i32 = arith.constant -1 : i32
    %22 = vector.broadcast %c-1_i32 : i32 to vector<64x1xi32>
    %23 = arith.addi %21, %22 : vector<64x1xi32>
    %c0_i32_5 = arith.constant 0 : i32
    %24 = vector.broadcast %c0_i32_5 : i32 to vector<64x1xi32>
    %25 = arith.cmpi sge, %23, %24 : vector<64x1xi32>
    %c-1_i32_6 = arith.constant -1 : i32
    %26 = vector.broadcast %c-1_i32_6 : i32 to vector<64x1xi32>
    %27 = arith.addi %21, %26 : vector<64x1xi32>
    %c8_i32_7 = arith.constant 8 : i32
    %28 = vector.broadcast %c8_i32_7 : i32 to vector<64x1xi32>
    %29 = arith.cmpi slt, %27, %28 : vector<64x1xi32>
    %30 = arith.andi %25, %29 : vector<64x1xi1>
    %c1_i32_8 = arith.constant 1 : i32
    %31 = vector.broadcast %c1_i32_8 : i32 to vector<64x1xi32>
    %32 = arith.addi %21, %31 : vector<64x1xi32>
    %c0_i32_9 = arith.constant 0 : i32
    %33 = vector.broadcast %c0_i32_9 : i32 to vector<64x1xi32>
    %34 = arith.cmpi sge, %32, %33 : vector<64x1xi32>
    %c1_i32_10 = arith.constant 1 : i32
    %35 = vector.broadcast %c1_i32_10 : i32 to vector<64x1xi32>
    %36 = arith.addi %21, %35 : vector<64x1xi32>
    %c8_i32_11 = arith.constant 8 : i32
    %37 = vector.broadcast %c8_i32_11 : i32 to vector<64x1xi32>
    %38 = arith.cmpi slt, %36, %37 : vector<64x1xi32>
    %39 = arith.andi %34, %38 : vector<64x1xi1>
    %c-2_i32 = arith.constant -2 : i32
    %40 = vector.broadcast %c-2_i32 : i32 to vector<64x1xi32>
    %41 = arith.addi %21, %40 : vector<64x1xi32>
    %c0_i32_12 = arith.constant 0 : i32
    %42 = vector.broadcast %c0_i32_12 : i32 to vector<64x1xi32>
    %43 = arith.cmpi sge, %41, %42 : vector<64x1xi32>
    %c-2_i32_13 = arith.constant -2 : i32
    %44 = vector.broadcast %c-2_i32_13 : i32 to vector<64x1xi32>
    %45 = arith.addi %21, %44 : vector<64x1xi32>
    %c8_i32_14 = arith.constant 8 : i32
    %46 = vector.broadcast %c8_i32_14 : i32 to vector<64x1xi32>
    %47 = arith.cmpi slt, %45, %46 : vector<64x1xi32>
    %48 = arith.andi %43, %47 : vector<64x1xi1>
    %c2_i32 = arith.constant 2 : i32
    %49 = vector.broadcast %c2_i32 : i32 to vector<64x1xi32>
    %50 = arith.addi %21, %49 : vector<64x1xi32>
    %c0_i32_15 = arith.constant 0 : i32
    %51 = vector.broadcast %c0_i32_15 : i32 to vector<64x1xi32>
    %52 = arith.cmpi sge, %50, %51 : vector<64x1xi32>
    %c2_i32_16 = arith.constant 2 : i32
    %53 = vector.broadcast %c2_i32_16 : i32 to vector<64x1xi32>
    %54 = arith.addi %21, %53 : vector<64x1xi32>
    %c8_i32_17 = arith.constant 8 : i32
    %55 = vector.broadcast %c8_i32_17 : i32 to vector<64x1xi32>
    %56 = arith.cmpi slt, %54, %55 : vector<64x1xi32>
    %57 = arith.andi %52, %56 : vector<64x1xi1>
    %58 = vector.extract_strided_slice %4 {offsets = [9, 0], sizes = [64, 32], strides = [1, 1]} : vector<100x32xf32> to vector<64x32xf32>
    %cst_18 = arith.constant 0.000000e+00 : f32
    %59 = vector.shape_cast %30 : vector<64x1xi1> to vector<64x1xi1>
    %60 = vector.broadcast %59 : vector<64x1xi1> to vector<64x32xi1>
    %61 = vector.broadcast %cst_18 : f32 to vector<64x32xf32>
    %62 = arith.select %60, %58, %61 : vector<64x32xi1>, vector<64x32xf32>
    %63 = arith.truncf %62 : vector<64x32xf32> to vector<64x32xbf16>
    %64 = vector.extract_strided_slice %4 {offsets = [10, 0], sizes = [64, 32], strides = [1, 1]} : vector<100x32xf32> to vector<64x32xf32>
    %65 = arith.truncf %64 : vector<64x32xf32> to vector<64x32xbf16>
    %66 = vector.extract_strided_slice %4 {offsets = [11, 0], sizes = [64, 32], strides = [1, 1]} : vector<100x32xf32> to vector<64x32xf32>
    %cst_19 = arith.constant 0.000000e+00 : f32
    %67 = vector.shape_cast %39 : vector<64x1xi1> to vector<64x1xi1>
    %68 = vector.broadcast %67 : vector<64x1xi1> to vector<64x32xi1>
    %69 = vector.broadcast %cst_19 : f32 to vector<64x32xf32>
    %70 = arith.select %68, %66, %69 : vector<64x32xi1>, vector<64x32xf32>
    %71 = arith.truncf %70 : vector<64x32xf32> to vector<64x32xbf16>
    %72 = vector.extract_strided_slice %4 {offsets = [17, 0], sizes = [64, 32], strides = [1, 1]} : vector<100x32xf32> to vector<64x32xf32>
    %cst_20 = arith.constant 0.000000e+00 : f32
    %73 = vector.shape_cast %30 : vector<64x1xi1> to vector<64x1xi1>
    %74 = vector.broadcast %73 : vector<64x1xi1> to vector<64x32xi1>
    %75 = vector.broadcast %cst_20 : f32 to vector<64x32xf32>
    %76 = arith.select %74, %72, %75 : vector<64x32xi1>, vector<64x32xf32>
    %77 = arith.truncf %76 : vector<64x32xf32> to vector<64x32xbf16>
    %78 = vector.extract_strided_slice %4 {offsets = [18, 0], sizes = [64, 32], strides = [1, 1]} : vector<100x32xf32> to vector<64x32xf32>
    %79 = arith.truncf %78 : vector<64x32xf32> to vector<64x32xbf16>
    %80 = vector.extract_strided_slice %4 {offsets = [19, 0], sizes = [64, 32], strides = [1, 1]} : vector<100x32xf32> to vector<64x32xf32>
    %cst_21 = arith.constant 0.000000e+00 : f32
    %81 = vector.shape_cast %39 : vector<64x1xi1> to vector<64x1xi1>
    %82 = vector.broadcast %81 : vector<64x1xi1> to vector<64x32xi1>
    %83 = vector.broadcast %cst_21 : f32 to vector<64x32xf32>
    %84 = arith.select %82, %80, %83 : vector<64x32xi1>, vector<64x32xf32>
    %85 = arith.truncf %84 : vector<64x32xf32> to vector<64x32xbf16>
    %86 = vector.extract_strided_slice %4 {offsets = [25, 0], sizes = [64, 32], strides = [1, 1]} : vector<100x32xf32> to vector<64x32xf32>
    %cst_22 = arith.constant 0.000000e+00 : f32
    %87 = vector.shape_cast %30 : vector<64x1xi1> to vector<64x1xi1>
    %88 = vector.broadcast %87 : vector<64x1xi1> to vector<64x32xi1>
    %89 = vector.broadcast %cst_22 : f32 to vector<64x32xf32>
    %90 = arith.select %88, %86, %89 : vector<64x32xi1>, vector<64x32xf32>
    %91 = arith.truncf %90 : vector<64x32xf32> to vector<64x32xbf16>
    %92 = vector.extract_strided_slice %4 {offsets = [26, 0], sizes = [64, 32], strides = [1, 1]} : vector<100x32xf32> to vector<64x32xf32>
    %93 = arith.truncf %92 : vector<64x32xf32> to vector<64x32xbf16>
    %94 = vector.extract_strided_slice %4 {offsets = [27, 0], sizes = [64, 32], strides = [1, 1]} : vector<100x32xf32> to vector<64x32xf32>
    %cst_23 = arith.constant 0.000000e+00 : f32
    %95 = vector.shape_cast %39 : vector<64x1xi1> to vector<64x1xi1>
    %96 = vector.broadcast %95 : vector<64x1xi1> to vector<64x32xi1>
    %97 = vector.broadcast %cst_23 : f32 to vector<64x32xf32>
    %98 = arith.select %96, %94, %97 : vector<64x32xi1>, vector<64x32xf32>
    %99 = arith.truncf %98 : vector<64x32xf32> to vector<64x32xbf16>
    %100 = vector.extract_strided_slice %4 {offsets = [0, 0], sizes = [64, 32], strides = [1, 1]} : vector<100x32xf32> to vector<64x32xf32>
    %cst_24 = arith.constant 0.000000e+00 : f32
    %101 = vector.shape_cast %48 : vector<64x1xi1> to vector<64x1xi1>
    %102 = vector.broadcast %101 : vector<64x1xi1> to vector<64x32xi1>
    %103 = vector.broadcast %cst_24 : f32 to vector<64x32xf32>
    %104 = arith.select %102, %100, %103 : vector<64x32xi1>, vector<64x32xf32>
    %105 = arith.truncf %104 : vector<64x32xf32> to vector<64x32xbf16>
    %106 = vector.extract_strided_slice %4 {offsets = [2, 0], sizes = [64, 32], strides = [1, 1]} : vector<100x32xf32> to vector<64x32xf32>
    %107 = arith.truncf %106 : vector<64x32xf32> to vector<64x32xbf16>
    %108 = vector.extract_strided_slice %4 {offsets = [4, 0], sizes = [64, 32], strides = [1, 1]} : vector<100x32xf32> to vector<64x32xf32>
    %cst_25 = arith.constant 0.000000e+00 : f32
    %109 = vector.shape_cast %57 : vector<64x1xi1> to vector<64x1xi1>
    %110 = vector.broadcast %109 : vector<64x1xi1> to vector<64x32xi1>
    %111 = vector.broadcast %cst_25 : f32 to vector<64x32xf32>
    %112 = arith.select %110, %108, %111 : vector<64x32xi1>, vector<64x32xf32>
    %113 = arith.truncf %112 : vector<64x32xf32> to vector<64x32xbf16>
    %114 = vector.extract_strided_slice %4 {offsets = [16, 0], sizes = [64, 32], strides = [1, 1]} : vector<100x32xf32> to vector<64x32xf32>
    %cst_26 = arith.constant 0.000000e+00 : f32
    %115 = vector.shape_cast %48 : vector<64x1xi1> to vector<64x1xi1>
    %116 = vector.broadcast %115 : vector<64x1xi1> to vector<64x32xi1>
    %117 = vector.broadcast %cst_26 : f32 to vector<64x32xf32>
    %118 = arith.select %116, %114, %117 : vector<64x32xi1>, vector<64x32xf32>
    %119 = arith.truncf %118 : vector<64x32xf32> to vector<64x32xbf16>
    %120 = vector.extract_strided_slice %4 {offsets = [18, 0], sizes = [64, 32], strides = [1, 1]} : vector<100x32xf32> to vector<64x32xf32>
    %121 = arith.truncf %120 : vector<64x32xf32> to vector<64x32xbf16>
    %122 = vector.extract_strided_slice %4 {offsets = [20, 0], sizes = [64, 32], strides = [1, 1]} : vector<100x32xf32> to vector<64x32xf32>
    %cst_27 = arith.constant 0.000000e+00 : f32
    %123 = vector.shape_cast %57 : vector<64x1xi1> to vector<64x1xi1>
    %124 = vector.broadcast %123 : vector<64x1xi1> to vector<64x32xi1>
    %125 = vector.broadcast %cst_27 : f32 to vector<64x32xf32>
    %126 = arith.select %124, %122, %125 : vector<64x32xi1>, vector<64x32xf32>
    %127 = arith.truncf %126 : vector<64x32xf32> to vector<64x32xbf16>
    %128 = vector.extract_strided_slice %4 {offsets = [32, 0], sizes = [64, 32], strides = [1, 1]} : vector<100x32xf32> to vector<64x32xf32>
    %cst_28 = arith.constant 0.000000e+00 : f32
    %129 = vector.shape_cast %48 : vector<64x1xi1> to vector<64x1xi1>
    %130 = vector.broadcast %129 : vector<64x1xi1> to vector<64x32xi1>
    %131 = vector.broadcast %cst_28 : f32 to vector<64x32xf32>
    %132 = arith.select %130, %128, %131 : vector<64x32xi1>, vector<64x32xf32>
    %133 = arith.truncf %132 : vector<64x32xf32> to vector<64x32xbf16>
    %134 = vector.extract_strided_slice %4 {offsets = [34, 0], sizes = [64, 32], strides = [1, 1]} : vector<100x32xf32> to vector<64x32xf32>
    %135 = arith.truncf %134 : vector<64x32xf32> to vector<64x32xbf16>
    %136 = vector.extract_strided_slice %4 {offsets = [36, 0], sizes = [64, 32], strides = [1, 1]} : vector<100x32xf32> to vector<64x32xf32>
    %cst_29 = arith.constant 0.000000e+00 : f32
    %137 = vector.shape_cast %57 : vector<64x1xi1> to vector<64x1xi1>
    %138 = vector.broadcast %137 : vector<64x1xi1> to vector<64x32xi1>
    %139 = vector.broadcast %cst_29 : f32 to vector<64x32xf32>
    %140 = arith.select %138, %136, %139 : vector<64x32xi1>, vector<64x32xf32>
    %141 = arith.truncf %140 : vector<64x32xf32> to vector<64x32xbf16>
    %c0_30 = arith.constant 0 : index
    %c0_31 = arith.constant 0 : index
    %c0_32 = arith.constant 0 : index
    %142 = vector.load %arg5[%c0_30, %c0_31, %c0_32] : memref<1x64x24xbf16, #tpu.memory_space<vmem>>, vector<1x64x24xbf16>
    %143 = vector.shape_cast %142 : vector<1x64x24xbf16> to vector<64x24xbf16>
    %144 = tpu.concatenate %63, %65, %71, %77, %79, %85, %91, %93, %99, %105, %107, %113, %119, %121, %127, %133 in 1 : vector<64x32xbf16>, vector<64x32xbf16>, vector<64x32xbf16>, vector<64x32xbf16>, vector<64x32xbf16>, vector<64x32xbf16>, vector<64x32xbf16>, vector<64x32xbf16>, vector<64x32xbf16>, vector<64x32xbf16>, vector<64x32xbf16>, vector<64x32xbf16>, vector<64x32xbf16>, vector<64x32xbf16>, vector<64x32xbf16>, vector<64x32xbf16> -> vector<64x512xbf16>
    %145 = tpu.concatenate %135, %141, %143 in 1 : vector<64x32xbf16>, vector<64x32xbf16>, vector<64x24xbf16> -> vector<64x88xbf16>
    %146 = tpu.concatenate %144, %145 in 1 : vector<64x512xbf16>, vector<64x88xbf16> -> vector<64x600xbf16>
    %c0_33 = arith.constant 0 : index
    %c0_34 = arith.constant 0 : index
    %147 = vector.load %arg6[%c0_33, %c0_34] : memref<600x32xbf16, #tpu.memory_space<vmem>>, vector<600x32xbf16>
    %cst_35 = arith.constant dense<0.000000e+00> : vector<64x32xf32>
    %148 = tpu.matmul %146, %147, %cst_35 {dimension_numbers = #tpu.dot_dimension_numbers<[1], [0], [0], [1], [0, 0, 1, 1], [], []>} : vector<64x600xbf16>, vector<600x32xbf16>, vector<64x32xf32> -> vector<64x32xf32>
    %149 = arith.truncf %148 : vector<64x32xf32> to vector<64x32xbf16>
    %c0_36 = arith.constant 0 : index
    %c0_37 = arith.constant 0 : index
    %c0_38 = arith.constant 0 : index
    %150 = vector.load %arg7[%c0_36, %c0_37, %c0_38] : memref<1x64x32xbf16, #tpu.memory_space<vmem>>, vector<1x64x32xbf16>
    %151 = vector.shape_cast %150 : vector<1x64x32xbf16> to vector<64x32xbf16>
    %152 = vector.shape_cast %149 : vector<64x32xbf16> to vector<1x64x32xbf16>
    tpu.vector_store %arg7[%c0_36, %c0_37, %c0_38], %152 {strides = array<i32>} : memref<1x64x32xbf16, #tpu.memory_space<vmem>>, vector<1x64x32xbf16>,
    %cst_39 = arith.constant dense<0.000000e+00> : vector<32xf32>
    %153 = vector.multi_reduction <add>, %148, %cst_39 [0] : vector<64x32xf32> to vector<32xf32>
    %154 = vector.shape_cast %153 : vector<32xf32> to vector<1x32xf32>
    %cst_40 = arith.constant 6.400000e+01 : f32
    %155 = vector.broadcast %cst_40 : f32 to vector<1x32xf32>
    %156 = arith.divf %154, %155 : vector<1x32xf32>
    %157 = vector.broadcast %156 : vector<1x32xf32> to vector<64x32xf32>
    %158 = arith.subf %148, %157 : vector<64x32xf32>
    %159 = vector.broadcast %156 : vector<1x32xf32> to vector<64x32xf32>
    %160 = arith.subf %148, %159 : vector<64x32xf32>
    %161 = arith.mulf %158, %160 : vector<64x32xf32>
    %cst_41 = arith.constant dense<0.000000e+00> : vector<32xf32>
    %162 = vector.multi_reduction <add>, %161, %cst_41 [0] : vector<64x32xf32> to vector<32xf32>
    %163 = vector.shape_cast %162 : vector<32xf32> to vector<1x32xf32>
    %164 = tpu.concatenate %154, %163 in 0 : vector<1x32xf32>, vector<1x32xf32> -> vector<2x32xf32>
    %c0_42 = arith.constant 0 : index
    %c0_43 = arith.constant 0 : index
    %c0_44 = arith.constant 0 : index
    %c0_45 = arith.constant 0 : index
    %165 = vector.load %arg8[%c0_42, %c0_43, %c0_44, %c0_45] : memref<1x1x2x32xf32, #tpu.memory_space<vmem>>, vector<1x1x2x32xf32>
    %166 = vector.shape_cast %165 : vector<1x1x2x32xf32> to vector<2x32xf32>
    %167 = vector.shape_cast %164 : vector<2x32xf32> to vector<1x1x2x32xf32>
    tpu.vector_store %arg8[%c0_42, %c0_43, %c0_44, %c0_45], %167 {strides = array<i32>} : memref<1x1x2x32xf32, #tpu.memory_space<vmem>>, vector<1x1x2x32xf32>,
    return
  }
  func.func @transform_0(%arg0: i32, %arg1: i32) -> (i32, i32, i32) {
    %c8_i32 = arith.constant 8 : i32
    %0 = arith.muli %arg1, %c8_i32 : i32
    %c1_i32 = arith.constant 1 : i32
    %1 = arith.subi %0, %c1_i32 : i32
    %c0_i32 = arith.constant 0 : i32
    %2 = arith.maxsi %1, %c0_i32 : i32
    %c0_i32_0 = arith.constant 0 : i32
    %c0_i32_1 = arith.constant 0 : i32
    return %arg0, %2, %c0_i32_0 : i32, i32, i32
  }
  func.func @transform_1(%arg0: i32, %arg1: i32) -> (i32, i32, i32) {
    %c0_i32 = arith.constant 0 : i32
    %c0_i32_0 = arith.constant 0 : i32
    return %arg0, %arg1, %c0_i32 : i32, i32, i32
  }
  func.func @transform_2(%arg0: i32, %arg1: i32) -> (i32, i32, i32) {
    %c1_i32 = arith.constant 1 : i32
    %0 = arith.addi %arg1, %c1_i32 : i32
    %c8_i32 = arith.constant 8 : i32
    %1 = arith.muli %0, %c8_i32 : i32
    %c7_i32 = arith.constant 7 : i32
    %2 = arith.minsi %1, %c7_i32 : i32
    %c0_i32 = arith.constant 0 : i32
    %c0_i32_0 = arith.constant 0 : i32
    return %arg0, %2, %c0_i32 : i32, i32, i32
  }
  func.func @transform_3(%arg0: i32, %arg1: i32) -> (i32, i32, i32) {
    %c0_i32 = arith.constant 0 : i32
    %c0_i32_0 = arith.constant 0 : i32
    return %arg0, %arg1, %c0_i32 : i32, i32, i32
  }
  func.func @transform_4(%arg0: i32, %arg1: i32) -> (i32, i32) {
    %c0_i32 = arith.constant 0 : i32
    %c0_i32_0 = arith.constant 0 : i32
    %c0_i32_1 = arith.constant 0 : i32
    return %c0_i32, %c0_i32_0 : i32, i32
  }
  func.func @transform_5(%arg0: i32, %arg1: i32) -> (i32, i32, i32) {
    %c0_i32 = arith.constant 0 : i32
    %c0_i32_0 = arith.constant 0 : i32
    return %arg0, %arg1, %c0_i32 : i32, i32, i32
  }
  func.func @transform_6(%arg0: i32, %arg1: i32) -> (i32, i32, i32, i32) {
    %c0_i32 = arith.constant 0 : i32
    %c0_i32_0 = arith.constant 0 : i32
    %c0_i32_1 = arith.constant 0 : i32
    return %arg0, %arg1, %c0_i32, %c0_i32_0 : i32, i32, i32, i32
  }
}

module attributes {stable_mosaic.version = 11 : i64} {
  func.func @_fuse_refine_kernel(%arg0: i32, %arg1: i32, %arg2: memref<1x8x32xbf16, #tpu.memory_space<vmem>>, %arg3: memref<1x64x32xbf16, #tpu.memory_space<vmem>>, %arg4: memref<1x8x32xbf16, #tpu.memory_space<vmem>>, %arg5: memref<144x16xbf16, #tpu.memory_space<vmem>>, %arg6: memref<32x16xf32, #tpu.memory_space<vmem>>, %arg7: memref<2x16xf32, #tpu.memory_space<vmem>>, %arg8: memref<1x64x16xbf16, #tpu.memory_space<vmem>>, %arg9: memref<1x1x2x16xf32, #tpu.memory_space<vmem>>) attributes {dimension_semantics = [#tpu.dimension_semantics<parallel>, #tpu.dimension_semantics<parallel>], iteration_bounds = array<i64: 2, 1>, scalar_prefetch = 0 : i64, scratch_operands = 0 : i64, tpu.core_type = #tpu.core_type<tc>, window_params = [{transform_indices = @transform_0, window_bounds = array<i64: 1, 8, 32>}, {transform_indices = @transform_1, window_bounds = array<i64: 1, 64, 32>}, {transform_indices = @transform_2, window_bounds = array<i64: 1, 8, 32>}, {pipeline_mode = #tpu.pipeline_mode<synchronous>, transform_indices = @transform_3, window_bounds = array<i64: 144, 16>}, {pipeline_mode = #tpu.pipeline_mode<synchronous>, transform_indices = @transform_4, window_bounds = array<i64: 32, 16>}, {pipeline_mode = #tpu.pipeline_mode<synchronous>, transform_indices = @transform_5, window_bounds = array<i64: 2, 16>}, {transform_indices = @transform_6, window_bounds = array<i64: 1, 64, 16>}, {transform_indices = @transform_7, window_bounds = array<i64: 1, 1, 2, 16>}]} {
    %c0 = arith.constant 0 : index
    %c0_0 = arith.constant 0 : index
    %c0_1 = arith.constant 0 : index
    %0 = vector.load %arg3[%c0, %c0_0, %c0_1] : memref<1x64x32xbf16, #tpu.memory_space<vmem>>, vector<1x64x32xbf16>
    %1 = vector.shape_cast %0 : vector<1x64x32xbf16> to vector<64x32xbf16>
    %2 = arith.extf %1 : vector<64x32xbf16> to vector<64x32xf32>
    %cst = arith.constant 0.000000e+00 : f32
    %3 = vector.broadcast %cst : f32 to vector<9x32xf32>
    %4 = tpu.concatenate %3, %2, %3 in 0 : vector<9x32xf32>, vector<64x32xf32>, vector<9x32xf32> -> vector<82x32xf32>
    %c0_2 = arith.constant 0 : index
    %c0_3 = arith.constant 0 : index
    %5 = vector.load %arg7[%c0_2, %c0_3] : memref<2x16xf32, #tpu.memory_space<vmem>>, vector<2x16xf32>
    %c0_4 = arith.constant 0 : index
    %c0_5 = arith.constant 0 : index
    %6 = vector.load %arg6[%c0_4, %c0_5] : memref<32x16xf32, #tpu.memory_space<vmem>>, vector<32x16xf32>
    %cst_6 = arith.constant dense<0.000000e+00> : vector<82x16xf32>
    %7 = tpu.matmul %4, %6, %cst_6 {dimension_numbers = #tpu.dot_dimension_numbers<[1], [0], [0], [1], [0, 0, 1, 1], [], []>} : vector<82x32xf32>, vector<32x16xf32>, vector<82x16xf32> -> vector<82x16xf32>
    %8 = vector.extract_strided_slice %5 {offsets = [0, 0], sizes = [1, 16], strides = [1, 1]} : vector<2x16xf32> to vector<1x16xf32>
    %9 = vector.broadcast %8 : vector<1x16xf32> to vector<82x16xf32>
    %10 = arith.addf %7, %9 : vector<82x16xf32>
    %cst_7 = arith.constant 0.000000e+00 : f32
    %11 = vector.broadcast %cst_7 : f32 to vector<82x16xf32>
    %12 = arith.cmpf ogt, %10, %11 : vector<82x16xf32>
    %13 = vector.extract_strided_slice %5 {offsets = [1, 0], sizes = [1, 16], strides = [1, 1]} : vector<2x16xf32> to vector<1x16xf32>
    %14 = vector.broadcast %13 : vector<1x16xf32> to vector<82x16xf32>
    %15 = arith.mulf %10, %14 : vector<82x16xf32>
    %16 = arith.select %12, %10, %15 : vector<82x16xi1>, vector<82x16xf32>
    %17 = tpu.iota {dimensions = array<i32: 0>} : vector<82x1xi32>
    %c64_i32 = arith.constant 64 : i32
    %18 = arith.muli %arg1, %c64_i32 : i32
    %c9_i32 = arith.constant 9 : i32
    %19 = arith.subi %18, %c9_i32 : i32
    %20 = vector.broadcast %19 : i32 to vector<82x1xi32>
    %21 = arith.addi %17, %20 : vector<82x1xi32>
    %c0_i32 = arith.constant 0 : i32
    %22 = vector.broadcast %c0_i32 : i32 to vector<82x1xi32>
    %23 = arith.cmpi sge, %21, %22 : vector<82x1xi32>
    %c64_i32_8 = arith.constant 64 : i32
    %24 = vector.broadcast %c64_i32_8 : i32 to vector<82x1xi32>
    %25 = arith.cmpi slt, %21, %24 : vector<82x1xi32>
    %26 = arith.andi %23, %25 : vector<82x1xi1>
    %cst_9 = arith.constant 0.000000e+00 : f32
    %27 = vector.shape_cast %26 : vector<82x1xi1> to vector<82x1xi1>
    %28 = vector.broadcast %27 : vector<82x1xi1> to vector<82x16xi1>
    %29 = vector.broadcast %cst_9 : f32 to vector<82x16xf32>
    %30 = arith.select %28, %16, %29 : vector<82x16xi1>, vector<82x16xf32>
    %31 = tpu.iota {dimensions = array<i32: 0>} : vector<64x1xi32>
    %c8_i32 = arith.constant 8 : i32
    %c0_i32_10 = arith.constant 0 : i32
    %32 = arith.cmpi eq, %c8_i32, %c0_i32_10 : i32
    %c1_i32 = arith.constant 1 : i32
    %33 = arith.select %32, %c1_i32, %c8_i32 : i32
    %34 = vector.broadcast %33 : i32 to vector<64x1xi32>
    %35 = arith.remsi %31, %34 : vector<64x1xi32>
    %c0_i32_11 = arith.constant 0 : i32
    %36 = vector.broadcast %c0_i32_11 : i32 to vector<64x1xi32>
    %37 = arith.cmpi ne, %35, %36 : vector<64x1xi32>
    %c0_i32_12 = arith.constant 0 : i32
    %38 = vector.broadcast %c0_i32_12 : i32 to vector<64x1xi32>
    %39 = arith.cmpi slt, %35, %38 : vector<64x1xi32>
    %c0_i32_13 = arith.constant 0 : i32
    %40 = arith.cmpi slt, %33, %c0_i32_13 : i32
    %41 = vector.broadcast %40 : i1 to vector<64x1xi1>
    %42 = vector.broadcast %41 : vector<64x1xi1> to vector<64x1xi1>
    %43 = arith.xori %39, %42 : vector<64x1xi1>
    %44 = arith.andi %43, %37 : vector<64x1xi1>
    %45 = vector.broadcast %33 : i32 to vector<64x1xi32>
    %46 = arith.addi %35, %45 : vector<64x1xi32>
    %47 = arith.select %44, %46, %35 : vector<64x1xi1>, vector<64x1xi32>
    %c-1_i32 = arith.constant -1 : i32
    %48 = vector.broadcast %c-1_i32 : i32 to vector<64x1xi32>
    %49 = arith.addi %47, %48 : vector<64x1xi32>
    %c0_i32_14 = arith.constant 0 : i32
    %50 = vector.broadcast %c0_i32_14 : i32 to vector<64x1xi32>
    %51 = arith.cmpi sge, %49, %50 : vector<64x1xi32>
    %c-1_i32_15 = arith.constant -1 : i32
    %52 = vector.broadcast %c-1_i32_15 : i32 to vector<64x1xi32>
    %53 = arith.addi %47, %52 : vector<64x1xi32>
    %c8_i32_16 = arith.constant 8 : i32
    %54 = vector.broadcast %c8_i32_16 : i32 to vector<64x1xi32>
    %55 = arith.cmpi slt, %53, %54 : vector<64x1xi32>
    %56 = arith.andi %51, %55 : vector<64x1xi1>
    %c1_i32_17 = arith.constant 1 : i32
    %57 = vector.broadcast %c1_i32_17 : i32 to vector<64x1xi32>
    %58 = arith.addi %47, %57 : vector<64x1xi32>
    %c0_i32_18 = arith.constant 0 : i32
    %59 = vector.broadcast %c0_i32_18 : i32 to vector<64x1xi32>
    %60 = arith.cmpi sge, %58, %59 : vector<64x1xi32>
    %c1_i32_19 = arith.constant 1 : i32
    %61 = vector.broadcast %c1_i32_19 : i32 to vector<64x1xi32>
    %62 = arith.addi %47, %61 : vector<64x1xi32>
    %c8_i32_20 = arith.constant 8 : i32
    %63 = vector.broadcast %c8_i32_20 : i32 to vector<64x1xi32>
    %64 = arith.cmpi slt, %62, %63 : vector<64x1xi32>
    %65 = arith.andi %60, %64 : vector<64x1xi1>
    %66 = vector.extract_strided_slice %30 {offsets = [0, 0], sizes = [64, 16], strides = [1, 1]} : vector<82x16xf32> to vector<64x16xf32>
    %cst_21 = arith.constant 0.000000e+00 : f32
    %67 = vector.shape_cast %56 : vector<64x1xi1> to vector<64x1xi1>
    %68 = vector.broadcast %67 : vector<64x1xi1> to vector<64x16xi1>
    %69 = vector.broadcast %cst_21 : f32 to vector<64x16xf32>
    %70 = arith.select %68, %66, %69 : vector<64x16xi1>, vector<64x16xf32>
    %71 = arith.truncf %70 : vector<64x16xf32> to vector<64x16xbf16>
    %72 = vector.extract_strided_slice %30 {offsets = [1, 0], sizes = [64, 16], strides = [1, 1]} : vector<82x16xf32> to vector<64x16xf32>
    %73 = arith.truncf %72 : vector<64x16xf32> to vector<64x16xbf16>
    %74 = vector.extract_strided_slice %30 {offsets = [2, 0], sizes = [64, 16], strides = [1, 1]} : vector<82x16xf32> to vector<64x16xf32>
    %cst_22 = arith.constant 0.000000e+00 : f32
    %75 = vector.shape_cast %65 : vector<64x1xi1> to vector<64x1xi1>
    %76 = vector.broadcast %75 : vector<64x1xi1> to vector<64x16xi1>
    %77 = vector.broadcast %cst_22 : f32 to vector<64x16xf32>
    %78 = arith.select %76, %74, %77 : vector<64x16xi1>, vector<64x16xf32>
    %79 = arith.truncf %78 : vector<64x16xf32> to vector<64x16xbf16>
    %80 = vector.extract_strided_slice %30 {offsets = [8, 0], sizes = [64, 16], strides = [1, 1]} : vector<82x16xf32> to vector<64x16xf32>
    %cst_23 = arith.constant 0.000000e+00 : f32
    %81 = vector.shape_cast %56 : vector<64x1xi1> to vector<64x1xi1>
    %82 = vector.broadcast %81 : vector<64x1xi1> to vector<64x16xi1>
    %83 = vector.broadcast %cst_23 : f32 to vector<64x16xf32>
    %84 = arith.select %82, %80, %83 : vector<64x16xi1>, vector<64x16xf32>
    %85 = arith.truncf %84 : vector<64x16xf32> to vector<64x16xbf16>
    %86 = vector.extract_strided_slice %30 {offsets = [9, 0], sizes = [64, 16], strides = [1, 1]} : vector<82x16xf32> to vector<64x16xf32>
    %87 = arith.truncf %86 : vector<64x16xf32> to vector<64x16xbf16>
    %88 = vector.extract_strided_slice %30 {offsets = [10, 0], sizes = [64, 16], strides = [1, 1]} : vector<82x16xf32> to vector<64x16xf32>
    %cst_24 = arith.constant 0.000000e+00 : f32
    %89 = vector.shape_cast %65 : vector<64x1xi1> to vector<64x1xi1>
    %90 = vector.broadcast %89 : vector<64x1xi1> to vector<64x16xi1>
    %91 = vector.broadcast %cst_24 : f32 to vector<64x16xf32>
    %92 = arith.select %90, %88, %91 : vector<64x16xi1>, vector<64x16xf32>
    %93 = arith.truncf %92 : vector<64x16xf32> to vector<64x16xbf16>
    %94 = vector.extract_strided_slice %30 {offsets = [16, 0], sizes = [64, 16], strides = [1, 1]} : vector<82x16xf32> to vector<64x16xf32>
    %cst_25 = arith.constant 0.000000e+00 : f32
    %95 = vector.shape_cast %56 : vector<64x1xi1> to vector<64x1xi1>
    %96 = vector.broadcast %95 : vector<64x1xi1> to vector<64x16xi1>
    %97 = vector.broadcast %cst_25 : f32 to vector<64x16xf32>
    %98 = arith.select %96, %94, %97 : vector<64x16xi1>, vector<64x16xf32>
    %99 = arith.truncf %98 : vector<64x16xf32> to vector<64x16xbf16>
    %100 = vector.extract_strided_slice %30 {offsets = [17, 0], sizes = [64, 16], strides = [1, 1]} : vector<82x16xf32> to vector<64x16xf32>
    %101 = arith.truncf %100 : vector<64x16xf32> to vector<64x16xbf16>
    %102 = vector.extract_strided_slice %30 {offsets = [18, 0], sizes = [64, 16], strides = [1, 1]} : vector<82x16xf32> to vector<64x16xf32>
    %cst_26 = arith.constant 0.000000e+00 : f32
    %103 = vector.shape_cast %65 : vector<64x1xi1> to vector<64x1xi1>
    %104 = vector.broadcast %103 : vector<64x1xi1> to vector<64x16xi1>
    %105 = vector.broadcast %cst_26 : f32 to vector<64x16xf32>
    %106 = arith.select %104, %102, %105 : vector<64x16xi1>, vector<64x16xf32>
    %107 = arith.truncf %106 : vector<64x16xf32> to vector<64x16xbf16>
    %108 = tpu.concatenate %71, %73, %79, %85, %87, %93, %99, %101, %107 in 1 : vector<64x16xbf16>, vector<64x16xbf16>, vector<64x16xbf16>, vector<64x16xbf16>, vector<64x16xbf16>, vector<64x16xbf16>, vector<64x16xbf16>, vector<64x16xbf16>, vector<64x16xbf16> -> vector<64x144xbf16>
    %c0_27 = arith.constant 0 : index
    %c0_28 = arith.constant 0 : index
    %109 = vector.load %arg5[%c0_27, %c0_28] : memref<144x16xbf16, #tpu.memory_space<vmem>>, vector<144x16xbf16>
    %cst_29 = arith.constant dense<0.000000e+00> : vector<64x16xf32>
    %110 = tpu.matmul %108, %109, %cst_29 {dimension_numbers = #tpu.dot_dimension_numbers<[1], [0], [0], [1], [0, 0, 1, 1], [], []>} : vector<64x144xbf16>, vector<144x16xbf16>, vector<64x16xf32> -> vector<64x16xf32>
    %111 = arith.truncf %110 : vector<64x16xf32> to vector<64x16xbf16>
    %c0_30 = arith.constant 0 : index
    %c0_31 = arith.constant 0 : index
    %c0_32 = arith.constant 0 : index
    %112 = vector.load %arg8[%c0_30, %c0_31, %c0_32] : memref<1x64x16xbf16, #tpu.memory_space<vmem>>, vector<1x64x16xbf16>
    %113 = vector.shape_cast %112 : vector<1x64x16xbf16> to vector<64x16xbf16>
    %114 = vector.shape_cast %111 : vector<64x16xbf16> to vector<1x64x16xbf16>
    tpu.vector_store %arg8[%c0_30, %c0_31, %c0_32], %114 {strides = array<i32>} : memref<1x64x16xbf16, #tpu.memory_space<vmem>>, vector<1x64x16xbf16>,
    %cst_33 = arith.constant dense<0.000000e+00> : vector<16xf32>
    %115 = vector.multi_reduction <add>, %110, %cst_33 [0] : vector<64x16xf32> to vector<16xf32>
    %116 = vector.shape_cast %115 : vector<16xf32> to vector<1x16xf32>
    %cst_34 = arith.constant 6.400000e+01 : f32
    %117 = vector.broadcast %cst_34 : f32 to vector<1x16xf32>
    %118 = arith.divf %116, %117 : vector<1x16xf32>
    %119 = vector.broadcast %118 : vector<1x16xf32> to vector<64x16xf32>
    %120 = arith.subf %110, %119 : vector<64x16xf32>
    %121 = vector.broadcast %118 : vector<1x16xf32> to vector<64x16xf32>
    %122 = arith.subf %110, %121 : vector<64x16xf32>
    %123 = arith.mulf %120, %122 : vector<64x16xf32>
    %cst_35 = arith.constant dense<0.000000e+00> : vector<16xf32>
    %124 = vector.multi_reduction <add>, %123, %cst_35 [0] : vector<64x16xf32> to vector<16xf32>
    %125 = vector.shape_cast %124 : vector<16xf32> to vector<1x16xf32>
    %126 = tpu.concatenate %116, %125 in 0 : vector<1x16xf32>, vector<1x16xf32> -> vector<2x16xf32>
    %c0_36 = arith.constant 0 : index
    %c0_37 = arith.constant 0 : index
    %c0_38 = arith.constant 0 : index
    %c0_39 = arith.constant 0 : index
    %127 = vector.load %arg9[%c0_36, %c0_37, %c0_38, %c0_39] : memref<1x1x2x16xf32, #tpu.memory_space<vmem>>, vector<1x1x2x16xf32>
    %128 = vector.shape_cast %127 : vector<1x1x2x16xf32> to vector<2x16xf32>
    %129 = vector.shape_cast %126 : vector<2x16xf32> to vector<1x1x2x16xf32>
    tpu.vector_store %arg9[%c0_36, %c0_37, %c0_38, %c0_39], %129 {strides = array<i32>} : memref<1x1x2x16xf32, #tpu.memory_space<vmem>>, vector<1x1x2x16xf32>,
    return
  }
  func.func @transform_0(%arg0: i32, %arg1: i32) -> (i32, i32, i32) {
    %c8_i32 = arith.constant 8 : i32
    %0 = arith.muli %arg1, %c8_i32 : i32
    %c1_i32 = arith.constant 1 : i32
    %1 = arith.subi %0, %c1_i32 : i32
    %c0_i32 = arith.constant 0 : i32
    %2 = arith.maxsi %1, %c0_i32 : i32
    %c0_i32_0 = arith.constant 0 : i32
    %c0_i32_1 = arith.constant 0 : i32
    return %arg0, %2, %c0_i32_0 : i32, i32, i32
  }
  func.func @transform_1(%arg0: i32, %arg1: i32) -> (i32, i32, i32) {
    %c0_i32 = arith.constant 0 : i32
    %c0_i32_0 = arith.constant 0 : i32
    return %arg0, %arg1, %c0_i32 : i32, i32, i32
  }
  func.func @transform_2(%arg0: i32, %arg1: i32) -> (i32, i32, i32) {
    %c1_i32 = arith.constant 1 : i32
    %0 = arith.addi %arg1, %c1_i32 : i32
    %c8_i32 = arith.constant 8 : i32
    %1 = arith.muli %0, %c8_i32 : i32
    %c7_i32 = arith.constant 7 : i32
    %2 = arith.minsi %1, %c7_i32 : i32
    %c0_i32 = arith.constant 0 : i32
    %c0_i32_0 = arith.constant 0 : i32
    return %arg0, %2, %c0_i32 : i32, i32, i32
  }
  func.func @transform_3(%arg0: i32, %arg1: i32) -> (i32, i32) {
    %c0_i32 = arith.constant 0 : i32
    %c0_i32_0 = arith.constant 0 : i32
    %c0_i32_1 = arith.constant 0 : i32
    return %c0_i32, %c0_i32_0 : i32, i32
  }
  func.func @transform_4(%arg0: i32, %arg1: i32) -> (i32, i32) {
    %c0_i32 = arith.constant 0 : i32
    %c0_i32_0 = arith.constant 0 : i32
    %c0_i32_1 = arith.constant 0 : i32
    return %c0_i32, %c0_i32_0 : i32, i32
  }
  func.func @transform_5(%arg0: i32, %arg1: i32) -> (i32, i32) {
    %c0_i32 = arith.constant 0 : i32
    %c0_i32_0 = arith.constant 0 : i32
    %c0_i32_1 = arith.constant 0 : i32
    return %c0_i32, %c0_i32_0 : i32, i32
  }
  func.func @transform_6(%arg0: i32, %arg1: i32) -> (i32, i32, i32) {
    %c0_i32 = arith.constant 0 : i32
    %c0_i32_0 = arith.constant 0 : i32
    return %arg0, %arg1, %c0_i32 : i32, i32, i32
  }
  func.func @transform_7(%arg0: i32, %arg1: i32) -> (i32, i32, i32, i32) {
    %c0_i32 = arith.constant 0 : i32
    %c0_i32_0 = arith.constant 0 : i32
    %c0_i32_1 = arith.constant 0 : i32
    return %arg0, %arg1, %c0_i32, %c0_i32_0 : i32, i32, i32, i32
  }
}

module attributes {stable_mosaic.version = 11 : i64} {
  func.func @_bn_prelu_kernel(%arg0: i32, %arg1: i32, %arg2: memref<1x8x128xbf16, #tpu.memory_space<vmem>>, %arg3: memref<1x128xf32, #tpu.memory_space<vmem>>, %arg4: memref<1x128xf32, #tpu.memory_space<vmem>>, %arg5: memref<1x128xf32, #tpu.memory_space<vmem>>, %arg6: memref<1x8x128xf32, #tpu.memory_space<vmem>>) attributes {dimension_semantics = [#tpu.dimension_semantics<parallel>, #tpu.dimension_semantics<parallel>], iteration_bounds = array<i64: 2, 1>, scalar_prefetch = 0 : i64, scratch_operands = 0 : i64, tpu.core_type = #tpu.core_type<tc>, window_params = [{transform_indices = @transform_0, window_bounds = array<i64: 1, 8, 128>}, {pipeline_mode = #tpu.pipeline_mode<synchronous>, transform_indices = @transform_1, window_bounds = array<i64: 1, 128>}, {pipeline_mode = #tpu.pipeline_mode<synchronous>, transform_indices = @transform_2, window_bounds = array<i64: 1, 128>}, {pipeline_mode = #tpu.pipeline_mode<synchronous>, transform_indices = @transform_3, window_bounds = array<i64: 1, 128>}, {transform_indices = @transform_4, window_bounds = array<i64: 1, 8, 128>}]} {
    %c0 = arith.constant 0 : index
    %c0_0 = arith.constant 0 : index
    %c0_1 = arith.constant 0 : index
    %0 = vector.load %arg2[%c0, %c0_0, %c0_1] : memref<1x8x128xbf16, #tpu.memory_space<vmem>>, vector<1x8x128xbf16>
    %1 = vector.shape_cast %0 : vector<1x8x128xbf16> to vector<8x128xbf16>
    %2 = arith.extf %1 : vector<8x128xbf16> to vector<8x128xf32>
    %c0_2 = arith.constant 0 : index
    %c0_3 = arith.constant 0 : index
    %3 = vector.load %arg3[%c0_2, %c0_3] : memref<1x128xf32, #tpu.memory_space<vmem>>, vector<1x128xf32>
    %4 = vector.broadcast %3 : vector<1x128xf32> to vector<8x128xf32>
    %5 = arith.mulf %2, %4 : vector<8x128xf32>
    %c0_4 = arith.constant 0 : index
    %c0_5 = arith.constant 0 : index
    %6 = vector.load %arg4[%c0_4, %c0_5] : memref<1x128xf32, #tpu.memory_space<vmem>>, vector<1x128xf32>
    %7 = vector.broadcast %6 : vector<1x128xf32> to vector<8x128xf32>
    %8 = arith.addf %5, %7 : vector<8x128xf32>
    %cst = arith.constant 0.000000e+00 : f32
    %9 = vector.broadcast %cst : f32 to vector<8x128xf32>
    %10 = arith.cmpf ogt, %8, %9 : vector<8x128xf32>
    %c0_6 = arith.constant 0 : index
    %c0_7 = arith.constant 0 : index
    %11 = vector.load %arg5[%c0_6, %c0_7] : memref<1x128xf32, #tpu.memory_space<vmem>>, vector<1x128xf32>
    %12 = vector.broadcast %11 : vector<1x128xf32> to vector<8x128xf32>
    %13 = arith.mulf %8, %12 : vector<8x128xf32>
    %14 = arith.select %10, %8, %13 : vector<8x128xi1>, vector<8x128xf32>
    %c0_8 = arith.constant 0 : index
    %c0_9 = arith.constant 0 : index
    %c0_10 = arith.constant 0 : index
    %15 = vector.load %arg6[%c0_8, %c0_9, %c0_10] : memref<1x8x128xf32, #tpu.memory_space<vmem>>, vector<1x8x128xf32>
    %16 = vector.shape_cast %15 : vector<1x8x128xf32> to vector<8x128xf32>
    %17 = vector.shape_cast %14 : vector<8x128xf32> to vector<1x8x128xf32>
    tpu.vector_store %arg6[%c0_8, %c0_9, %c0_10], %17 {strides = array<i32>} : memref<1x8x128xf32, #tpu.memory_space<vmem>>, vector<1x8x128xf32>,
    return
  }
  func.func @transform_0(%arg0: i32, %arg1: i32) -> (i32, i32, i32) {
    %c0_i32 = arith.constant 0 : i32
    %c0_i32_0 = arith.constant 0 : i32
    return %arg0, %arg1, %c0_i32 : i32, i32, i32
  }
  func.func @transform_1(%arg0: i32, %arg1: i32) -> (i32, i32) {
    %c0_i32 = arith.constant 0 : i32
    %c0_i32_0 = arith.constant 0 : i32
    %c0_i32_1 = arith.constant 0 : i32
    return %c0_i32, %c0_i32_0 : i32, i32
  }
  func.func @transform_2(%arg0: i32, %arg1: i32) -> (i32, i32) {
    %c0_i32 = arith.constant 0 : i32
    %c0_i32_0 = arith.constant 0 : i32
    %c0_i32_1 = arith.constant 0 : i32
    return %c0_i32, %c0_i32_0 : i32, i32
  }
  func.func @transform_3(%arg0: i32, %arg1: i32) -> (i32, i32) {
    %c0_i32 = arith.constant 0 : i32
    %c0_i32_0 = arith.constant 0 : i32
    %c0_i32_1 = arith.constant 0 : i32
    return %c0_i32, %c0_i32_0 : i32, i32
  }
  func.func @transform_4(%arg0: i32, %arg1: i32) -> (i32, i32, i32) {
    %c0_i32 = arith.constant 0 : i32
    %c0_i32_0 = arith.constant 0 : i32
    return %arg0, %arg1, %c0_i32 : i32, i32, i32
  }
}

</mosaic_0001>

<bundles_post_ra>
// kernel: combine_feature.5
= control target key start
LH: loop header
LB: loop body
LE: loop exit
PB: predicated region body
PF: predicated region fallthrough
CT: control target
= control target key end

     0   :  { %s412_s15 = smov 0   ;;  %s414_s16 = smov 0   ;;  %s447_s0 = inlined_call_operand.vmem [shape: bf16[2,8,128], index: 0, kind: input, shape index: {}]   ;;  %s448_s1 = inlined_call_operand.vmem [shape: f32[1,128], index: 1, kind: input, shape index: {}]   ;;  %s449_s2 = inlined_call_operand.vmem [shape: f32[1,128], index: 2, kind: input, shape index: {}]   ;;  %s450_s3 = inlined_call_operand.vmem [shape: f32[1,128], index: 3, kind: input, shape index: {}]   ;;  %s451_s4 = inlined_call_operand.vmem [shape: f32[2,8,128], index: 4, kind: output, shape index: {}]  }
   0x1   :  { %s416_s17 = smov 0  }
   0x2 LB: > { %s26_s18 = sadd.s32 1, %s381_s16  ;;  %p331_p0 = scmp.ge.s32.totalorder %s385_s17, 1  ;;  %s385_s17 = sphi %s416_s17, %s14_s17   ;;  %s381_s16 = sphi %s414_s16, %s453_s16   ;;  %s377_s15 = sphi %s412_s15, %s452_s15  }
   0x3   : > { %p28_p1 = scmp.ge.s32.totalorder %s26_s18, 2  ;;  %p180_p2 = scmp.lt.s32.totalorder %s385_s17, 3 }
   0x5   : > { %s455_s18 = smov (%p28_p1, %s26_s18), 0  ;;  %p181_p3 = pnand %p331_p0, %p180_p2 }
   0x6   : > { %p210_p4 = scmp.lt.s32.totalorder (!%p181_p3), %s377_s15, 1  ;;  %v334_v1 = vld [vmem:[%s448_s1] ss:$0 sm:$0xff] (!%p181_p3) }
   0x7   : > { %184 = sbr.rel (%p181_p3) target bundleno = 28 (0x1c), region = 36  ;;  %v335_v3 = vld [vmem:[%s449_s2] ss:$0 sm:$0xff] (!%p181_p3) }
   0x8   : > { %v336_v5 = vld [vmem:[%s450_s3] ss:$0 sm:$0xff] (!%p181_p3) }
   0xe   : > { %s457_s15 = smov (!%p210_p4, %s377_s15), 1 }
   0xf   : > { %s332_s19 = sshll.u32 %s457_s15, 2  ;;  %s333_s27 = sshll.u32 %s457_s15, 3 }
  0x10   : > { %s216_s22 = scalar_lea.vmem %s447_s0, %s332_s19  ;;  %s223_s6 = scalar_lea.vmem %s451_s4, %s333_s27 }
  0x11   : > { %v224_v0 = vld [vmem:[%s216_s22] sm:$0xf] }
  0x12   : > { %v225_v2 = vunpack.c.l.bf16 %v224_v0 }
  0x14   : > { %v233_v4 = vmul.f32 %v334_v1, %v225_v2 }
  0x16   : > { %v241_v6 = vadd.f32 %v335_v3, %v233_v4 }
  0x18   : > { %vm242_vm0 = vcmp.gt.f32.partialorder %v241_v6, 0.0  ;;  %v250_v7 = vmul.f32 %v336_v5, %v241_v6 }
  0x1a   : > { %v251_v8 = vsel %vm242_vm0, %v241_v6, %v250_v7 }
  0x1b   : > { %252 = vst [vmem:[%s223_s6] sm:$0xff] %v251_v8 }
  0x1c PF: > { %s14_s17 = sadd.s32 1, %s385_s17   ;;  %s452_s15 = smov %s381_s16 }
  0x1d   : > { %p11_p5 = scmp.ge.s32.totalorder %s14_s17, 4   ;;  %s453_s16 = smov %s455_s18 }
  0x1f   :  { %13 = sbr.rel (!%p11_p5) target bundleno = 2 (0x2), region = 66 }

// kernel: combine_feature.3
= control target key start
LH: loop header
LB: loop body
LE: loop exit
PB: predicated region body
PF: predicated region fallthrough
CT: control target
= control target key end

     0   :  { %s2623_s21 = smov 0   ;;  %s2625_s0 = smov 0   ;;  %s3794_s0 = inlined_call_operand.vmem [shape: bf16[2,64,32], index: 0, kind: input, shape index: {}, may-alias: {0,1,2}]   ;;  %s3795_s1 = inlined_call_operand.vmem [shape: bf16[2,64,32], index: 1, kind: input, shape index: {}, may-alias: {0,1,2}]   ;;  %s3796_s2 = inlined_call_operand.vmem [shape: bf16[2,64,32], index: 2, kind: input, shape index: {}, may-alias: {0,1,2}]   ;;  %s3797_s3 = inlined_call_operand.vmem [shape: bf16[2,64,24], index: 3, kind: input, shape index: {}]   ;;  %s3798_s4 = inlined_call_operand.vmem [shape: bf16[600,32], index: 4, kind: input, shape index: {}]   ;;  %s3799_s5 = inlined_call_operand.vmem [shape: bf16[2,64,32], index: 5, kind: output, shape index: {0}]   ;;  %s3800_s6 = inlined_call_operand.vmem [shape: f32[2,1,2,32], index: 6, kind: output, shape index: {1}]  }
   0x1   :  { %s2627_s22 = smov 0  }
   0x2 LB: > { %s29_s2 = sadd.s32 1, %s2577_s0  ;;  %p2270_p0 = scmp.ge.s32.totalorder %s2581_s22, 1  ;;  %s2581_s22 = sphi %s2627_s22, %s17_s22   ;;  %s2577_s0 = sphi %s2625_s0, %s3933_s0   ;;  %s2573_s21 = sphi %s2623_s21, %s3932_s21  }
   0x3   : > { %p31_p1 = scmp.ge.s32.totalorder %s29_s2, 2  ;;  %p317_p2 = scmp.lt.s32.totalorder %s2581_s22, 3 }
   0x5   : > { %s3935_s2 = smov (%p31_p1, %s29_s2), 0  ;;  %p318_p3 = pnand %p2270_p0, %p317_p2 }
   0x7   : > { %321 = sbr.rel (%p318_p3) target bundleno = 534 (0x216), region = 40 }
   0xe   : > { %p412_p4 = scmp.lt.s32.totalorder %s2573_s21, 1  ;;  %v516_v0 = vlaneseq  ;;  %v2520_v1 = vld [vmem:[%s3798_s4 + $0x40] sm:$0xff]   ;;  %vm489_vm0 = vcmask 1041408   ;;  %v2522_v4 = vld [vmem:[%s3798_s4 + $0x48] sm:$0xff]   ;;  %vm767_vm1 = vcmask 1046528   ;;  %v3802_v7 = vmov 0.0  }
   0xf   : > { %2364 = vmatprep.subr.bf16.mxu0 %v2520_v1  ;;  %v2521_v3 = vld [vmem:[%s3798_s4] sm:$0xff]   ;;  %v2662_v8 = vrot.slane %v3802_v7, 3  ;;  %v2523_v9 = vld [vmem:[%s3798_s4 + $0x8] sm:$0xff]   ;;  %v2584_v12 = vmov 0.0|0.0   ;;  %v2683_v14 = vrot.slane %v3802_v7, 4  ;;  %vm3832_vm3 = vcmask 1044480  }
  0x10   : > { %s3937_s21 = smov (!%p412_p4, %s2573_s21), 1  ;;  %v2646_v2 = vshrl.u32 %v516_v0, 7  ;;  %2365 = vmatpush3.bf16.msra.mxu0 %v2521_v3  ;;  %v2680_v13 = vrot.slane %v2584_v12, 1  ;;  %v2524_v47 = vld [vmem:[%s3798_s4 + $0x50] sm:$0xff]   ;;  %s2585_s18 = smov 32   ;;  %v2526_v63 = vld [vmem:[%s3798_s4 + $0x58] sm:$0xff]  }
  0x11   : > { %s2655_s29 = sshll.u32 %s3937_s21, 5  ;;  %3851 = vst [vmem:[#allocation2_spill] sm:$0xff] %v2662_v8  ;;  %3852 = vst [vmem:[#allocation3_spill] sm:$0xff] %v2683_v14  ;;  %2366 = vmatprep.subr.bf16.mxu0 %v2522_v4  ;;  %v2525_v55 = vld [vmem:[%s3798_s4 + $0x10] sm:$0xff]   ;;  %vm3841_vm7 = vcmask 1043456   ;;  %s2586_s27 = smov 96  }
  0x12   : > { %v518_v5 = vadd.s32 8, %v2646_v2  ;;  %v2659_v6 = vand.u32 7, %v2646_v2  ;;  %s2671_s10 = scalar_lea.vmem %s3795_s1, %s2655_s29  ;;  %v2674_v10 = vadd.s32 16, %v2646_v2  ;;  %v2677_v11 = vadd.s32 24, %v2646_v2  ;;  %s2700_s13 = scalar_lea.vmem %s3797_s3, %s2655_s29 }
  0x13   : > { %v2346_v15 = vld [vmem:[%s2671_s10] sm:$0xff]   ;;  %v2361_v16 = vld [vmem:[%s2671_s10 + $0x8] sm:$0xff]   ;;  %v2362_v17 = vld [vmem:[%s2671_s10 + $0x10] sm:$0xff]   ;;  %s2587_s28 = smov 64   ;;  %s3742_s12 = scalar_lea.vmem %s3799_s5, %s2655_s29 }
  0x14   : > { %v2688_v18 = vand.u32 7, %v518_v5  ;;  %v2691_v19 = vadd.s32 4294967295, %v2659_v6  ;;  %v2694_v20 = vadd.s32 1, %v2659_v6  ;;  %v2347_v21 = vunpack.c.l.bf16 %v2346_v15  ;;  %2367 = vmatpush3.bf16.msra.mxu0 %v2523_v9  ;;  %s2277_s29 = sshll.u32 %s3937_s21, 1 }
  0x15   : > { %v2348_v22 = vunpack.c.h.bf16 %v2346_v15  ;;  %v2351_v23 = vunpack.c.l.bf16 %v2361_v16  ;;  %v2352_v24 = vunpack.c.h.bf16 %v2361_v16  ;;  %v2355_v25 = vunpack.c.l.bf16 %v2362_v17  ;;  %2368 = vmatprep.subr.bf16.mxu0 %v2524_v47 }
  0x16   : > { %3853 = vst [vmem:[#allocation4_spill] sm:$0xff] %v2694_v20  ;;  %v2356_v26 = vunpack.c.h.bf16 %v2362_v17  ;;  %v2703_v27 = vadd.s32 4294967295, %v2688_v18  ;;  %vm629_vm2 = vcmp.ge.s32.totalorder %v2691_v19, 0  ;;  %v490_v28 = vrot.slane %v2347_v21, 6  ;;  %v2527_v17 = vld [vmem:[%s3798_s4 + $0x18] sm:$0xff]  }
  0x17   : > { %v491_v29 = vrot.slane %v2348_v22, 6  ;;  %v493_v30 = vrot.slane %v2351_v23, 6  ;;  %v495_v31 = vrot.slane %v2352_v24, 6  ;;  %v2706_v32 = vrot.slane %v2355_v25, 6 }
  0x18   : > { %v2708_v33 = vrot.slane %v2356_v26, 6  ;;  %vm630_vm4 = vcmp.ge.s32.totalorder %v2703_v27, 0  ;;  %v2712_v34 = vadd.s32 1, %v2688_v18  ;;  %v2724_v38 = vsel %vm489_vm0, 0.0, %v490_v28  ;;  %2369 = vmatpush3.bf16.msra.mxu0 %v2525_v55  ;;  %v2531_v55 = vld [vmem:[%s3798_s4 + $0xc0] sm:$0xff]  }
  0x19   : > { %v2715_v35 = vsel %vm489_vm0, %v490_v28, %v491_v29  ;;  %v2718_v36 = vsel %vm489_vm0, %v491_v29, %v493_v30  ;;  %v2721_v37 = vsel %vm489_vm0, %v493_v30, %v495_v31  ;;  %v805_v41 = vpack.c.bf16 %v2724_v38, %v3802_v7  ;;  %2370 = vmatprep.subr.bf16.mxu0 %v2526_v63 }
  0x1a   : > { %3854 = vst [vmem:[#allocation5_spill] sm:$0xff] %v2712_v34  ;;  %v880_v39 = vpack.c.bf16 %v2715_v35, %v2724_v38  ;;  %v2730_v40 = vpack.c.bf16 %v2721_v37, %v2718_v36  ;;  %v806_v42 = vpack.c.bf16 %v2718_v36, %v2715_v35  ;;  %v2738_v43 = vsel %vm489_vm0, %v495_v31, %v2706_v32 }
  0x1b   : > { %v771_v44 = vrot.slane %v2715_v35, 1  ;;  %v773_v45 = vrot.slane %v2718_v36, 1  ;;  %v775_v46 = vrot.slane %v2721_v37, 1  ;;  %v1079_v50 = vrot.slane %v805_v41, 1  ;;  %v2530_v41 = vld [vmem:[%s3798_s4 + $0x20] sm:$0xff]   ;;  %2404 = vmatprep.subr.bf16.mxu1 %v2531_v55 }
  0x1c   : > { %3855 = vst [vmem:[#allocation6_spill] sm:$0xff] %v2730_v40  ;;  %v2746_v48 = vrot.slane %v880_v39, 1  ;;  %v3806_v49 = vrot.slane %v2730_v40, 1  ;;  %v1080_v51 = vrot.slane %v806_v42, 1  ;;  %v807_v52 = vpack.c.bf16 %v2738_v43, %v2721_v37  ;;  %2371 = vmatpush3.bf16.msra.mxu0 %v2527_v17 }
  0x1d   : > { %v2752_v53 = vsel %vm767_vm1, %v771_v44, %v773_v45  ;;  %v2757_v54 = vsel %vm767_vm1, %v773_v45, %v775_v46  ;;  %vm3812_vm5 = vcmp.lt.s32.totalorder %v2694_v20, 8  ;;  %vm3808_vm6 = vcmp.lt.s32.totalorder %v2712_v34, 8 }
  0x1e   : > { %v2767_v56 = vsel %vm767_vm1, %v2746_v48, %v3806_v49  ;;  %v1081_v57 = vsel %vm767_vm1, %v1079_v50, %v1080_v51  ;;  %v902_v58 = vsel %vm629_vm2, %v2752_v53, 0.0  ;;  %v903_v59 = vsel %vm630_vm4, %v2757_v54, 0.0 }
  0x1f   : > { %3856 = vst [vmem:[#allocation7_spill] sm:$0xff] %v2767_v56  ;;  %1207 = vrot.lane.b32.xlu1 %v2767_v56, %s2585_s18  ;;  %1088 = vrot.lane.b32.xlu0 %v1081_v57, %s2585_s18  ;;  %v2779_v60 = vrot.slane %v807_v52, 1  ;;  %v910_v61 = vpack.c.bf16 %v903_v59, %v902_v58  ;;  %v828_v62 = vrot.slane %v2724_v38, 3  ;;  %v830_v0 = vrot.slane %v2715_v35, 3 }
  0x20   : > { %v832_v1 = vrot.slane %v2718_v36, 3  ;;  %v3801_v3 = vrot.slane %v2724_v38, 1  ;;  %v869_v4 = vsel %vm630_vm4, %v2752_v53, 0.0  ;;  %v2797_v15 = vand.u32 7, %v2674_v10 }
  0x21   : > { %v1083_v5 = vsel %vm767_vm1, %v1080_v51, %v2779_v60  ;;  %v829_v9 = vsel %vm3832_vm3, %v2662_v8, %v828_v62  ;;  %v2800_v16 = vand.u32 7, %v2677_v11  ;;  %v831_v21 = vsel %vm3832_vm3, %v828_v62, %v830_v0  ;;  %v2529_v11 = vld [vmem:[%s3798_s4 + $0x60] sm:$0xff]   ;;  %v2552_v8 = vld [vmem:[%s3798_s4 + $0xb8] sm:$0xff]  }
  0x22   : > { %v852_v22 = vsel %vm3812_vm5, %v829_v9, 0.0  ;;  %v2809_v23 = vsel %vm3832_vm3, %v830_v0, %v832_v1  ;;  %v772_v10 = vsel %vm767_vm1, %v3801_v3, %v771_v44  ;;  %v853_v24 = vsel %vm3808_vm6, %v831_v21, 0.0  ;;  %2372 = vmatprep.subr.bf16.mxu0 %v2529_v11  ;;  %v2543_v3 = vld [vmem:[%s3798_s4 + $0xd8] sm:$0xff]  }
  0x23   : > { %3857 = vst [vmem:[#allocation8_spill] sm:$0xff] %v2809_v23  ;;  %1164 = vrot.lane.b32.xlu0 %v1083_v5, %s2586_s27  ;;  %1150 = vrot.lane.b32.xlu1 %v910_v61, %s2587_s28  ;;  %v888_v25 = vsel %vm3812_vm5, %v831_v21, 0.0  ;;  %v889_v26 = vsel %vm3808_vm6, %v2809_v23, 0.0  ;;  %v868_v28 = vsel %vm629_vm2, %v772_v10, 0.0  ;;  %v860_v29 = vpack.c.bf16 %v853_v24, %v852_v22  ;;  %v2534_v24 = vld [vmem:[%s3798_s4 + $0x28] sm:$0xff]  }
  0x24   : > { %v896_v30 = vpack.c.bf16 %v889_v26, %v888_v25  ;;  %v876_v31 = vpack.c.bf16 %v869_v4, %v868_v28  ;;  %v2830_v39 = vsel %vm630_vm4, %v772_v10, 0.0  ;;  %v2836_v42 = vadd.s32 1, %v2797_v15  ;;  %2373 = vmatpush3.bf16.msra.mxu0 %v2530_v41  ;;  %v2532_v4 = vld [vmem:[%s3798_s4 + $0x80] sm:$0xff]  }
  0x25   : > { %v2839_v44 = vadd.s32 1, %v2800_v16  ;;  %v834_v45 = vrot.slane %v2721_v37, 3  ;;  %v836_v47 = vrot.slane %v2738_v43, 3  ;;  %v2846_v27 = vsel %vm489_vm0, %v2706_v32, %v2708_v33  ;;  %2405 = vmatpush3.bf16.msra.mxu1 %v2532_v4 }
  0x26   : > { %3859 = vst [vmem:[#allocation10_spill] sm:$0xff] %v2846_v27  ;;  %v2849_v50 = vadd.s32 4294967295, %v2797_v15  ;;  %v2852_v51 = vadd.s32 4294967295, %v2800_v16  ;;  %v777_v52 = vrot.slane %v2738_v43, 1  ;;  %vm3814_vm8 = vcmp.lt.s32.totalorder %v2836_v42, 8 }
  0x27   : > { %3858 = vst [vmem:[#allocation9_spill] sm:$0xff] %v2839_v44  ;;  %1090 = vrot.lane.b32.xlu0 %v1083_v5, %s2585_s18  ;;  %1100 = vrot.lane.b32.xlu1 %v860_v29, %s2587_s28  ;;  %vm3813_vm9 = vcmp.lt.s32.totalorder %v2839_v44, 8  ;;  %v2863_v32 = vsel %vm3832_vm3, %v832_v1, %v834_v45  ;;  %v2868_v57 = vsel %vm3832_vm3, %v834_v45, %v836_v47  ;;  %v3807_v63 = vrot.slane %v2846_v27, 1  ;;  %v2363_v1 = vld [vmem:[%s2671_s10 + $0x18] sm:$0xff]   ;;  %v2533_v5 = vld [vmem:[%s3798_s4 + $0x68] sm:$0xff]   ;;  %s463_s10 = scalar_lea.vmem %s3800_s6, %s2277_s29 }
  0x28   : > { %3860 = vst [vmem:[#allocation11_spill] sm:$0xff] %v2863_v32  ;;  %v890_v58 = vsel %vm3814_vm8, %v2863_v32, 0.0  ;;  %v891_v59 = vsel %vm3813_vm9, %v2868_v57, 0.0  ;;  %vm3815_vm10 = vcmp.ge.s32.totalorder %v2849_v50, 0  ;;  %vm632_vm11 = vcmp.ge.s32.totalorder %v2852_v51, 0  ;;  %2374 = vmatprep.subr.bf16.mxu0 %v2533_v5  ;;  %v2535_v29 = vld [vmem:[%s3798_s4 + $0xc8] sm:$0xff]  }
  0x29   : > { %v897_v61 = vpack.c.bf16 %v891_v59, %v890_v58  ;;  %v2881_v62 = vsel %vm767_vm1, %v775_v46, %v777_v52  ;;  %v2885_v0 = vadd.s32 2, %v2659_v6  ;;  %v2898_v46 = vadd.s32 2, %v2688_v18  ;;  %2375 = vmatpush3.bf16.msra.mxu0 %v2534_v24  ;;  %v2536_v45 = vld [vmem:[%s3798_s4 + $0x88] sm:$0xff]   ;;  %2406 = vmatprep.subr.bf16.mxu1 %v2535_v29  ;;  %v2537_v59 = vld [vmem:[%s3798_s4 + $0x70] sm:$0xff]  }
  0x2a   : > { %v904_v9 = vsel %vm3815_vm10, %v2881_v62, 0.0  ;;  %v975_v17 = vrot.slane %v2724_v38, 4  ;;  %v977_v21 = vrot.slane %v2715_v35, 4  ;;  %v2907_v22 = vsel %vm767_vm1, %v777_v52, %v3807_v63  ;;  %2407 = vmatpush3.bf16.msra.mxu1 %v2536_v45  ;;  %2376 = vmatprep.subr.bf16.mxu0 %v2537_v59 }
  0x2b   : > { %1138 = vrot.lane.b32.xlu0 %v896_v30, %s2585_s18  ;;  %1112 = vrot.lane.b32.xlu1 %v876_v31, %s2586_s27  ;;  %vm733_vm12 = vcmp.lt.s32.totalorder %v2885_v0, 8  ;;  %v3804_v10 = vrot.slane %v2718_v36, 4  ;;  %v2914_v11 = vsel %vm3814_vm8, %v2809_v23, 0.0  ;;  %v905_v25 = vsel %vm632_vm11, %v2907_v22, 0.0 }
  0x2c   : > { %vm734_vm13 = vcmp.lt.s32.totalorder %v2898_v46, 8  ;;  %v2924_v26 = vsel %vm3841_vm7, %v975_v17, %v977_v21  ;;  %v855_v28 = vsel %vm3813_vm9, %v2863_v32, 0.0  ;;  %v911_v30 = vpack.c.bf16 %v905_v25, %v904_v9 }
  0x2d   : > { %v2935_v31 = vsel %vm3841_vm7, %v977_v21, %v3804_v10  ;;  %v1027_v41 = vsel %vm733_vm12, %v2924_v26, 0.0  ;;  %v2359_v55 = vunpack.c.l.bf16 %v2363_v1  ;;  %v2360_v58 = vunpack.c.h.bf16 %v2363_v1  ;;  %v2538_v1 = vld [vmem:[%s3798_s4 + $0x30] sm:$0xff]   ;;  %v2545_v10 = vld [vmem:[%s3798_s4 + $0xe0] sm:$0xff]  }
  0x2e   : > { %v1028_v52 = vsel %vm734_vm13, %v2935_v31, 0.0  ;;  %v685_v5 = vadd.s32 4294967294, %v2659_v6  ;;  %v686_v9 = vadd.s32 4294967294, %v2688_v18  ;;  %v521_v21 = vadd.s32 32, %v2646_v2  ;;  %v2539_v6 = vld [vmem:[%s3798_s4 + $0xd0] sm:$0xff]   ;;  %2377 = vmatpush3.bf16.msra.mxu0 %v2538_v1 }
  0x2f   : > { %1140 = vrot.lane.b32.xlu0 %v897_v61, %s2585_s18  ;;  %1152 = vrot.lane.b32.xlu1 %v911_v30, %s2587_s28  ;;  %v1035_v4 = vpack.c.bf16 %v1028_v52, %v1027_v41  ;;  %v501_v24 = vrot.slane %v2359_v55, 6  ;;  %v2960_v25 = vsel %vm3815_vm10, %v2757_v54, 0.0  ;;  %v522_v61 = vadd.s32 40, %v2646_v2  ;;  %v2540_v30 = vld [vmem:[%s3798_s4 + $0x90] sm:$0xff]  }
  0x30   : > { %v861_v18 = vpack.c.bf16 %v855_v28, %v2914_v11  ;;  %v2967_v29 = vrot.slane %v2360_v58, 6  ;;  %vm693_vm14 = vcmp.ge.s32.totalorder %v685_v5, 0  ;;  %vm694_vm15 = vcmp.ge.s32.totalorder %v686_v9, 0  ;;  %2408 = vmatprep.subr.bf16.mxu1 %v2539_v6  ;;  %v2541_v28 = vld [vmem:[%s3798_s4 + $0x78] sm:$0xff]  }
  0x31   : > { %v2974_v41 = vsel %vm489_vm0, %v2708_v33, %v501_v24  ;;  %v2977_v45 = vsel %vm693_vm14, %v2724_v38, 0.0  ;;  %v2980_v52 = vsel %vm694_vm15, %v2715_v35, 0.0  ;;  %v2985_v11 = vsel %vm632_vm11, %v2881_v62, 0.0  ;;  %v2542_v5 = vld [vmem:[%s3798_s4 + $0x38] sm:$0xff]   ;;  %2409 = vmatpush3.bf16.msra.mxu1 %v2540_v30  ;;  %2378 = vmatprep.subr.bf16.mxu0 %v2541_v28 }
  0x32   : > { %v808_v33 = vpack.c.bf16 %v2974_v41, %v2846_v27  ;;  %v1039_v55 = vsel %vm693_vm14, %v2718_v36, 0.0  ;;  %v1040_v58 = vsel %vm694_vm15, %v2721_v37, 0.0  ;;  %v2997_v59 = vand.u32 7, %v521_v21  ;;  %2379 = vmatpush3.bf16.msra.mxu0 %v2542_v5  ;;  %2410 = vmatprep.subr.bf16.mxu1 %v2543_v3 }
  0x33   : > { %1175 = vrot.lane.b32.xlu0 %v2584_v12, %s2585_s18  ;;  %1219 = vrot.lane.b32.xlu1 %v1035_v4, %s2587_s28  ;;  %v976_v9 = vsel %vm3841_vm7, %v2683_v14, %v975_v17  ;;  %v3004_v1 = vand.u32 7, %v522_v61  ;;  %v838_v12 = vrot.slane %v2846_v27, 3  ;;  %v3805_v21 = vrot.slane %v2974_v41, 3 }
  0x34   : > { %v3007_v4 = vrot.slane %v808_v33, 1  ;;  %v3010_v6 = vadd.s32 1, %v2997_v59  ;;  %v1184_v17 = vsel %vm767_vm1, %v2680_v13, %v2746_v48  ;;  %v997_v61 = vsel %vm733_vm12, %v2683_v14, 0.0 }
  0x35   : > { %v3023_v30 = vadd.s32 1, %v3004_v1  ;;  %v1046_v33 = vpack.c.bf16 %v1040_v58, %v1039_v55  ;;  %v998_v5 = vsel %vm734_vm13, %v976_v9, 0.0  ;;  %v3035_v48 = vsel %vm489_vm0, %v501_v24, %v2967_v29  ;;  %v2544_v58 = vld [vmem:[%s3798_s4 + $0x98] sm:$0xff]  }
  0x36   : > { %3861 = vst [vmem:[#allocation12_spill] sm:$0xff] %v3010_v6  ;;  %v3029_v28 = vsel %vm767_vm1, %v2779_v60, %v3007_v4  ;;  %vm3833_vm4 = vcmp.lt.s32.totalorder %v3010_v6, 8  ;;  %v3047_v60 = vpack.c.bf16 %v2846_v27, %v2738_v43  ;;  %v3050_v55 = vadd.s32 4294967295, %v2997_v59  ;;  %2411 = vmatpush3.bf16.msra.mxu1 %v2544_v58 }
  0x37   : > { %3862 = vst [vmem:[#allocation13_spill] sm:$0xff] %v3023_v30  ;;  %1102 = vrot.lane.b32.xlu0 %v861_v18, %s2587_s28  ;;  %1166 = vrot.lane.b32.xlu1 %v3029_v28, %s2586_s27  ;;  %v3043_v18 = vsel %vm3832_vm3, %v836_v47, %v838_v12  ;;  %vm3826_vm14 = vcmp.lt.s32.totalorder %v3023_v30, 8  ;;  %v3056_v3 = vsel %vm3832_vm3, %v838_v12, %v3805_v21  ;;  %v3059_v24 = vadd.s32 4294967295, %v3004_v1 }
  0x38   : > { %3863 = vst [vmem:[#allocation14_spill] sm:$0xff] %v3047_v60  ;;  %3864 = vst [vmem:[#allocation15_spill] sm:$0xff] %v3056_v3  ;;  %v781_v47 = vrot.slane %v2974_v41, 1  ;;  %v523_v7 = vadd.s32 48, %v2646_v2  ;;  %v877_v12 = vpack.c.bf16 %v2985_v11, %v2960_v25  ;;  %v3074_v21 = vadd.s32 4294967294, %v2797_v15  ;;  %2412 = vmatprep.subr.bf16.mxu1 %v2545_v10 }
  0x39   : > { %v3077_v49 = vadd.s32 4294967294, %v2800_v16  ;;  %v1005_v9 = vpack.c.bf16 %v998_v5, %v997_v61  ;;  %v892_v63 = vsel %vm3833_vm4, %v3043_v18, 0.0  ;;  %v3087_v25 = vrot.slane %v3047_v60, 1  ;;  %v2546_v5 = vld [vmem:[%s3798_s4 + $0xa0] sm:$0xff]  }
  0x3a   : > { %vm3836_vm15 = vcmp.ge.s32.totalorder %v3050_v55, 0  ;;  %vm3835_vm6 = vcmp.ge.s32.totalorder %v3059_v24, 0  ;;  %v3865_v11 = vrot.slane %v2846_v27, 1  ;;  %v3867_v58 = vrot.slane %v3035_v48, 1  ;;  %2413 = vmatpush3.bf16.msra.mxu1 %v2546_v5  ;;  %v2549_v5 = vld [vmem:[%s3798_s4 + $0xf0] sm:$0xff]  }
  0x3b   : > { %1187 = vrot.lane.b32.xlu0 %v1184_v17, %s2587_s28  ;;  %1231 = vrot.lane.b32.xlu1 %v1046_v33, %s2586_s27  ;;  %v893_v17 = vsel %vm3826_vm14, %v3056_v3, 0.0  ;;  %v3097_v33 = vadd.s32 2, %v2797_v15  ;;  %v3108_v60 = vadd.s32 2, %v2800_v16  ;;  %v981_v34 = vrot.slane %v2721_v37, 4  ;;  %v2547_v15 = vld [vmem:[%s3798_s4 + $0xe8] sm:$0xff]  }
  0x3c   : > { %v3094_v61 = vsel %vm767_vm1, %v3865_v11, %v781_v47  ;;  %v3105_v10 = vsel %vm767_vm1, %v781_v47, %v3867_v58  ;;  %v3818_v11 = vrot.slane %v2738_v43, 4  ;;  %v898_v32 = vpack.c.bf16 %v893_v17, %v892_v63  ;;  %2414 = vmatprep.subr.bf16.mxu1 %v2547_v15  ;;  %v2548_v17 = vld [vmem:[%s3798_s4 + $0xa8] sm:$0xff]  }
  0x3d   : > { %3866 = vst [vmem:[#allocation16_spill] sm:$0xff] %v3094_v61  ;;  %vm3838_vm5 = vcmp.ge.s32.totalorder %v3074_v21, 0  ;;  %vm3837_vm9 = vcmp.ge.s32.totalorder %v3077_v49, 0  ;;  %v524_v47 = vadd.s32 56, %v2646_v2  ;;  %v3868_v16 = vrot.slane %v2730_v40, 1 }
  0x3e   : > { %v907_v63 = vsel %vm3835_vm6, %v3105_v10, 0.0  ;;  %vm735_vm8 = vcmp.lt.s32.totalorder %v3097_v33, 8  ;;  %v3870_v2 = vrot.slane %v2718_v36, 4  ;;  %vm736_vm10 = vcmp.lt.s32.totalorder %v3108_v60, 8  ;;  %2415 = vmatpush3.bf16.msra.mxu1 %v2548_v17 }
  0x3f   : > { %1114 = vrot.lane.b32.xlu0 %v877_v12, %s2586_s27  ;;  %1199 = vrot.lane.b32.xlu1 %v1005_v9, %s2586_s27  ;;  %v3124_v58 = vsel %vm767_vm1, %v3868_v16, %v3087_v25  ;;  %v906_v12 = vsel %vm3836_vm15, %v3094_v61, 0.0  ;;  %v3148_v16 = vsel %vm3841_vm7, %v981_v34, %v3818_v11  ;;  %v946_v15 = vsel %vm3838_vm5, %v2724_v38, 0.0 }
  0x40   : > { %3869 = vst [vmem:[#allocation17_spill] sm:$0xff] %v3124_v58  ;;  %v3136_v9 = vsel %vm3841_vm7, %v3870_v2, %v981_v34  ;;  %v3152_v2 = vsel %vm489_vm0, %v2967_v29, 0.0  ;;  %v947_v40 = vsel %vm3837_vm9, %v2715_v35, 0.0  ;;  %v3161_v20 = vand.u32 7, %v523_v7  ;;  %v2550_v34 = vld [vmem:[%s3798_s4 + $0xb0] sm:$0xff]   ;;  %2416 = vmatprep.subr.bf16.mxu1 %v2549_v5 }
  0x41   : > { %v912_v29 = vpack.c.bf16 %v907_v63, %v906_v12  ;;  %v842_v11 = vrot.slane %v3035_v48, 3  ;;  %v1030_v7 = vsel %vm736_vm10, %v3148_v16, 0.0  ;;  %v914_v35 = vpack.c.bf16 %v3152_v2, %v3035_v48  ;;  %v2551_v12 = vld [vmem:[%s3798_s4 + $0xf8] sm:$0xff]  }
  0x42   : > { %v3178_v17 = vadd.s32 1, %v3161_v20  ;;  %v3825_v23 = vrot.slane %v3152_v2, 3  ;;  %v952_v63 = vpack.c.bf16 %v947_v40, %v946_v15  ;;  %v856_v5 = vsel %vm3833_vm4, %v2868_v57, 0.0  ;;  %2417 = vmatpush3.bf16.msra.mxu1 %v2550_v34 }
  0x43   : > { %1142 = vrot.lane.b32.xlu0 %v898_v32, %s2585_s18  ;;  %1209 = vrot.lane.b32.xlu1 %v3124_v58, %s2585_s18  ;;  %v1029_v32 = vsel %vm735_vm8, %v3136_v9, 0.0  ;;  %v857_v40 = vsel %vm3826_vm14, %v3043_v18, 0.0  ;;  %v3877_v6 = vmov 0.0   ;;  %v1017_v0 = vpack.c.bf16 %v2980_v52, %v2977_v45 }
  0x44   : > { %vm675_vm0 = vcmp.lt.s32.totalorder %v3178_v17, 8  ;;  %v886_v14 = vsel %vm3832_vm3, %v842_v11, %v3825_v23  ;;  %v1036_v58 = vpack.c.bf16 %v1030_v7, %v1029_v32  ;;  %2418 = vmatprep.subr.bf16.mxu1 %v2551_v12  ;;  %v3206_v23 = vrot.slane %v914_v35, 1 }
  0x45   : > { %v3204_v15 = vsel %vm675_vm0, %v886_v14, 0.0  ;;  %v862_v34 = vpack.c.bf16 %v857_v40, %v856_v5  ;;  %v1042_v7 = vsel %vm3837_vm9, %v2846_v27, 0.0  ;;  %v999_v35 = vsel %vm735_vm8, %v2924_v26, 0.0 }
  0x46   : > { %3872 = vst [vmem:[#allocation19_spill] sm:$0xff] %v3204_v15  ;;  %2419 = vmatpush3.bf16.msra.mxu1 %v2552_v8  ;;  %v1161_v32 = vsel %vm767_vm1, %v3007_v4, %v3206_v23  ;;  %v872_v8 = vsel %vm3836_vm15, %v2907_v22, 0.0  ;;  %v1000_v12 = vsel %vm736_vm10, %v2935_v31, 0.0  ;;  %v3875_v40 = vrot.slane %v2974_v41, 3 }
  0x47   : > { %1092 = vrot.lane.b32.xlu0 %v3029_v28, %s2585_s18  ;;  %1154 = vrot.lane.b32.xlu1 %v912_v29, %s2587_s28  ;;  %v3200_v28 = vand.u32 7, %v524_v47  ;;  %v1041_v29 = vsel %vm3838_vm5, %v2738_v43, 0.0  ;;  %v1006_v30 = vpack.c.bf16 %v1000_v12, %v999_v35  ;;  %v809_v31 = vpack.c.bf16 %v3035_v48, %v3035_v48 }
  0x48   : > { %v1047_v5 = vpack.c.bf16 %v1042_v7, %v1041_v29  ;;  %v3244_v15 = vsel %vm3832_vm3, %v3875_v40, %v842_v11  ;;  %v865_v7 = vrot.slane %v3152_v2, 1  ;;  %v3270_v35 = vadd.s32 4294967294, %v3004_v1 }
  0x49   : > { %3871 = vst [vmem:[#allocation18_spill] sm:$0xff] %v3200_v28  ;;  %v3214_v47 = vadd.s32 1, %v3200_v28  ;;  %3876 = vst [vmem:[#allocation22_spill] sm:$0xff] %v3244_v15  ;;  %v3256_v29 = vadd.s32 4294967295, %v3200_v28  ;;  %v894_v11 = vsel %vm675_vm0, %v3244_v15, 0.0  ;;  %v3274_v12 = vadd.s32 2, %v2997_v59 }
  0x4a   : > { %3878 = vst [vmem:[#allocation23_spill] sm:$0xff] %v3270_v35  ;;  %v3277_v40 = vadd.s32 2, %v3004_v1  ;;  %vm698_vm15 = vcmp.ge.s32.totalorder %v3270_v35, 0  ;;  %v3885_v46 = vrot.slane %v2724_v38, 1 }
  0x4b   : > { %1177 = vrot.lane.b32.xlu0 %v952_v63, %s2585_s18  ;;  %1221 = vrot.lane.b32.xlu1 %v1036_v58, %s2587_s28  ;;  %3873 = vst [vmem:[#allocation20_spill] sm:$0xff] %v3214_v47  ;;  %v873_v58 = vsel %vm3835_vm6, %v3094_v61, 0.0  ;;  %v3236_v63 = vpack.c.bf16 %v3035_v48, %v2974_v41  ;;  %vm676_vm14 = vcmp.lt.s32.totalorder %v3214_v47, 8  ;;  %v3249_v61 = vrot.slane %v3877_v6, 1 }
  0x4c   : > { %v878_v26 = vpack.c.bf16 %v873_v58, %v872_v8  ;;  %v895_v8 = vsel %vm676_vm14, %v886_v14, 0.0  ;;  %v3267_v58 = vadd.s32 4294967294, %v2997_v59  ;;  %v1086_v6 = vrot.slane %v809_v31, 1 }
  0x4d   : > { %3874 = vst [vmem:[#allocation21_spill] sm:$0xff] %v3236_v63  ;;  %vm636_vm4 = vcmp.ge.s32.totalorder %v3256_v29, 0  ;;  %v3879_v14 = vrot.slane %v3035_v48, 1  ;;  %v900_v59 = vsel %vm767_vm1, %v865_v7, %v3249_v61  ;;  %v899_v1 = vpack.c.bf16 %v895_v8, %v894_v11 }
  0x4e   : > { %vm697_vm6 = vcmp.ge.s32.totalorder %v3267_v58, 0  ;;  %vm737_vm9 = vcmp.lt.s32.totalorder %v3274_v12, 8  ;;  %vm738_vm5 = vcmp.lt.s32.totalorder %v3277_v40, 8  ;;  %v3882_v31 = vrot.slane %v2738_v43, 4 }
  0x4f   : > { %1104 = vrot.lane.b32.xlu0 %v862_v34, %s2587_s28  ;;  %1168 = vrot.lane.b32.xlu1 %v1161_v32, %s2586_s27  ;;  %v3253_v32 = vadd.s32 4294967295, %v3161_v20  ;;  %v985_v34 = vrot.slane %v2846_v27, 4  ;;  %v866_v44 = vsel %vm767_vm1, %v3879_v14, %v865_v7  ;;  %v3883_v7 = vrot.slane %v2974_v41, 4 }
  0x50   : > { %v1087_v8 = vsel %vm767_vm1, %v3007_v4, %v1086_v6  ;;  %v909_v14 = vsel %vm636_vm4, %v900_v59, 0.0  ;;  %v858_v4 = vsel %vm675_vm0, %v3056_v3, 0.0  ;;  %v955_v6 = vpack.c.bf16 %v2974_v41, %v2974_v41 }
  0x51   : > { %vm635_vm3 = vcmp.ge.s32.totalorder %v3253_v32, 0  ;;  %v3308_v11 = vsel %vm3841_vm7, %v985_v34, %v3883_v7  ;;  %v1163_v27 = vsel %vm767_vm1, %v3206_v23, %v2680_v13  ;;  %v1054_v13 = vsel %vm734_vm13, %v3148_v16, 0.0 }
  0x52   : > { %v1032_v7 = vsel %vm738_vm5, %v3308_v11, 0.0  ;;  %v875_v33 = vsel %vm636_vm4, %v866_v44, 0.0  ;;  %v1001_v60 = vsel %vm737_vm9, %v3136_v9, 0.0  ;;  %vm3892_vm13 = vcmp.ge.s32.totalorder %v3050_v55, 0 }
  0x53   : > { %1189 = vrot.lane.b32.xlu0 %v2767_v56, %s2587_s28  ;;  %1233 = vrot.lane.b32.xlu1 %v1047_v5, %s2586_s27  ;;  %v3880_v5 = vrot.slane %v3236_v63, 1  ;;  %v859_v63 = vsel %vm676_vm14, %v3244_v15, 0.0  ;;  %v1185_v15 = vrot.slane %v955_v6, 1  ;;  %v874_v6 = vsel %vm635_vm3, %v3105_v10, 0.0 }
  0x54   : > { %v863_v3 = vpack.c.bf16 %v859_v63, %v858_v4  ;;  %v770_v63 = vsel %vm767_vm1, %v3249_v61, %v3885_v46  ;;  %vm3893_vm0 = vcmp.ge.s32.totalorder %v3059_v24, 0  ;;  %v3495_v58 = vsel %vm636_vm4, %v3105_v10, 0.0 }
  0x55   : > { %v3293_v56 = vsel %vm767_vm1, %v3087_v25, %v3880_v5  ;;  %v3317_v5 = vadd.s32 4294967294, %v3200_v28  ;;  %v1044_v28 = vsel %vm698_vm15, %v3035_v48, 0.0  ;;  %v3408_v38 = vsel %vm629_vm2, %v770_v63, 0.0 }
  0x56   : > { %3881 = vst [vmem:[#allocation24_spill] sm:$0xff] %v3293_v56  ;;  %v801_v51 = vpack.c.bf16 %v2830_v39, %v3408_v38  ;;  %vm3888_vm2 = vcmask 1043456   ;;  %v2555_v39 = vld [vmem:[%s3798_s4 + $0x110] sm:$0xff]  }
  0x57   : > { %1116 = vrot.lane.b32.xlu0 %v878_v26, %s2586_s27  ;;  %1201 = vrot.lane.b32.xlu1 %v1006_v30, %s2586_s27  ;;  %v3303_v26 = vsel %vm3841_vm7, %v3882_v31, %v985_v34  ;;  %v908_v30 = vsel %vm635_vm3, %v866_v44, 0.0  ;;  %3884 = vst [vmem:[#allocation25_spill] sm:$0xff] %v3317_v5  ;;  %v948_v31 = vsel %vm697_vm6, %v2718_v36, 0.0  ;;  %v949_v34 = vsel %vm698_vm15, %v2721_v37, 0.0 }
  0x58   : > { %v1031_v59 = vsel %vm737_vm9, %v3303_v26, 0.0  ;;  %vm700_vm7 = vcmp.ge.s32.totalorder %v3317_v5, 0  ;;  %v913_v17 = vpack.c.bf16 %v909_v14, %v908_v30  ;;  %v953_v30 = vpack.c.bf16 %v949_v34, %v948_v31 }
  0x59   : > { %v3354_v47 = vsel %vm700_vm7, %v3035_v48, 0.0  ;;  %v1037_v14 = vpack.c.bf16 %v1032_v7, %v1031_v59  ;;  %v1053_v5 = vsel %vm733_vm12, %v3136_v9, 0.0  ;;  %v3374_v31 = vsel %vm767_vm1, %v3087_v25, %v1185_v15  ;;  %vm3891_vm12 = vmmov %vm3888_vm2 }
  0x5a   : > { %v1055_v23 = vsel %vm735_vm8, %v3303_v26, 0.0  ;;  %v1056_v25 = vsel %vm736_vm10, %v3308_v11, 0.0  ;;  %v1023_v15 = vrot.slane %v3152_v2, 4  ;;  %vm3886_vm8 = vcmp.ge.s32.totalorder %v2849_v50, 0 }
  0x5b   : > { %1144 = vrot.lane.b32.xlu0 %v899_v1, %s2585_s18  ;;  %1211 = vrot.lane.b32.xlu1 %v3293_v56, %s2585_s18  ;;  %v3346_v1 = vsel %vm697_vm6, %v2974_v41, 0.0  ;;  %v3359_v56 = vld [vmem:[%s3798_s4 + $0x100] sm:$0xff]   ;;  %v3413_v61 = vsel %vm3886_vm8, %v2752_v53, 0.0  ;;  %v1061_v44 = vpack.c.bf16 %v1054_v13, %v1053_v5  ;;  %v1062_v9 = vpack.c.bf16 %v1056_v25, %v1055_v23  ;;  %v3904_v13 = vld [vmem:[#allocation13_spill] sm:$0xff] }
  0x5c   : > { %v1048_v35 = vpack.c.bf16 %v1044_v28, %v3346_v1  ;;  %v1021_v28 = vrot.slane %v3035_v48, 4  ;;  %2454 = vmatprep.subr.bf16.mxu0 %v3359_v56  ;;  %v3398_v48 = vsel %vm632_vm11, %v2757_v54, 0.0  ;;  %2474 = vmatprep.subr.bf16.mxu1 %v3359_v56  ;;  %v1002_v54 = vsel %vm738_vm5, %v3148_v16, 0.0  ;;  %v3901_v1 = vld [vmem:[#allocation12_spill] sm:$0xff] }
  0x5d   : > { %v802_v19 = vpack.c.bf16 %v3398_v48, %v3413_v61  ;;  %v3887_v50 = vrot.slane %v2974_v41, 4  ;;  %vm3889_vm10 = vcmp.ge.s32.totalorder %v3074_v21, 0  ;;  %vm3890_vm11 = vcmp.ge.s32.totalorder %v3077_v49, 0  ;;  %v3895_v21 = vld [vmem:[#allocation9_spill] sm:$0xff] }
  0x5e   : > { %v3437_v16 = vsel %vm3890_vm11, %v2721_v37, 0.0  ;;  %v3442_v5 = vsel %vm3891_vm12, %v1021_v28, %v1023_v15  ;;  %v3445_v34 = vadd.s32 4294967294, %v3161_v20  ;;  %v3457_v37 = vsel %vm3893_vm0, %v2907_v22, 0.0 }
  0x5f   : > { %1094 = vrot.lane.b32.xlu0 %v1087_v8, %s2585_s18  ;;  %1156 = vrot.lane.b32.xlu1 %v913_v17, %s2587_s28  ;;  %v3427_v53 = vsel %vm3888_vm2, %v3887_v50, %v1021_v28  ;;  %v3432_v8 = vsel %vm3889_vm10, %v2718_v36, 0.0  ;;  %v3452_v36 = vsel %vm3892_vm13, %v2881_v62, 0.0  ;;  %vm3894_vm8 = vcmp.lt.s32.totalorder %v2836_v42, 8  ;;  %v3900_v17 = vld [vmem:[#allocation15_spill] sm:$0xff]  ;;  %v3906_v28 = vld [vmem:[#allocation17_spill] sm:$0xff]  ;;  %vm3917_vm10 = vmmov %vm3891_vm12 }
  0x60   : > { %v1018_v4 = vpack.c.bf16 %v3437_v16, %v3432_v8  ;;  %v3462_v49 = vsel %vm3894_vm8, %v2868_v57, 0.0  ;;  %vm3896_vm2 = vcmp.lt.s32.totalorder %v3895_v21, 8  ;;  %v3472_v62 = vsel %vm697_vm6, %v2738_v43, 0.0  ;;  %v3897_v57 = vld [vmem:[#allocation10_spill] sm:$0xff]  ;;  %vm3926_vm8 = vmmov %vm3917_vm10 }
  0x61   : > { %v3467_v59 = vsel %vm3896_vm2, %v3043_v18, 0.0  ;;  %v803_v22 = vpack.c.bf16 %v3457_v37, %v3452_v36  ;;  %v3482_v24 = vsel %vm698_vm15, %v3897_v57, 0.0  ;;  %v3899_v18 = vld [vmem:[#allocation16_spill] sm:$0xff]  ;;  %vm3902_vm6 = vcmp.lt.s32.totalorder %v3901_v1, 8  ;;  %vm3927_vm2 = vmmov %vm3926_vm8 }
  0x62   : > { %v927_v42 = vpack.c.bf16 %v3467_v59, %v3462_v49  ;;  %v3487_v7 = vsel %vm635_vm3, %v3899_v18, 0.0  ;;  %vm3905_vm15 = vcmp.lt.s32.totalorder %v3904_v13, 8  ;;  %v1058_v29 = vsel %vm738_vm5, %v3442_v5, 0.0 }
  0x63   : > { %1179 = vrot.lane.b32.xlu0 %v953_v30, %s2585_s18  ;;  %1223 = vrot.lane.b32.xlu1 %v1037_v14, %s2587_s28  ;;  %v3500_v30 = vsel %vm3902_vm6, %v3900_v17, 0.0  ;;  %v3903_v14 = vld [vmem:[#allocation22_spill] sm:$0xff]  ;;  %v804_v10 = vpack.c.bf16 %v3495_v58, %v3487_v7  ;;  %v879_v25 = vpack.c.bf16 %v875_v33, %v874_v6  ;;  %v1007_v12 = vpack.c.bf16 %v1002_v54, %v1001_v60  ;;  %v2518_v33 = vld [vmem:[%s2700_s13 + $0x8] sm:$0xff]   ;;  %vm3929_vm6 = vmmov %vm3927_vm2 }
  0x64   : > { %v3505_v32 = vsel %vm3905_vm15, %v3903_v14, 0.0  ;;  %vm699_vm3 = vcmp.ge.s32.totalorder %v3445_v34, 0  ;;  %v1375_v40 = vrot.slane %v1061_v44, 7  ;;  %v1376_v63 = vrot.slane %v1062_v9, 7  ;;  %v2517_v6 = vld [vmem:[%s2700_s13] sm:$0xff]   ;;  %v3911_v17 = vld [vmem:[#allocation19_spill] sm:$0xff] }
  0x65   : > { %v928_v23 = vpack.c.bf16 %v3505_v32, %v3500_v30  ;;  %v3524_v50 = vsel %vm699_vm3, %v2974_v41, 0.0  ;;  %vm1374_vm5 = vcmask 1040384   ;;  %v884_v60 = vpack.c.bf16 %v3152_v2, %v3152_v2  ;;  %v3907_v54 = vld [vmem:[#allocation2_spill] sm:$0xff] }
  0x66   : > { %v1020_v21 = vpack.c.bf16 %v3354_v47, %v3524_v50  ;;  %v3908_v44 = vrot.slane %v3152_v2, 3  ;;  %v1377_v9 = vsel %vm1374_vm5, %v1375_v40, %v1376_v63  ;;  %v1412_v13 = vrot.slane %v2517_v6, 7 }
  0x67   : > { %1106 = vrot.lane.b32.xlu0 %v863_v3, %s2587_s28  ;;  %1170 = vrot.lane.b32.xlu1 %v1163_v27, %s2586_s27  ;;  %v1019_v3 = vpack.c.bf16 %v3482_v24, %v3472_v62  ;;  %v1057_v27 = vsel %vm737_vm9, %v3427_v53, 0.0  ;;  %vm3909_vm9 = vcmask 1044480   ;;  %v950_v6 = vsel %vm699_vm3, %v2738_v43, 0.0 }
  0x68   : > { %v1063_v46 = vpack.c.bf16 %v1058_v29, %v1057_v27  ;;  %v916_v41 = vsel %vm3909_vm9, %v3908_v44, %v3907_v54  ;;  %v1413_v27 = vrot.slane %v2518_v33, 7  ;;  %v1132_v29 = vrot.slane %v884_v60, 1  ;;  %v3916_v60 = vld [vmem:[#allocation3_spill] sm:$0xff] }
  0x69   : > { %v3541_v18 = vsel %vm676_vm14, %v916_v41, 0.0  ;;  %v3913_v41 = vld [vmem:[#allocation21_spill] sm:$0xff]  ;;  %v951_v33 = vsel %vm700_vm7, %v3897_v57, 0.0  ;;  %v1051_v55 = vsel %vm3917_vm10, %v1023_v15, %v3916_v60  ;;  %vm1239_vm7 = vcmask 261120  }
  0x6a   : > { %v929_v1 = vpack.c.bf16 %v3541_v18, %v3911_v17  ;;  %v1414_v44 = vsel %vm1374_vm5, %v1412_v13, %v1413_v27  ;;  %vm1252_vm11 = vcmask 523264   ;;  %vm1261_vm12 = vcmask 785408  }
  0x6b   : > { %1191 = vrot.lane.b32.xlu0 %v3906_v28, %s2587_s28  ;;  %1235 = vrot.lane.b32.xlu1 %v1048_v35, %s2586_s27  ;;  %v1378_v35 = vrot.slane %v1063_v46, 7  ;;  %v3912_v46 = vld [vmem:[#allocation18_spill] sm:$0xff]  ;;  %vm1768_vm15 = vcmask 719872  }
  0x6c   : > { %v724_v54 = vadd.s32 2, %v3912_v46 }
  0x6d   : > { %v1379_v14 = vsel %vm1374_vm5, %v1376_v63, %v1378_v35 }
  0x6e   : > { %vm740_vm14 = vcmp.lt.s32.totalorder %v724_v54, 8 }
  0x6f   : > { %1118 = vrot.lane.b32.xlu0 %v879_v25, %s2586_s27  ;;  %1203 = vrot.lane.b32.xlu1 %v1007_v12, %s2586_s27  ;;  %v2519_v25 = vld [vmem:[%s2700_s13 + $0x10] sm:$0xff]   ;;  %v723_v12 = vadd.s32 2, %v3161_v20  ;;  %v1034_v57 = vsel %vm740_vm14, %v3442_v5, 0.0  ;;  %v1060_v15 = vsel %vm740_vm14, %v3916_v60, 0.0  ;;  %v1004_v5 = vsel %vm740_vm14, %v3308_v11, 0.0 }
  0x70   : > { %v1415_v63 = vrot.slane %v2519_v25, 7 }
  0x71   : > { %vm739_vm4 = vcmp.lt.s32.totalorder %v723_v12, 8 }
  0x72   : > { %v1033_v43 = vsel %vm739_vm4, %v3427_v53, 0.0  ;;  %v1003_v53 = vsel %vm739_vm4, %v3303_v26, 0.0 }
  0x73   : > { %1382 = vrot.lane.b32.xlu0 %v1375_v40, %s2585_s18  ;;  %1384 = vrot.lane.b32.xlu1 %v1377_v9, %s2585_s18  ;;  %v3914_v40 = vrot.slane %v3913_v41, 1  ;;  %v1038_v25 = vpack.c.bf16 %v1034_v57, %v1033_v43  ;;  %v3919_v43 = vld [vmem:[#allocation7_spill] sm:$0xff] }
  0x75   : > { %v3557_v9 = vsel %vm767_vm1, %v3914_v40, %v1132_v29  ;;  %v1059_v29 = vsel %vm739_vm4, %v1051_v55, 0.0 }
  0x76   : > { %v1064_v46 = vpack.c.bf16 %v1060_v15, %v1059_v29 }
  0x77   : > { %1386 = vrot.lane.b32.xlu0 %v1379_v14, %s2585_s18  ;;  %1419 = vrot.lane.b32.xlu1 %v1412_v13, %s2587_s28  ;;  %v1416_v14 = vsel %vm1374_vm5, %v1413_v27, %v1415_v63  ;;  %v954_v13 = vpack.c.bf16 %v951_v33, %v950_v6  ;;  %v1045_v27 = vsel %vm699_vm3, %v3152_v2, 0.0  ;;  %v1008_v6 = vpack.c.bf16 %v1004_v5, %v1003_v53  ;;  %v2528_v33 = vld [vmem:[%s2700_s13 + $0x18] sm:$0xff]  }
  0x78   : > { %v1380_v20 = vrot.slane %v1064_v46, 7  ;;  %v1417_v26 = vrot.slane %v2528_v33, 7  ;;  %vm2082_vm3 = vcmask 254976  }
  0x7a   : > { %v1381_v34 = vsel %vm1374_vm5, %v1378_v35, %v1380_v20  ;;  %v1418_v11 = vsel %vm1374_vm5, %v1415_v63, %v1417_v26 }
  0x7b   : > { %1421 = vrot.lane.b32.xlu0 %v1414_v44, %s2587_s28  ;;  %1213 = vrot.lane.b32.xlu1 %v3557_v9, %s2585_s18  ;;  %v3918_v44 = vmov 0.0  }
  0x7c   : > { %v1049_v40 = vpack.c.bf16 %v3918_v44, %v1045_v27  ;;  %v2554_v27 = vld [vmem:[%s3798_s4 + $0x108] sm:$0xff]   ;;  %v1050_v47 = vpack.c.bf16 %v3918_v44, %v3152_v2 }
  0x7f   : > { %1423 = vrot.lane.b32.xlu0 %v1416_v14, %s2587_s28  ;;  %1181 = vrot.lane.b32.xlu1 %v954_v13, %s2585_s18 }
  0x83   : > { %1225 = vrot.lane.b32.xlu0 %v1038_v25, %s2587_s28  ;;  %1193 = vrot.lane.b32.xlu1 %v3374_v31, %s2587_s28 }
  0x87   : > { %1237 = vrot.lane.b32.xlu0 %v1049_v40, %s2586_s27  ;;  %1205 = vrot.lane.b32.xlu1 %v1008_v6, %s2586_s27  ;;  %v2556_v6 = vld [vmem:[%s3798_s4 + $0x118] sm:$0xff]  }
  0x8b   : > { %1388 = vrot.lane.b32.xlu0 %v1381_v34, %s2585_s18  ;;  %1390 = vrot.lane.b32.xlu1 %v1380_v20, %s2585_s18  ;;  %v3920_v34 = vld [vmem:[#allocation8_spill] sm:$0xff] }
  0x8f   : > { %1425 = vrot.lane.b32.xlu0 %v1418_v11, %s2587_s28  ;;  %1427 = vrot.lane.b32.xlu1 %v1417_v26, %s2587_s28  ;;  %v3921_v26 = vld [vmem:[#allocation4_spill] sm:$0xff] }
  0x90   : > { %vm3922_vm13 = vcmp.lt.s32.totalorder %v3921_v26, 8 }
  0x91   : > { %v1208_v31 = vpop.permute.xlu1 %1207  ;;  %v1089_v12 = vpop.permute.xlu0 %1088  ;;  %v918_v11 = vsel %vm3922_vm13, %v3920_v34, 0.0 }
  0x92   : > { %v1242_v63 = vsel %vm1239_vm7, %v801_v51, %v1089_v12  ;;  %v3923_v12 = vld [vmem:[#allocation11_spill] sm:$0xff] }
  0x95   : > { %v1165_v54 = vpop.permute.xlu0 %1164  ;;  %v1151_v60 = vpop.permute.xlu1 %1150 }
  0x99   : > { %v1091_v55 = vpop.permute.xlu0 %1090  ;;  %v1101_v14 = vpop.permute.xlu1 %1100 }
  0x9a   : > { %v1254_v15 = vsel %vm1252_vm11, %v1242_v63, %v1101_v14 }
  0x9d   : > { %v1139_v35 = vpop.permute.xlu0 %1138  ;;  %v1113_v13 = vpop.permute.xlu1 %1112 }
  0x9e   : > { %v1276_v57 = vsel %vm1239_vm7, %v3919_v43, %v1139_v35  ;;  %v1263_v5 = vsel %vm1261_vm12, %v1254_v15, %v1113_v13  ;;  %v2557_v35 = vld [vmem:[%s3798_s4 + $0x120] sm:$0xff]   ;;  %v1340_v13 = vsel %vm1239_vm7, %v1017_v0, %v1208_v31  ;;  %v2558_v0 = vld [vmem:[%s3798_s4 + $0x128] ss:$0 sps:$4 sm:$0xff]  }
  0x9f   : > { %v1287_v29 = vsel %vm1252_vm11, %v1276_v57, %v1151_v60 }
  0xa0   : > { %v1295_v25 = vsel %vm1261_vm12, %v1287_v29, %v1165_v54  ;;  %v3924_v54 = vld [vmem:[#allocation5_spill] sm:$0xff] }
  0xa1   : > { %v1141_v46 = vpop.permute.xlu0 %1140  ;;  %1816 = vmatprep.mubr.bf16.mxu0 %v1295_v25  ;;  %v1153_v53 = vpop.permute.xlu1 %1152  ;;  %vm3925_vm0 = vcmp.lt.s32.totalorder %v3924_v54, 8  ;;  %v1245_v25 = vsel %vm1239_vm7, %v802_v19, %v1091_v55  ;;  %v1782_v19 = vsel %vm3927_vm2, %v2558_v0, 0 }
  0xa2   : > { %1817 = vmatmul.mubr.bf16.vlgmr.msra.gmra.mrb[0].mxu0 %v1263_v5  ;;  %v1279_v40 = vsel %vm1239_vm7, %v3906_v28, %v1141_v46  ;;  %v919_v60 = vsel %vm3925_vm0, %v3923_v12, 0.0 }
  0xa3   : > { %2455 = vmatpush3.bf16.msra.mxu0 %v3359_v56  ;;  %v1289_v33 = vsel %vm1252_vm11, %v1279_v40, %v1153_v53  ;;  %v926_v43 = vpack.c.bf16 %v919_v60, %v918_v11 }
  0xa4   : > { %2456 = vmatprep.subr.bf16.mxu0 %v2554_v27 }
  0xa5   : > { %v1176_v38 = vpop.permute.xlu0 %1175  ;;  %v1220_v51 = vpop.permute.xlu1 %1219 }
  0xa6   : > { %v1351_v63 = vsel %vm1252_vm11, %v1340_v13, %v1220_v51  ;;  %v1308_v46 = vsel %vm1239_vm7, %v926_v43, %v1176_v38 }
  0xa7   : > { %2457 = vmatpush3.bf16.msra.mxu0 %v2554_v27 }
  0xa8   : > { %2458 = vmatprep.subr.bf16.mxu0 %v2555_v39 }
  0xa9   : > { %v1103_v20 = vpop.permute.xlu0 %1102  ;;  %v1167_v14 = vpop.permute.xlu1 %1166 }
  0xaa   : > { %v1298_v28 = vsel %vm1261_vm12, %v1289_v33, %v1167_v14  ;;  %v1256_v45 = vsel %vm1252_vm11, %v1245_v25, %v1103_v20  ;;  %v3928_v33 = vld [vmem:[#allocation24_spill] sm:$0xff] }
  0xab   : > { %2459 = vmatpush3.bf16.msra.mxu0 %v2555_v39  ;;  %1824 = vmatprep.mubr.bf16.mxu0 %v1298_v28 }
  0xac   : > { %2460 = vmatprep.subr.bf16.mxu0 %v2556_v6 }
  0xad   : > { %v1188_v57 = vpop.permute.xlu0 %1187  ;;  %v1232_v29 = vpop.permute.xlu1 %1231 }
  0xae   : > { %v1359_v15 = vsel %vm1261_vm12, %v1351_v63, %v1232_v29  ;;  %v1319_v31 = vsel %vm1252_vm11, %v1308_v46, %v1188_v57 }
  0xaf   : > { %2461 = vmatpush3.bf16.msra.mxu0 %v2556_v6  ;;  %1881 = vmatprep.mubr.bf16.mxu1 %v1359_v15 }
  0xb0   : > { %2462 = vmatprep.subr.bf16.mxu0 %v2557_v35 }
  0xb1   : > { %v1115_v52 = vpop.permute.xlu0 %1114  ;;  %v1200_v53 = vpop.permute.xlu1 %1199 }
  0xb2   : > { %v1266_v5 = vsel %vm1261_vm12, %v1256_v45, %v1115_v52  ;;  %v1327_v48 = vsel %vm1261_vm12, %v1319_v31, %v1200_v53 }
  0xb3   : > { %1825 = vmatmul.mubr.bf16.gmra.mrb[4].mxu0 %v1266_v5  ;;  %1882 = vmatmul.mubr.bf16.vlgmr.msra.gmra.mrb[0].mxu1 %v1327_v48 }
  0xb4   : > { %2463 = vmatpush3.bf16.msra.mxu0 %v2557_v35  ;;  %2480 = vmatpush3.bf16.msra.mxu1 %v3359_v56 }
  0xb5   : > { %v1143_v61 = vpop.permute.xlu0 %1142  ;;  %2486 = vmatprep.subr.msk.bf16.mxu0 %vm3926_vm8, %v2558_v0  ;;  %v1210_v55 = vpop.permute.xlu1 %1209  ;;  %2475 = vmatprep.subr.bf16.mxu1 %v2554_v27 }
  0xb6   : > { %v1282_v34 = vsel %vm1239_vm7, %v3928_v33, %v1143_v61 }
  0xb8   : > { %2465 = vmatpush3.bf16.msra.mxu0 %v1782_v19  ;;  %2481 = vmatpush3.bf16.msra.mxu1 %v2554_v27  ;;  %v1343_v27 = vsel %vm1239_vm7, %v1018_v4, %v1210_v55  ;;  %v3930_v55 = vld [vmem:[#allocation6_spill] sm:$0xff] }
  0xb9   : > { %v1093_v38 = vpop.permute.xlu0 %1092  ;;  %v1155_v51 = vpop.permute.xlu1 %1154  ;;  %2476 = vmatprep.subr.bf16.mxu1 %v2555_v39 }
  0xba   : > { %v1291_v56 = vsel %vm1252_vm11, %v1282_v34, %v1155_v51  ;;  %v1248_v14 = vsel %vm1239_vm7, %v803_v22, %v1093_v38 }
  0xbc   : > { %2482 = vmatpush3.bf16.msra.mxu1 %v2555_v39 }
  0xbd   : > { %v1178_v40 = vpop.permute.xlu0 %1177  ;;  %v1222_v20 = vpop.permute.xlu1 %1221  ;;  %2477 = vmatprep.subr.bf16.mxu1 %v2556_v6 }
  0xbe   : > { %v1353_v54 = vsel %vm1252_vm11, %v1343_v27, %v1222_v20  ;;  %v1311_v8 = vsel %vm1239_vm7, %v927_v42, %v1178_v40 }
  0xc0   : > { %2483 = vmatpush3.bf16.msra.mxu1 %v2556_v6 }
  0xc1   : > { %v1105_v26 = vpop.permute.xlu0 %1104  ;;  %v1169_v11 = vpop.permute.xlu1 %1168  ;;  %2478 = vmatprep.subr.bf16.mxu1 %v2557_v35 }
  0xc2   : > { %v1301_v12 = vsel %vm1261_vm12, %v1291_v56, %v1169_v11  ;;  %v1258_v16 = vsel %vm1252_vm11, %v1248_v14, %v1105_v26 }
  0xc3   : > { %1832 = vmatprep.mubr.bf16.mxu0 %v1301_v12 }
  0xc4   : > { %2484 = vmatpush3.bf16.msra.mxu1 %v2557_v35 }
  0xc5   : > { %v1190_v39 = vpop.permute.xlu0 %1189  ;;  %v1234_v60 = vpop.permute.xlu1 %1233  ;;  %2487 = vmatprep.subr.msk.bf16.mxu1 %vm3929_vm6, %v2558_v0 }
  0xc6   : > { %v1362_v6 = vsel %vm1261_vm12, %v1353_v54, %v1234_v60  ;;  %v1321_v28 = vsel %vm1252_vm11, %v1311_v8, %v1190_v39 }
  0xc7   : > { %1889 = vmatprep.mubr.bf16.mxu1 %v1362_v6 }
  0xc8   : > { %2485 = vmatpush3.bf16.msra.mxu1 %v1782_v19 }
  0xc9   : > { %v1117_v4 = vpop.permute.xlu0 %1116  ;;  %v1202_v35 = vpop.permute.xlu1 %1201 }
  0xca   : > { %v1269_v13 = vsel %vm1261_vm12, %v1258_v16, %v1117_v4  ;;  %v1330_v36 = vsel %vm1261_vm12, %v1321_v28, %v1202_v35 }
  0xcb   : > { %1833 = vmatmul.mubr.bf16.gmra.mrb[8].mxu0 %v1269_v13  ;;  %1890 = vmatmul.mubr.bf16.gmra.mrb[4].mxu1 %v1330_v36 }
  0xcd   : > { %v1145_v37 = vpop.permute.xlu0 %1144  ;;  %v1212_v22 = vpop.permute.xlu1 %1211 }
  0xce   : > { %v1285_v42 = vsel %vm1239_vm7, %v3557_v9, %v1145_v37  ;;  %v1346_v46 = vsel %vm1239_vm7, %v1019_v3, %v1212_v22 }
  0xd1   : > { %v1095_v43 = vpop.permute.xlu0 %1094  ;;  %v1157_v57 = vpop.permute.xlu1 %1156 }
  0xd2   : > { %v1293_v29 = vsel %vm1252_vm11, %v1285_v42, %v1157_v57  ;;  %v1251_v9 = vsel %vm1239_vm7, %v804_v10, %v1095_v43 }
  0xd5   : > { %v1180_v49 = vpop.permute.xlu0 %1179  ;;  %v1224_v59 = vpop.permute.xlu1 %1223 }
  0xd6   : > { %v1355_v52 = vsel %vm1252_vm11, %v1346_v46, %v1224_v59  ;;  %v1314_v53 = vsel %vm1239_vm7, %v928_v23, %v1180_v49  ;;  %v3931_v23 = vld [vmem:[#allocation14_spill] sm:$0xff] }
  0xd9   : > { %v1107_v63 = vpop.permute.xlu0 %1106  ;;  %v1171_v15 = vpop.permute.xlu1 %1170 }
  0xda   : > { %v1304_v25 = vsel %vm1261_vm12, %v1293_v29, %v1171_v15  ;;  %v1260_v62 = vsel %vm1252_vm11, %v1251_v9, %v1107_v63 }
  0xdb   : > { %1840 = vmatprep.mubr.bf16.mxu0 %v1304_v25 }
  0xdd   : > { %v1192_v45 = vpop.permute.xlu0 %1191  ;;  %v1236_v0 = vpop.permute.xlu1 %1235 }
  0xde   : > { %v1365_v31 = vsel %vm1261_vm12, %v1355_v52, %v1236_v0  ;;  %v1323_v3 = vsel %vm1252_vm11, %v1314_v53, %v1192_v45 }
  0xdf   : > { %1897 = vmatprep.mubr.bf16.mxu1 %v1365_v31 }
  0xe1   : > { %v1119_v24 = vpop.permute.xlu0 %1118  ;;  %v1204_v5 = vpop.permute.xlu1 %1203 }
  0xe2   : > { %v1272_v48 = vsel %vm1261_vm12, %v1260_v62, %v1119_v24  ;;  %v1333_v61 = vsel %vm1261_vm12, %v1323_v3, %v1204_v5 }
  0xe3   : > { %1841 = vmatmul.mubr.bf16.gmra.mrb[12].mxu0 %v1272_v48  ;;  %1898 = vmatmul.mubr.bf16.gmra.mrb[8].mxu1 %v1333_v61 }
  0xe5   : > { %v1383_v7 = vpop.permute.xlu0 %1382  ;;  %v1385_v58 = vpop.permute.xlu1 %1384 }
  0xe6   : > { %v1431_v30 = vsel %vm1239_vm7, %v3930_v55, %v1383_v7  ;;  %v1434_v38 = vsel %vm1239_vm7, %v3931_v23, %v1385_v58 }
  0xe9   : > { %v1387_v10 = vpop.permute.xlu0 %1386  ;;  %v1420_v19 = vpop.permute.xlu1 %1419 }
  0xea   : > { %v1445_v32 = vsel %vm1252_vm11, %v1431_v30, %v1420_v19  ;;  %v1437_v26 = vsel %vm1239_vm7, %v3913_v41, %v1387_v10 }
  0xeb   : > { %v1459_v33 = vrot.slane %v1445_v32, 1 }
  0xed   : > { %v1422_v51 = vpop.permute.xlu0 %1421  ;;  %v1214_v20 = vpop.permute.xlu1 %1213 }
  0xee   : > { %v1447_v40 = vsel %vm1252_vm11, %v1434_v38, %v1422_v51  ;;  %v1349_v41 = vsel %vm1239_vm7, %v1020_v21, %v1214_v20 }
  0xef   : > { %v1460_v34 = vrot.slane %v1447_v40, 1 }
  0xf1   : > { %v1424_v56 = vpop.permute.xlu0 %1423  ;;  %v1461_v11 = vsel %vm767_vm1, %v1459_v33, %v1460_v34  ;;  %v1182_v27 = vpop.permute.xlu1 %1181 }
  0xf2   : > { %v1449_v12 = vsel %vm1252_vm11, %v1437_v26, %v1424_v56  ;;  %2466 = vmatprep.mubr.msk.bf16.mxu0 %vm1768_vm15, %v1461_v11  ;;  %v1317_v14 = vsel %vm1239_vm7, %v929_v1, %v1182_v27 }
  0xf3   : > { %v1462_v39 = vrot.slane %v1449_v12, 1 }
  0xf5   : > { %v1463_v54 = vsel %vm767_vm1, %v1460_v34, %v1462_v39  ;;  %v1226_v60 = vpop.permute.xlu0 %1225  ;;  %v1194_v6 = vpop.permute.xlu1 %1193 }
  0xf6   : > { %2467 = vmatmul.mubr.msk.bf16.vlgmr.msra.gmra.mrb[16].mxu0 %vm1768_vm15, %v1463_v54  ;;  %v1357_v8 = vsel %vm1252_vm11, %v1349_v41, %v1226_v60  ;;  %v1325_v4 = vsel %vm1252_vm11, %v1317_v14, %v1194_v6 }
  0xf9   : > { %v1238_v16 = vpop.permute.xlu0 %1237  ;;  %v1206_v28 = vpop.permute.xlu1 %1205 }
  0xfa   : > { %v1368_v35 = vsel %vm1261_vm12, %v1357_v8, %v1238_v16  ;;  %v1336_v13 = vsel %vm1261_vm12, %v1325_v4, %v1206_v28 }
  0xfb   : > { %1905 = vmatprep.mubr.bf16.mxu1 %v1368_v35 }
  0xfc   : > { %1906 = vmatmul.mubr.bf16.gmra.mrb[12].mxu1 %v1336_v13 }
  0xfd   : > { %v1389_v50 = vpop.permute.xlu0 %1388  ;;  %v1391_v21 = vpop.permute.xlu1 %1390 }
  0xfe   : > { %v1440_v18 = vsel %vm1239_vm7, %v1050_v47, %v1389_v50  ;;  %v1443_v1 = vsel %vm1239_vm7, 0.0|0.0, %v1391_v21 }
 0x101   : > { %v1426_v17 = vpop.permute.xlu0 %1425  ;;  %v1428_v37 = vpop.permute.xlu1 %1427 }
 0x102   : > { %v1451_v36 = vsel %vm1252_vm11, %v1440_v18, %v1426_v17  ;;  %v1453_v43 = vsel %vm1252_vm11, %v1443_v1, %v1428_v37 }
 0x103   : > { %v1464_v22 = vrot.slane %v1451_v36, 1  ;;  %v1466_v57 = vrot.slane %v1453_v43, 1 }
 0x105   : > { %v1465_v49 = vsel %vm767_vm1, %v1462_v39, %v1464_v22  ;;  %v1467_v59 = vsel %vm767_vm1, %v1464_v22, %v1466_v57  ;;  %vm2011_vm1 = vcmask 257024  }
 0x106   : > { %2470 = vmatprep.mubr.msk.bf16.mxu1 %vm1768_vm15, %v1465_v49 }
 0x107   : > { %2471 = vmatmul.mubr.msk.bf16.vlgmr.msra.gmra.mrb[16].mxu1 %vm1768_vm15, %v1467_v59 }
 0x175   : > { %v2380_v2 = vpop.f32.mrb[0].mxu0 }
 0x176   : > { %v2381_v44 = vpop.f32.mrb[1].mxu0 }
 0x177   : > { %v2382_v42 = vadd.f32 %v2381_v44, %v2380_v2  ;;  %v2383_v63 = vpop.f32.mrb[2].mxu0 }
 0x178   : > { %v2384_v29 = vpop.f32.mrb[3].mxu0 }
 0x179   : > { %v2385_v15 = vadd.f32 %v2384_v29, %v2383_v63 }
 0x186   : > { %v2386_v25 = vpop.f32.mrb[4].mxu0  ;;  %v2420_v46 = vpop.f32.mrb[0].mxu1 }
 0x187   : > { %v2387_v45 = vpop.f32.mrb[5].mxu0  ;;  %v2421_v0 = vpop.f32.mrb[1].mxu1 }
 0x188   : > { %v2388_v52 = vadd.f32 %v2387_v45, %v2386_v25  ;;  %v2389_v31 = vpop.f32.mrb[6].mxu0  ;;  %v2422_v9 = vadd.f32 %v2421_v0, %v2420_v46  ;;  %v2423_v53 = vpop.f32.mrb[2].mxu1 }
 0x189   : > { %v2390_v62 = vpop.f32.mrb[7].mxu0  ;;  %v2424_v3 = vpop.f32.mrb[3].mxu1 }
 0x18a   : > { %v2391_v24 = vadd.f32 %v2390_v62, %v2389_v31  ;;  %v2425_v5 = vadd.f32 %v2424_v3, %v2423_v53  ;;  %v1884_v48 = vadd.f32 %v2422_v9, %v2382_v42 }
 0x18c   : > { %v1887_v61 = vadd.f32 %v2425_v5, %v2385_v15 }
 0x19e   : > { %v2392_v7 = vpop.f32.mrb[8].mxu0  ;;  %v2426_v58 = vpop.f32.mrb[4].mxu1 }
 0x19f   : > { %v2393_v10 = vpop.f32.mrb[9].mxu0  ;;  %v2427_v55 = vpop.f32.mrb[5].mxu1 }
 0x1a0   : > { %v2394_v19 = vadd.f32 %v2393_v10, %v2392_v7  ;;  %v2395_v30 = vpop.f32.mrb[10].mxu0  ;;  %v2428_v32 = vadd.f32 %v2427_v55, %v2426_v58  ;;  %v2429_v23 = vpop.f32.mrb[6].mxu1 }
 0x1a1   : > { %v2396_v38 = vpop.f32.mrb[11].mxu0  ;;  %v2430_v40 = vpop.f32.mrb[7].mxu1 }
 0x1a2   : > { %v2397_v51 = vadd.f32 %v2396_v38, %v2395_v30  ;;  %v2431_v20 = vadd.f32 %v2430_v40, %v2429_v23  ;;  %v1892_v33 = vadd.f32 %v2428_v32, %v2388_v52 }
 0x1a4   : > { %v1895_v34 = vadd.f32 %v2431_v20, %v2391_v24 }
 0x1b6   : > { %v2398_v26 = vpop.f32.mrb[12].mxu0  ;;  %v2432_v56 = vpop.f32.mrb[8].mxu1 }
 0x1b7   : > { %v2399_v11 = vpop.f32.mrb[13].mxu0  ;;  %v2433_v27 = vpop.f32.mrb[9].mxu1 }
 0x1b8   : > { %v2400_v12 = vadd.f32 %v2399_v11, %v2398_v26  ;;  %v2401_v39 = vpop.f32.mrb[14].mxu0  ;;  %v2434_v54 = vadd.f32 %v2433_v27, %v2432_v56  ;;  %v2435_v60 = vpop.f32.mrb[10].mxu1 }
 0x1b9   : > { %v2402_v6 = vpop.f32.mrb[15].mxu0  ;;  %v2436_v14 = vpop.f32.mrb[11].mxu1 }
 0x1ba   : > { %v2403_v41 = vadd.f32 %v2402_v6, %v2401_v39  ;;  %v2437_v8 = vadd.f32 %v2436_v14, %v2435_v60  ;;  %v1900_v16 = vadd.f32 %v2434_v54, %v2394_v19 }
 0x1bc   : > { %v1903_v4 = vadd.f32 %v2437_v8, %v2397_v51 }
 0x1c9   : > { %v2468_v28 = vpop.f32.mrb[16].mxu0 }
 0x1ca   : > { %v3736_v35 = vadd.f32 %v2468_v28, %v1892_v33  ;;  %v1948_v13 = vpop.f32.mrb[17].mxu0 }
 0x1cb   : > { %v1949_v47 = vadd.f32 %v1948_v13, %v1884_v48  ;;  %v2469_v50 = vpop.f32.mrb[18].mxu0 }
 0x1cc   : > { %v2339_v21 = vpack.c.bf16 %v3736_v35, %v3736_v35  ;;  %v1960_v18 = vadd.f32 %v2469_v50, %v1895_v34  ;;  %v1951_v17 = vpop.f32.mrb[19].mxu0  ;;  %v2023_v44 = vsel %vm1239_vm7, %v3736_v35, 0.0 }
 0x1cd   : > { %v2337_v1 = vpack.c.bf16 %v1949_v47, %v1949_v47  ;;  %v1952_v36 = vadd.f32 %v1951_v17, %v1887_v61  ;;  %v2020_v22 = vsel %vm1239_vm7, %v1949_v47, 0.0 }
 0x1ce   : > { %2014 = vst.msk [vmem:[%s3742_s12 + $0x8] sm:$0xf] %vm2011_vm1, %v2339_v21  ;;  %v2340_v37 = vpack.c.bf16 %v1960_v18, %v1960_v18  ;;  %v2025_v25 = vsel %vm1239_vm7, %v1960_v18, 0.0 }
 0x1cf   : > { %2012 = vst.msk [vmem:[%s3742_s12] sm:$0xf] %vm2011_vm1, %v2337_v1  ;;  %v2338_v43 = vpack.c.bf16 %v1952_v36, %v1952_v36  ;;  %v2021_v57 = vsel %vm1239_vm7, %v1952_v36, 0.0  ;;  %v2438_v49 = vpop.f32.mrb[12].mxu1 }
 0x1d0   : > { %2015 = vst.msk [vmem:[%s3742_s12 + $0xc] sm:$0xf] %vm2011_vm1, %v2340_v37  ;;  %v2022_v59 = vadd.f32 %v2021_v57, %v2020_v22  ;;  %v2439_v2 = vpop.f32.mrb[13].mxu1 }
 0x1d1   : > { %2013 = vst.msk [vmem:[%s3742_s12 + $0x4] sm:$0xf] %vm2011_vm1, %v2338_v43  ;;  %v2440_v42 = vadd.f32 %v2439_v2, %v2438_v49  ;;  %v2441_v63 = vpop.f32.mrb[14].mxu1 }
 0x1d2   : > { %v2024_v29 = vadd.f32 %v2023_v44, %v2022_v59  ;;  %v2442_v15 = vpop.f32.mrb[15].mxu1 }
 0x1d3   : > { %v2443_v46 = vadd.f32 %v2442_v15, %v2441_v63  ;;  %v1908_v45 = vadd.f32 %v2440_v42, %v2400_v12 }
 0x1d4   : > { %v2026_v52 = vadd.f32 %v2025_v25, %v2024_v29 }
 0x1d5   : > { %v1911_v0 = vadd.f32 %v2443_v46, %v2403_v41 }
 0x1da   : > { %v2472_v31 = vpop.f32.mrb[16].mxu1 }
 0x1db   : > { %v1973_v9 = vadd.f32 %v2472_v31, %v1908_v45  ;;  %v1964_v53 = vpop.f32.mrb[17].mxu1 }
 0x1dc   : > { %v1965_v62 = vadd.f32 %v1964_v53, %v1900_v16  ;;  %v2473_v24 = vpop.f32.mrb[18].mxu1 }
 0x1dd   : > { %v2343_v3 = vpack.c.bf16 %v1973_v9, %v1973_v9  ;;  %v1976_v5 = vadd.f32 %v2473_v24, %v1911_v0  ;;  %v1967_v48 = vpop.f32.mrb[19].mxu1  ;;  %v2031_v23 = vsel %vm1239_vm7, %v1973_v9, 0.0 }
 0x1de   : > { %v2341_v61 = vpack.c.bf16 %v1965_v62, %v1965_v62  ;;  %v2027_v7 = vsel %vm1239_vm7, %v1965_v62, 0.0  ;;  %v1968_v58 = vadd.f32 %v1967_v48, %v1903_v4 }
 0x1df   : > { %2018 = vst.msk [vmem:[%s3742_s12 + $0x18] sm:$0xf] %vm2011_vm1, %v2343_v3  ;;  %v2028_v10 = vadd.f32 %v2027_v7, %v2026_v52  ;;  %v2344_v19 = vpack.c.bf16 %v1976_v5, %v1976_v5  ;;  %v2033_v51 = vsel %vm1239_vm7, %v1976_v5, 0.0 }
 0x1e0   : > { %2016 = vst.msk [vmem:[%s3742_s12 + $0x10] sm:$0xf] %vm2011_vm1, %v2341_v61  ;;  %v2342_v55 = vpack.c.bf16 %v1968_v58, %v1968_v58  ;;  %v2029_v30 = vsel %vm1239_vm7, %v1968_v58, 0.0 }
 0x1e1   : > { %2019 = vst.msk [vmem:[%s3742_s12 + $0x1c] sm:$0xf] %vm2011_vm1, %v2344_v19  ;;  %v2030_v32 = vadd.f32 %v2029_v30, %v2028_v10 }
 0x1e2   : > { %2017 = vst.msk [vmem:[%s3742_s12 + $0x14] sm:$0xf] %vm2011_vm1, %v2342_v55 }
 0x1e3   : > { %v2032_v38 = vadd.f32 %v2031_v23, %v2030_v32 }
 0x1e5   : > { %v2034_v40 = vadd.f32 %v2033_v51, %v2032_v38 }
 0x1e7   : > { %v2035_v20 = vrot.slane %v2034_v40, 4 }
 0x1e9   : > { %v2036_v33 = vadd.f32 %v2035_v20, %v2034_v40 }
 0x1eb   : > { %v2037_v34 = vrot.slane %v2036_v33, 2 }
 0x1ed   : > { %v2038_v26 = vadd.f32 %v2037_v34, %v2036_v33 }
 0x1ef   : > { %v2039_v56 = vrot.slane %v2038_v26, 1 }
 0x1f1   : > { %v2040_v11 = vadd.f32 %v2039_v56, %v2038_v26 }
 0x1f3   : > { %v2042_v12 = vmul.f32 0.015625, %v2040_v11 }
 0x1f5   : > { %v2043_v27 = vsub.f32 %v1949_v47, %v2042_v12  ;;  %v2044_v39 = vsub.f32 %v1952_v36, %v2042_v12  ;;  %v2045_v54 = vsub.f32 %v3736_v35, %v2042_v12  ;;  %v2046_v60 = vsub.f32 %v1960_v18, %v2042_v12 }
 0x1f6   : > { %v2047_v6 = vsub.f32 %v1965_v62, %v2042_v12  ;;  %v2048_v41 = vsub.f32 %v1968_v58, %v2042_v12  ;;  %v2049_v14 = vsub.f32 %v1973_v9, %v2042_v12  ;;  %v2050_v8 = vsub.f32 %v1976_v5, %v2042_v12 }
 0x1f7   : > { %v2051_v16 = vmul.f32 %v2043_v27, %v2043_v27  ;;  %v2052_v4 = vmul.f32 %v2044_v39, %v2044_v39  ;;  %v2053_v28 = vmul.f32 %v2045_v54, %v2045_v54  ;;  %v2054_v13 = vmul.f32 %v2046_v60, %v2046_v60 }
 0x1f8   : > { %v2055_v1 = vmul.f32 %v2047_v6, %v2047_v6  ;;  %v2056_v37 = vmul.f32 %v2048_v41, %v2048_v41  ;;  %v2057_v22 = vmul.f32 %v2049_v14, %v2049_v14  ;;  %v2058_v49 = vmul.f32 %v2050_v8, %v2050_v8 }
 0x1f9   : > { %v2059_v50 = vsel %vm1239_vm7, %v2051_v16, 0.0  ;;  %v2060_v21 = vsel %vm1239_vm7, %v2052_v4, 0.0  ;;  %v2062_v47 = vsel %vm1239_vm7, %v2053_v28, 0.0  ;;  %v2064_v35 = vsel %vm1239_vm7, %v2054_v13, 0.0 }
 0x1fa   : > { %v2061_v17 = vadd.f32 %v2060_v21, %v2059_v50  ;;  %v2066_v43 = vsel %vm1239_vm7, %v2055_v1, 0.0  ;;  %v2068_v59 = vsel %vm1239_vm7, %v2056_v37, 0.0  ;;  %v2070_v44 = vsel %vm1239_vm7, %v2057_v22, 0.0 }
 0x1fb   : > { %v2072_v63 = vsel %vm1239_vm7, %v2058_v49, 0.0 }
 0x1fc   : > { %v2063_v36 = vadd.f32 %v2062_v47, %v2061_v17 }
 0x1fe   : > { %v2065_v18 = vadd.f32 %v2064_v35, %v2063_v36 }
 0x200   : > { %v2067_v57 = vadd.f32 %v2066_v43, %v2065_v18 }
 0x202   : > { %v2069_v2 = vadd.f32 %v2068_v59, %v2067_v57 }
 0x204   : > { %v2071_v42 = vadd.f32 %v2070_v44, %v2069_v2 }
 0x206   : > { %v2073_v29 = vadd.f32 %v2072_v63, %v2071_v42 }
 0x208   : > { %v2074_v15 = vrot.slane %v2073_v29, 4 }
 0x20a   : > { %v2075_v25 = vadd.f32 %v2074_v15, %v2073_v29 }
 0x20c   : > { %v2076_v46 = vrot.slane %v2075_v25, 2 }
 0x20e   : > { %v2077_v45 = vadd.f32 %v2076_v46, %v2075_v25 }
 0x210   : > { %v2078_v52 = vrot.slane %v2077_v45, 1 }
 0x212   : > { %v2079_v0 = vadd.f32 %v2078_v52, %v2077_v45 }
 0x214   : > { %v2081_v31 = vsel %vm1374_vm5, %v2040_v11, %v2079_v0 }
 0x215   : > { %2083 = vst.msk [vmem:[%s463_s10] sm:$0x3] %vm2082_vm3, %v2081_v31 }
 0x216 PF: > { %s17_s22 = sadd.s32 1, %s2581_s22   ;;  %s3932_s21 = smov %s2577_s0 }
 0x217   : > { %p14_p5 = scmp.ge.s32.totalorder %s17_s22, 4   ;;  %s3933_s0 = smov %s3935_s2 }
 0x219   :  { %16 = sbr.rel (!%p14_p5) target bundleno = 2 (0x2), region = 91 }

// kernel: combine_feature.4
= control target key start
LH: loop header
LB: loop body
LE: loop exit
PB: predicated region body
PF: predicated region fallthrough
CT: control target
= control target key end

     0   :  { %s2016_s23 = smov 0   ;;  %s2018_s24 = smov 0   ;;  %s2592_s0 = inlined_call_operand.vmem [shape: bf16[2,64,32], index: 0, kind: input, shape index: {}, may-alias: {0,1,2}]   ;;  %s2593_s1 = inlined_call_operand.vmem [shape: bf16[2,64,32], index: 1, kind: input, shape index: {}, may-alias: {0,1,2}]   ;;  %s2594_s2 = inlined_call_operand.vmem [shape: bf16[2,64,32], index: 2, kind: input, shape index: {}, may-alias: {0,1,2}]   ;;  %s2595_s3 = inlined_call_operand.vmem [shape: bf16[144,16], index: 3, kind: input, shape index: {}]   ;;  %s2596_s4 = inlined_call_operand.vmem [shape: f32[32,16], index: 4, kind: input, shape index: {}]   ;;  %s2597_s5 = inlined_call_operand.vmem [shape: f32[2,16], index: 5, kind: input, shape index: {}]   ;;  %s2598_s6 = inlined_call_operand.vmem [shape: bf16[2,64,16], index: 6, kind: output, shape index: {0}]   ;;  %s2599_s7 = inlined_call_operand.vmem [shape: f32[2,1,2,16], index: 7, kind: output, shape index: {1}]  }
   0x1   :  { %s2020_s2 = smov 0  }
   0x2 LB: > { %s30_s25 = sadd.s32 1, %s1959_s24  ;;  %p1750_p0 = scmp.ge.s32.totalorder %s1963_s2, 1  ;;  %s1963_s2 = sphi %s2020_s2, %s18_s2   ;;  %s1959_s24 = sphi %s2018_s24, %s2601_s24   ;;  %s1955_s23 = sphi %s2016_s23, %s2600_s23  }
   0x3   : > { %p32_p1 = scmp.ge.s32.totalorder %s30_s25, 2  ;;  %p325_p2 = scmp.lt.s32.totalorder %s1963_s2, 3 }
   0x5   : > { %s2603_s25 = smov (%p32_p1, %s30_s25), 0  ;;  %p326_p3 = pnand %p1750_p0, %p325_p2 }
   0x6   : > { %v501_v0 = vld [vmem:[%s2596_s4] sm:$0xff] (!%p326_p3)  ;;  %v502_v1 = vld [vmem:[%s2596_s4 + $0x8] sm:$0xff] (!%p326_p3)  ;;  %v503_v2 = vld [vmem:[%s2596_s4 + $0x10] sm:$0xff] (!%p326_p3)  ;;  %v1965_v3 = vmov (!%p326_p3), 0.0|0.0   ;;  %vm1966_vm0 = vmmov (!%p326_p3), 0   ;;  %v1967_v6 = vmov (!%p326_p3), 0.0   ;;  %v505_v39 = vlaneseq (!%p326_p3) }
   0x7   : > { %329 = sbr.rel (%p326_p3) target bundleno = 688 (0x2b0), region = 44  ;;  %1873 = vmatprep.subr.bf16.mxu0 (!%p326_p3), %v1965_v3  ;;  %v1874_v4 = vpack.c.bf16 (!%p326_p3), %v502_v1, %v501_v0  ;;  %v504_v5 = vld [vmem:[%s2596_s4 + $0x18] sm:$0xff] (!%p326_p3)  ;;  %1840 = vmatprep.mubr.msk.f32.mxu0 (!%p326_p3), %vm1966_vm0, %v1967_v6  ;;  %p413_p4 = scmp.lt.s32.totalorder (!%p326_p3), %s1955_s23, 1  ;;  %vm480_vm1 = vcmask (!%p326_p3), 1040384   ;;  %vm509_vm2 = vcmask (!%p326_p3), 261120   ;;  %v1968_v37 = vmov (!%p326_p3), 0  }
   0x8   : > { %v1877_v7 = vpack.c.bf16 (!%p326_p3), %v504_v5, %v503_v2  ;;  %1879 = vmatprep.subr.bf16.mxu1 (!%p326_p3), %v1968_v37  ;;  %v1932_v38 = vld [vmem:[%s2595_s3] sm:$0xff] (!%p326_p3)   ;;  %v506_v40 = vshrl.u32 (!%p326_p3), %v505_v39, 7  ;;  %v1933_v0 = vld [vmem:[%s2595_s3 + $0x8] sm:$0xff] (!%p326_p3)   ;;  %vm1000_vm7 = vcmask (!%p326_p3), 1045504   ;;  %s1969_s29 = smov (!%p326_p3), 48   ;;  %s1970_s30 = smov (!%p326_p3), 32  }
   0x9   : > { %1875 = vmatpush3.bf16.msra.mxu0 (!%p326_p3), %v1874_v4  ;;  %1888 = vmatpush1.bf16.msra.mxu1 (!%p326_p3), %v1932_v38  ;;  %v500_v47 = vld [vmem:[%s2597_s5] sm:$0x3] (!%p326_p3)  ;;  %s1971_s13 = smov (!%p326_p3), 96   ;;  %s1973_s17 = smov (!%p326_p3), 16  }
   0xa   : > { %1876 = vmatprep.subr.bf16.mxu0 (!%p326_p3), %v1965_v3  ;;  %1880 = vmatprep.subr.bf16.mxu1 (!%p326_p3), %v1968_v37  ;;  %v692_v41 = vadd.s32 (!%p326_p3), 8, %v506_v40  ;;  %v693_v42 = vadd.s32 (!%p326_p3), 16, %v506_v40  ;;  %v786_v43 = vand.u32 (!%p326_p3), 7, %v506_v40  ;;  %v694_v44 = vadd.s32 (!%p326_p3), 24, %v506_v40  ;;  %s1974_s20 = smov (!%p326_p3), 64   ;;  %s1975_s21 = smov (!%p326_p3), 112  }
   0xb   : > { %v507_v45 = vsub.s32 (!%p326_p3), 0, %v506_v40  ;;  %v666_v49 = vsub.s32 (!%p326_p3), 1, %v506_v40  ;;  %v695_v54 = vadd.s32 (!%p326_p3), 32, %v506_v40  ;;  %v696_v58 = vadd.s32 (!%p326_p3), 40, %v506_v40 }
   0xc   : > { %v793_v46 = vand.u32 (!%p326_p3), 7, %v692_v41  ;;  %v800_v48 = vand.u32 (!%p326_p3), 7, %v693_v42  ;;  %v706_v50 = vadd.s32 (!%p326_p3), 4294967287, %v692_v41  ;;  %v2106_v52 = vadd.s32 (!%p326_p3), 4294967295, %v786_v43 }
   0xd   : > { %1878 = vmatpush3.bf16.msra.mxu0 (!%p326_p3), %v1877_v7  ;;  %v807_v53 = vand.u32 (!%p326_p3), 7, %v694_v44  ;;  %v2108_v56 = vrot.slane (!%p326_p3), %v500_v47, %v507_v45  ;;  %v2112_v59 = vadd.s32 (!%p326_p3), 1, %v786_v43  ;;  %v2116_v61 = vrot.slane (!%p326_p3), %v500_v47, %v666_v49  ;;  %1889 = vmatpush1.bf16.msra.mxu1 (!%p326_p3), %v1933_v0  ;;  %v1936_v49 = vld [vmem:[%s2595_s3 + $0x20] sm:$0xff] (!%p326_p3)  }
   0xe   : > { %s2605_s23 = smov (!%p413_p4, %s1955_s23), 1  ;;  %1413 = vmatprep.subr.bf16.mxu0 %v1968_v37  ;;  %v2110_v57 = vadd.s32 4294967295, %v793_v46  ;;  %v2114_v60 = vadd.s32 4294967295, %v800_v48  ;;  %vm717_vm3 = vcmp.ge.s32.totalorder %v706_v50, 0  ;;  %v2118_v62 = vadd.s32 1, %v793_v46  ;;  %1881 = vmatprep.subr.bf16.mxu1 %v1968_v37 }
   0xf   : > { %s1788_s11 = sshll.u32 %s2605_s23, 5  ;;  %v697_v63 = vadd.s32 48, %v506_v40  ;;  %vm886_vm4 = vcmp.ge.s32.totalorder %v2106_v52, 0  ;;  %v2124_v2 = vadd.s32 4294967295, %v807_v53  ;;  %v814_v3 = vand.u32 7, %v695_v54 }
  0x10   : > { %s420_s14 = scalar_lea.vmem %s2593_s1, %s1788_s11  ;;  %1841 = vmatmul.mubr.f32.vlgmr.msra.gmra.mrb[0].mxu0 %v1967_v6  ;;  %v698_v4 = vadd.s32 56, %v506_v40  ;;  %vm887_vm5 = vcmp.ge.s32.totalorder %v2110_v57, 0  ;;  %vm926_vm6 = vcmp.lt.s32.totalorder %v2112_v59, 8  ;;  %vm888_vm8 = vcmp.ge.s32.totalorder %v2114_v60, 0  ;;  %s2544_s26 = scalar_lea.vmem %s2598_s6, %s1788_s11 }
  0x11   : > { %v1799_v8 = vld [vmem:[%s420_s14] sm:$0xff]   ;;  %v1814_v11 = vld [vmem:[%s420_s14 + $0x8] sm:$0xff]   ;;  %1843 = vmatprep.mubr.msk.f32.mxu0 %vm1966_vm0, %v1967_v6  ;;  %v1815_v19 = vld [vmem:[%s420_s14 + $0x10] sm:$0xff]   ;;  %1414 = vmatpush1.bf16.msra.mxu0 %v1932_v38  ;;  %vm927_vm10 = vcmp.lt.s32.totalorder %v2118_v62, 8  ;;  %vm889_vm11 = vcmp.ge.s32.totalorder %v2124_v2, 0  ;;  %s1755_s11 = sshll.u32 %s2605_s23, 1 }
  0x12   : > { %v1800_v9 = vunpack.c.l.bf16 %v1799_v8  ;;  %v1801_v10 = vunpack.c.h.bf16 %v1799_v8  ;;  %v1804_v14 = vunpack.c.l.bf16 %v1814_v11  ;;  %v1805_v18 = vunpack.c.h.bf16 %v1814_v11  ;;  %v1816_v26 = vld [vmem:[%s420_s14 + $0x18] sm:$0xff]   ;;  %1415 = vmatprep.subr.bf16.mxu0 %v1968_v37  ;;  %s1972_s14 = smov 80  }
  0x13   : > { %v1808_v22 = vunpack.c.l.bf16 %v1815_v19  ;;  %v1809_v25 = vunpack.c.h.bf16 %v1815_v19  ;;  %v1812_v29 = vunpack.c.l.bf16 %v1816_v26  ;;  %v1813_v32 = vunpack.c.h.bf16 %v1816_v26 }
  0x14   : > { %v481_v12 = vrot.slane %v1800_v9, 7  ;;  %v482_v13 = vrot.slane %v1801_v10, 7  ;;  %v484_v17 = vrot.slane %v1804_v14, 7  ;;  %v486_v21 = vrot.slane %v1805_v18, 7 }
  0x15   : > { %v488_v24 = vrot.slane %v1808_v22, 7  ;;  %v490_v28 = vrot.slane %v1809_v25, 7  ;;  %v492_v31 = vrot.slane %v1812_v29, 7  ;;  %v494_v34 = vrot.slane %v1813_v32, 7  ;;  %1416 = vmatpush1.bf16.msra.mxu0 %v1933_v0 }
  0x16   : > { %v498_v15 = vsel %vm480_vm1, 0.0, %v481_v12  ;;  %v483_v16 = vsel %vm480_vm1, %v481_v12, %v482_v13  ;;  %v485_v20 = vsel %vm480_vm1, %v482_v13, %v484_v17  ;;  %v487_v23 = vsel %vm480_vm1, %v484_v17, %v486_v21  ;;  %1417 = vmatprep.subr.bf16.mxu0 %v1968_v37  ;;  %v1934_v13 = vld [vmem:[%s2595_s3 + $0x10] sm:$0xff]  }
  0x17   : > { %1844 = vmatmul.mubr.msk.f32.gmra.mrb[2].mxu0 %vm509_vm2, %v498_v15  ;;  %v489_v27 = vsel %vm480_vm1, %v486_v21, %v488_v24  ;;  %v491_v30 = vsel %vm480_vm1, %v488_v24, %v490_v28  ;;  %v493_v33 = vsel %vm480_vm1, %v490_v28, %v492_v31  ;;  %v495_v35 = vsel %vm480_vm1, %v492_v31, %v494_v34 }
  0x18   : > { %1846 = vmatprep.mubr.msk.f32.mxu0 %vm1966_vm0, %v1967_v6  ;;  %v499_v36 = vsel %vm480_vm1, %v494_v34, 0.0  ;;  %v2129_v8 = vrot.slane %v1967_v6, 2  ;;  %v821_v9 = vand.u32 7, %v696_v58  ;;  %v700_v10 = vadd.s32 72, %v506_v40  ;;  %1890 = vmatpush1.bf16.msra.mxu1 %v1934_v13 }
  0x19   : > { %v828_v12 = vand.u32 7, %v697_v63  ;;  %v2141_v15 = vadd.s32 1, %v800_v48  ;;  %v835_v17 = vand.u32 7, %v698_v4  ;;  %v2146_v21 = vadd.s32 1, %v807_v53  ;;  %1418 = vmatpush1.bf16.msra.mxu0 %v1934_v13  ;;  %1882 = vmatprep.subr.bf16.mxu1 %v1968_v37 }
  0x1a   : > { %v2148_v22 = vadd.s32 4294967295, %v821_v9  ;;  %v2153_v24 = vadd.s32 4294967287, %v700_v10  ;;  %v2155_v25 = vadd.s32 1, %v814_v3  ;;  %v2157_v26 = vadd.s32 1, %v821_v9  ;;  %1419 = vmatprep.subr.bf16.mxu0 %v1968_v37 }
  0x1b   : > { %1847 = vmatmul.mubr.msk.f32.gmra.mrb[4].mxu0 %vm509_vm2, %v483_v16  ;;  %v2143_v16 = vadd.s32 4294967295, %v814_v3  ;;  %v2167_v29 = vadd.s32 4294967295, %v828_v12  ;;  %v2177_v34 = vadd.s32 1, %v828_v12  ;;  %vm928_vm13 = vcmp.lt.s32.totalorder %v2141_v15, 8 }
  0x1c   : > { %1849 = vmatprep.mubr.msk.f32.mxu0 %vm1966_vm0, %v1967_v6  ;;  %v2186_v41 = vadd.s32 1, %v835_v17  ;;  %vm929_vm15 = vcmp.lt.s32.totalorder %v2146_v21, 8 }
  0x1f   : > { %1850 = vmatmul.mubr.msk.f32.gmra.mrb[6].mxu0 %vm509_vm2, %v485_v20 }
  0x20   : > { %1852 = vmatprep.mubr.msk.f32.mxu0 %vm1966_vm0, %v1967_v6 }
  0x23   : > { %1853 = vmatmul.mubr.msk.f32.gmra.mrb[8].mxu0 %vm509_vm2, %v487_v23 }
  0x24   : > { %1855 = vmatprep.mubr.msk.f32.mxu0 %vm1966_vm0, %v1967_v6 }
  0x27   : > { %1856 = vmatmul.mubr.msk.f32.gmra.mrb[10].mxu0 %vm509_vm2, %v489_v27 }
  0x28   : > { %1858 = vmatprep.mubr.msk.f32.mxu0 %vm1966_vm0, %v1967_v6 }
  0x2b   : > { %1859 = vmatmul.mubr.msk.f32.gmra.mrb[12].mxu0 %vm509_vm2, %v491_v30  ;;  %v1935_v30 = vld [vmem:[%s2595_s3 + $0x18] sm:$0xff]  }
  0x2c   : > { %1861 = vmatprep.mubr.msk.f32.mxu0 %vm1966_vm0, %v1967_v6  ;;  %1420 = vmatpush1.bf16.msra.mxu0 %v1935_v30 }
  0x2d   : > { %1891 = vmatpush1.bf16.msra.mxu1 %v1935_v30  ;;  %1421 = vmatprep.subr.bf16.mxu0 %v1968_v37 }
  0x2e   : > { %1883 = vmatprep.subr.bf16.mxu1 %v1968_v37 }
  0x2f   : > { %1862 = vmatmul.mubr.msk.f32.gmra.mrb[14].mxu0 %vm509_vm2, %v493_v33 }
  0x30   : > { %1864 = vmatprep.mubr.msk.f32.mxu0 %vm1966_vm0, %v1967_v6  ;;  %1422 = vmatpush1.bf16.msra.mxu0 %v1936_v49 }
  0x31   : > { %1423 = vmatprep.subr.bf16.mxu0 %v1968_v37  ;;  %1892 = vmatpush1.bf16.msra.mxu1 %v1936_v49 }
  0x32   : > { %1884 = vmatprep.subr.bf16.mxu1 %v1968_v37 }
  0x33   : > { %1865 = vmatmul.mubr.msk.f32.gmra.mrb[16].mxu0 %vm509_vm2, %v495_v35  ;;  %v2179_v35 = vadd.s32 4294967295, %v835_v17 }
  0x34   : > { %1867 = vmatprep.mubr.msk.f32.mxu0 %vm1966_vm0, %v1967_v6 }
  0x37   : > { %1868 = vmatmul.mubr.msk.f32.gmra.mrb[18].mxu0 %vm509_vm2, %v499_v36 }
  0x38   : > { %1870 = vmatprep.mubr.msk.f32.mxu0 %vm1966_vm0, %v1967_v6  ;;  %vm1259_vm0 = vcmask 130048  }
  0x3b   : > { %1871 = vmatmul.mubr.f32.gmra.mrb[20].mxu0 %v1967_v6 }
  0xe3   : > { %v599_v51 = vpop.f32.mrb[0].mxu0 }
  0xe4   : > { %v1842_v55 = vpop.f32.mrb[1].mxu0 }
  0xea   : > { %v604_v1 = vpop.f32.mrb[2].mxu0 }
  0xeb   : > { %v605_v5 = vadd.f32 %v604_v1, %v2108_v56  ;;  %v1845_v7 = vpop.f32.mrb[3].mxu0 }
  0xed   : > { %vm654_vm9 = vcmp.gt.f32.partialorder %v605_v5, 0.0  ;;  %v669_v11 = vmul.f32 %v2116_v61, %v605_v5 }
  0xee   : > { %v609_v14 = vpop.f32.mrb[4].mxu0 }
  0xef   : > { %v680_v18 = vsel %vm654_vm9, %v605_v5, %v669_v11  ;;  %v610_v19 = vadd.f32 %v609_v14, %v2108_v56  ;;  %v1848_v20 = vpop.f32.mrb[5].mxu0  ;;  %vm890_vm9 = vcmp.ge.s32.totalorder %v2143_v16, 0 }
  0xf0   : > { %v2151_v23 = vsel %vm717_vm3, %v680_v18, 0.0  ;;  %vm1101_vm3 = vsmask.f32 7424 }
  0xf1   : > { %vm655_vm12 = vcmp.gt.f32.partialorder %v610_v19, 0.0  ;;  %v670_v27 = vmul.f32 %v2116_v61, %v610_v19  ;;  %v2165_v28 = vsel %vm887_vm5, %v2151_v23, 0.0  ;;  %v1002_v32 = vrot.slane %v2151_v23, 2 }
  0xf2   : > { %v614_v31 = vpop.f32.mrb[6].mxu0  ;;  %v2175_v33 = vpack.c.bf16 %v2151_v23, %v1967_v6  ;;  %v1038_v40 = vsel %vm886_vm4, %v2151_v23, 0.0 }
  0xf3   : > { %v681_v36 = vsel %vm655_vm12, %v610_v19, %v670_v27  ;;  %v615_v38 = vadd.f32 %v614_v31, %v2108_v56  ;;  %v1851_v39 = vpop.f32.mrb[7].mxu0  ;;  %v1003_v44 = vsel %vm1000_vm7, %v2129_v8, %v1002_v32  ;;  %vm930_vm12 = vcmp.lt.s32.totalorder %v2155_v25, 8 }
  0xf4   : > { %v1039_v42 = vsel %vm887_vm5, %v681_v36, 0.0  ;;  %v2192_v43 = vsel %vm886_vm4, %v681_v36, 0.0  ;;  %v1004_v45 = vrot.slane %v681_v36, 2  ;;  %v1026_v48 = vsel %vm926_vm6, %v1003_v44, 0.0 }
  0xf5   : > { %vm656_vm14 = vcmp.gt.f32.partialorder %v615_v38, 0.0  ;;  %v671_v46 = vmul.f32 %v2116_v61, %v615_v38  ;;  %v1046_v47 = vpack.c.bf16 %v1039_v42, %v1038_v40  ;;  %v2207_v52 = vsel %vm888_vm8, %v681_v36, 0.0  ;;  %v1938_v40 = vld [vmem:[%s2595_s3 + $0x30] sm:$0xff]  }
  0xf6   : > { %v619_v50 = vpop.f32.mrb[8].mxu0  ;;  %v1005_v51 = vsel %vm1000_vm7, %v1002_v32, %v1004_v45  ;;  %v1103_v53 = vshrl.u32 %v2175_v33, 16  ;;  %v1105_v54 = vshll.u32 %v2175_v33, 16  ;;  %v2237_v17 = vpack.c.bf16 %v681_v36, %v2151_v23  ;;  %v1937_v23 = vld [vmem:[%s2595_s3 + $0x28] sm:$0xff]  }
  0xf7   : > { %v682_v55 = vsel %vm656_vm14, %v615_v38, %v671_v46  ;;  %v620_v58 = vadd.f32 %v619_v50, %v2108_v56  ;;  %1162 = vrot.lane.b32.xlu0 %v1046_v47, %s1969_s29  ;;  %v1854_v63 = vpop.f32.mrb[9].mxu0  ;;  %v1027_v0 = vsel %vm927_vm10, %v1005_v51, 0.0  ;;  %v2218_v1 = vsel %vm926_vm6, %v1005_v51, 0.0  ;;  %1424 = vmatpush1.bf16.msra.mxu0 %v1937_v23 }
  0xf8   : > { %v1006_v3 = vrot.slane %v682_v55, 2  ;;  %v1034_v4 = vpack.c.bf16 %v1027_v0, %v1026_v48  ;;  %v1072_v5 = vsel %vm887_vm5, %v682_v55, 0.0  ;;  %v2224_v7 = vsel %vm889_vm11, %v682_v55, 0.0  ;;  %1893 = vmatpush1.bf16.msra.mxu1 %v1937_v23  ;;  %1425 = vmatprep.subr.bf16.mxu0 %v1968_v37 }
  0xf9   : > { %vm657_vm4 = vcmp.gt.f32.partialorder %v620_v58, 0.0  ;;  %v672_v9 = vmul.f32 %v2116_v61, %v620_v58  ;;  %v1079_v10 = vpack.c.bf16 %v1072_v5, %v2192_v43  ;;  %v1040_v11 = vsel %vm888_vm8, %v682_v55, 0.0  ;;  %1885 = vmatprep.subr.bf16.mxu1 %v1968_v37 }
  0xfa   : > { %v624_v57 = vpop.f32.mrb[10].mxu0  ;;  %v1007_v12 = vsel %vm1000_vm7, %v1004_v45, %v1006_v3  ;;  %v2234_v13 = vpack.c.bf16 %v682_v55, %v681_v36  ;;  %v1107_v14 = vrot.slane %v1105_v54, 1  ;;  %vm891_vm5 = vcmp.ge.s32.totalorder %v2148_v22, 0 }
  0xfb   : > { %v2239_v18 = vsel %vm657_vm4, %v620_v58, %v672_v9  ;;  %v625_v19 = vadd.f32 %v624_v57, %v2108_v56  ;;  %1150 = vrot.lane.b32.xlu0 %v1034_v4, %s1970_s30  ;;  %v1857_v20 = vpop.f32.mrb[11].mxu0  ;;  %v1089_v27 = vsel %vm926_vm6, %v1007_v12, 0.0  ;;  %v1060_v30 = vsel %vm927_vm10, %v1007_v12, 0.0  ;;  %1426 = vmatpush1.bf16.msra.mxu0 %v1938_v40 }
  0xfc   : > { %v1008_v31 = vrot.slane %v2239_v18, 2  ;;  %v1041_v32 = vsel %vm889_vm11, %v2239_v18, 0.0  ;;  %v1067_v59 = vpack.c.bf16 %v1060_v30, %v2218_v1  ;;  %v1073_v33 = vsel %vm888_vm8, %v2239_v18, 0.0  ;;  %1894 = vmatpush1.bf16.msra.mxu1 %v1938_v40  ;;  %1427 = vmatprep.subr.bf16.mxu0 %v1968_v37 }
  0xfd   : > { %vm658_vm6 = vcmp.gt.f32.partialorder %v625_v19, 0.0  ;;  %v673_v36 = vmul.f32 %v2116_v61, %v625_v19  ;;  %v1047_v38 = vpack.c.bf16 %v1041_v32, %v1040_v11  ;;  %v1108_v39 = vor.u32 %v1107_v14, %v1103_v53  ;;  %1886 = vmatprep.subr.bf16.mxu1 %v1968_v37 }
  0xfe   : > { %vm931_vm14 = vcmp.lt.s32.totalorder %v2157_v26, 8  ;;  %v629_v42 = vpop.f32.mrb[12].mxu0  ;;  %v1009_v43 = vsel %vm1000_vm7, %v1006_v3, %v1008_v31  ;;  %v1110_v44 = vshll.u32 %v2234_v13, 16  ;;  %v2269_v60 = vsel %vm928_vm13, %v1007_v12, 0.0  ;;  %v1939_v12 = vld [vmem:[%s2595_s3 + $0x38] sm:$0xff]  }
  0xff   : > { %v2272_v45 = vpack.c.bf16 %v2239_v18, %v682_v55  ;;  %v2276_v46 = vsel %vm658_vm6, %v625_v19, %v673_v36  ;;  %v630_v47 = vadd.f32 %v629_v42, %v2108_v56  ;;  %1230 = vrot.lane.b32.xlu0 %v1079_v10, %s1971_s13  ;;  %1164 = vrot.lane.b32.xlu1 %v1047_v38, %s1969_s29  ;;  %v1860_v48 = vpop.f32.mrb[13].mxu0  ;;  %v1090_v49 = vsel %vm927_vm10, %v1009_v43, 0.0 }
 0x100   : > { %v1061_v50 = vsel %vm928_vm13, %v1009_v43, 0.0  ;;  %v1097_v51 = vpack.c.bf16 %v1090_v49, %v1089_v27  ;;  %v1074_v53 = vsel %vm889_vm11, %v2276_v46, 0.0  ;;  %v2288_v54 = vrot.slane %v1110_v44, 1  ;;  %1428 = vmatpush1.bf16.msra.mxu0 %v1939_v12  ;;  %1895 = vmatpush1.bf16.msra.mxu1 %v1939_v12 }
 0x101   : > { %v1010_v55 = vrot.slane %v2276_v46, 2  ;;  %vm659_vm8 = vcmp.gt.f32.partialorder %v630_v47, 0.0  ;;  %v674_v58 = vmul.f32 %v2116_v61, %v630_v47  ;;  %v1080_v63 = vpack.c.bf16 %v1074_v53, %v1073_v33  ;;  %1429 = vmatprep.subr.bf16.mxu0 %v1968_v37  ;;  %1887 = vmatprep.subr.bf16.mxu1 %v1968_v37 }
 0x102   : > { %v2294_v62 = vsel %vm929_vm15, %v1009_v43, 0.0  ;;  %v634_v0 = vpop.f32.mrb[14].mxu0  ;;  %1774 = vmatprep.mubr.msk.bf16.mxu0 %vm1259_vm0, %v1097_v51  ;;  %v1113_v2 = vsel %vm1101_vm3, %v1108_v39, %v2288_v54  ;;  %v1042_v4 = vsel %vm890_vm9, %v2276_v46, 0.0  ;;  %v1171_v27 = vshrl.u32 %v2237_v17, 16 }
 0x103   : > { %v1011_v1 = vsel %vm1000_vm7, %v1008_v31, %v1010_v55  ;;  %v1035_v3 = vpack.c.bf16 %v2294_v62, %v2269_v60  ;;  %v2306_v5 = vsel %vm659_vm8, %v630_v47, %v674_v58  ;;  %v635_v9 = vadd.f32 %v634_v0, %v2108_v56  ;;  %1218 = vrot.lane.b32.xlu0 %v1067_v59, %s1972_s14  ;;  %v1863_v10 = vpop.f32.mrb[15].mxu0 }
 0x104   : > { %1232 = vrot.lane.b32.xlu1 %v1080_v63, %s1971_s13  ;;  %v1062_v11 = vsel %vm929_vm15, %v1011_v1, 0.0  ;;  %v1091_v57 = vsel %vm928_vm13, %v1011_v1, 0.0  ;;  %v1012_v19 = vrot.slane %v2306_v5, 2  ;;  %v1043_v20 = vsel %vm891_vm5, %v2306_v5, 0.0 }
 0x105   : > { %v1068_v14 = vpack.c.bf16 %v1062_v11, %v1061_v50  ;;  %vm660_vm10 = vcmp.gt.f32.partialorder %v635_v9, 0.0  ;;  %v675_v30 = vmul.f32 %v2116_v61, %v635_v9  ;;  %vm736_vm11 = vcmp.lt.s32.totalorder %v2153_v24, 64 }
 0x106   : > { %v1048_v15 = vpack.c.bf16 %v1043_v20, %v1042_v4  ;;  %v1173_v23 = vshll.u32 %v2237_v17, 16  ;;  %v639_v31 = vpop.f32.mrb[16].mxu0  ;;  %v1013_v32 = vsel %vm1000_vm7, %v1010_v55, %v1012_v19  ;;  %v1178_v59 = vshll.u32 %v2272_v45, 16 }
 0x107   : > { %v1030_v33 = vsel %vm930_vm12, %v1011_v1, 0.0  ;;  %v2335_v36 = vpack.c.bf16 %v2276_v46, %v2239_v18  ;;  %v2339_v17 = vsel %vm660_vm10, %v635_v9, %v675_v30  ;;  %v640_v38 = vadd.f32 %v639_v31, %v2108_v56  ;;  %1138 = vrot.lane.b32.xlu0 %v1113_v2, %s1973_s17  ;;  %v1866_v39 = vpop.f32.mrb[17].mxu0 }
 0x108   : > { %1220 = vrot.lane.b32.xlu1 %v1068_v14, %s1972_s14  ;;  %v1092_v40 = vsel %vm929_vm15, %v1013_v32, 0.0  ;;  %v1175_v42 = vrot.slane %v1173_v23, 1  ;;  %vm932_vm13 = vcmp.lt.s32.totalorder %v2177_v34, 8  ;;  %vm933_vm4 = vcmp.lt.s32.totalorder %v2186_v41, 8 }
 0x109   : > { %v1098_v43 = vpack.c.bf16 %v1092_v40, %v1091_v57  ;;  %v1180_v44 = vrot.slane %v1178_v59, 1  ;;  %v1031_v60 = vsel %vm931_vm14, %v1013_v32, 0.0  ;;  %v1114_v47 = vshrl.u32 %v2234_v13, 16  ;;  %v1940_v13 = vld [vmem:[%s2595_s3 + $0x40] sm:$0xff]  }
 0x10a   : > { %vm661_vm6 = vcmp.gt.f32.partialorder %v640_v38, 0.0  ;;  %v676_v48 = vmul.f32 %v2116_v61, %v640_v38  ;;  %v1176_v49 = vor.u32 %v1175_v42, %v1171_v27  ;;  %v1036_v50 = vpack.c.bf16 %v1031_v60, %v1030_v33  ;;  %v644_v21 = vpop.f32.mrb[18].mxu0  ;;  %1430 = vmatpush1.bf16.msra.mxu0 %v1940_v13  ;;  %1896 = vmatpush1.bf16.msra.mxu1 %v1940_v13 }
 0x10b   : > { %vm892_vm8 = vcmp.ge.s32.totalorder %v2167_v29, 0  ;;  %1775 = vmatprep.mubr.msk.bf16.mxu1 %vm1259_vm0, %v1098_v43  ;;  %v1116_v51 = vor.u32 %v1114_v47, %v2288_v54  ;;  %v1118_v53 = vshll.u32 %v2335_v36, 16  ;;  %v1052_v55 = vpack.c.bf16 %v2306_v5, %v2276_v46  ;;  %1152 = vrot.lane.b32.xlu0 %v1035_v3, %s1970_s30  ;;  %v1869_v0 = vpop.f32.mrb[19].mxu0 }
 0x10c   : > { %v1182_v58 = vshrl.u32 %v2272_v45, 16  ;;  %vm893_vm15 = vcmp.ge.s32.totalorder %v2179_v35, 0  ;;  %v2363_v63 = vsel %vm661_vm6, %v640_v38, %v676_v48  ;;  %v645_v62 = vadd.f32 %v644_v21, %v2108_v56  ;;  %1166 = vrot.lane.b32.xlu1 %v1048_v15, %s1969_s29 }
 0x10d   : > { %v1181_v54 = vsel %vm1101_vm3, %v1176_v49, %v1180_v44  ;;  %v1075_v45 = vsel %vm890_vm9, %v2306_v5, 0.0  ;;  %v1120_v2 = vrot.slane %v1118_v53, 1  ;;  %v1186_v4 = vshll.u32 %v1052_v55, 16 }
 0x10e   : > { %v1184_v1 = vor.u32 %v1182_v58, %v1180_v44  ;;  %v1076_v9 = vsel %vm891_vm5, %v2339_v17, 0.0  ;;  %vm662_vm10 = vcmp.gt.f32.partialorder %v645_v62, 0.0  ;;  %v677_v56 = vmul.f32 %v2116_v61, %v645_v62  ;;  %v649_v20 = vpop.f32.mrb[20].mxu0 }
 0x10f   : > { %v1081_v3 = vpack.c.bf16 %v1076_v9, %v1075_v45  ;;  %v1014_v10 = vrot.slane %v2339_v17, 2  ;;  %v1121_v11 = vsel %vm1101_vm3, %v1116_v51, %v1120_v2  ;;  %v1188_v57 = vrot.slane %v1186_v4, 1  ;;  %1206 = vrot.lane.b32.xlu0 %v1181_v54, %s1974_s20  ;;  %v1872_v23 = vpop.f32.mrb[21].mxu0 }
 0x110   : > { %v1063_v12 = vsel %vm930_vm12, %v1013_v32, 0.0  ;;  %v973_v14 = vpack.c.bf16 %v2339_v17, %v2306_v5  ;;  %v688_v27 = vsel %vm662_vm10, %v645_v62, %v677_v56  ;;  %1154 = vrot.lane.b32.xlu1 %v1036_v50, %s1970_s30  ;;  %v1122_v30 = vshrl.u32 %v2335_v36, 16 }
 0x111   : > { %v1015_v61 = vsel %vm1000_vm7, %v1012_v19, %v1014_v10  ;;  %v1016_v15 = vrot.slane %v2363_v63, 2  ;;  %v2391_v31 = vsel %vm736_vm11, %v688_v27, 0.0  ;;  %v1189_v32 = vsel %vm1101_vm3, %v1184_v1, %v1188_v57 }
 0x112   : > { %v1064_v59 = vsel %vm931_vm14, %v1015_v61, 0.0  ;;  %v1126_v33 = vshll.u32 %v973_v14, 16  ;;  %v1056_v38 = vrot.slane %v2391_v31, 2  ;;  %v1124_v40 = vor.u32 %v1122_v30, %v1120_v2 }
 0x113   : > { %v1069_v39 = vpack.c.bf16 %v1064_v59, %v1063_v12  ;;  %v1017_v19 = vsel %vm1000_vm7, %v1014_v10, %v1016_v15  ;;  %v1032_v42 = vsel %vm932_vm13, %v1015_v61, 0.0  ;;  %v1044_v43 = vsel %vm892_vm8, %v2339_v17, 0.0  ;;  %1140 = vrot.lane.b32.xlu0 %v1121_v11, %s1973_s17 }
 0x114   : > { %v1128_v36 = vrot.slane %v1126_v33, 1  ;;  %v1033_v24 = vsel %vm933_vm4, %v1017_v19, 0.0  ;;  %1208 = vrot.lane.b32.xlu1 %v1189_v32, %s1974_s20  ;;  %v1045_v60 = vsel %vm893_vm15, %v2363_v63, 0.0  ;;  %v1083_v47 = vpack.c.bf16 %v2391_v31, %v2363_v63 }
 0x115   : > { %v1037_v44 = vpack.c.bf16 %v1033_v24, %v1032_v42  ;;  %v1130_v48 = vshrl.u32 %v973_v14, 16  ;;  %v1049_v50 = vpack.c.bf16 %v1045_v60, %v1044_v43  ;;  %v1053_v21 = vpack.c.bf16 %v2363_v63, %v2339_v17 }
 0x116   : > { %v1129_v49 = vsel %vm1101_vm3, %v1124_v40, %v1128_v36  ;;  %v1190_v51 = vshrl.u32 %v1052_v55, 16  ;;  %v1239_v58 = vshll.u32 %v1083_v47, 16  ;;  %v1054_v13 = vpack.c.bf16 %v2391_v31, %v2391_v31 }
 0x117   : > { %v1132_v53 = vor.u32 %v1130_v48, %v1128_v36  ;;  %v974_v62 = vpack.c.bf16 %v2363_v63, %v2363_v63  ;;  %v1194_v45 = vshll.u32 %v1053_v21, 16  ;;  %v1198_v0 = vshrl.u32 %v1053_v21, 16  ;;  %1251 = vrot.lane.b32.xlu0 %v1121_v11, %s1975_s21 }
 0x118   : > { %v1192_v54 = vor.u32 %v1190_v51, %v1188_v57  ;;  %v1077_v2 = vsel %vm892_vm8, %v2363_v63, 0.0  ;;  %1234 = vrot.lane.b32.xlu1 %v1081_v3, %s1971_s13  ;;  %v1241_v55 = vrot.slane %v1239_v58, 1  ;;  %v1202_v1 = vshll.u32 %v1054_v13, 16 }
 0x119   : > { %v1134_v4 = vshll.u32 %v974_v62, 16  ;;  %v1078_v9 = vsel %vm893_vm15, %v2391_v31, 0.0  ;;  %v1196_v56 = vrot.slane %v1194_v45, 1  ;;  %v1057_v57 = vsel %vm1000_vm7, %v1016_v15, %v1056_v38 }
 0x11a   : > { %v1082_v10 = vpack.c.bf16 %v1078_v9, %v1077_v2  ;;  %v1065_v12 = vsel %vm932_vm13, %v1017_v19, 0.0  ;;  %v1242_v63 = vsel %vm1101_vm3, %v1132_v53, %v1241_v55  ;;  %v1204_v14 = vrot.slane %v1202_v1, 1 }
 0x11b   : > { %v1136_v11 = vrot.slane %v1134_v4, 1  ;;  %v1066_v3 = vsel %vm933_vm4, %v1057_v57, 0.0  ;;  %v1197_v20 = vsel %vm1101_vm3, %v1192_v54, %v1196_v56  ;;  %v1200_v27 = vor.u32 %v1198_v0, %v1196_v56  ;;  %1222 = vrot.lane.b32.xlu0 %v1069_v39, %s1972_s14 }
 0x11c   : > { %v1070_v30 = vpack.c.bf16 %v1066_v3, %v1065_v12  ;;  %v2436_v23 = vsel %vm932_vm13, %v1057_v57, 0.0  ;;  %1253 = vrot.lane.b32.xlu1 %v1129_v49, %s1975_s21  ;;  %v967_v32 = vpack.c.bf16 %v2224_v7, %v2207_v52  ;;  %v2446_v59 = vsel %vm930_vm12, %v1015_v61, 0.0 }
 0x11d   : > { %v1137_v15 = vsel %vm1101_vm3, %v1132_v53, %v1136_v11  ;;  %v1205_v31 = vsel %vm1101_vm3, %v1200_v27, %v1204_v14  ;;  %v2450_v34 = vsel %vm931_vm14, %v1017_v19, 0.0  ;;  %v2457_v39 = vsel %vm890_vm9, %v2239_v18, 0.0 }
 0x11e   : > { %v1099_v33 = vpack.c.bf16 %v2450_v34, %v2446_v59  ;;  %v2462_v52 = vsel %vm891_vm5, %v2276_v46, 0.0  ;;  %v2467_v25 = vsel %vm892_vm8, %v2306_v5, 0.0  ;;  %v2476_v16 = vsel %vm893_vm15, %v2339_v17, 0.0 }
 0x11f   : > { %1156 = vrot.lane.b32.xlu0 %v1037_v44, %s1970_s30  ;;  %v968_v26 = vpack.c.bf16 %v2462_v52, %v2457_v39  ;;  %v1087_v22 = vsel %vm1000_vm7, %v1056_v38, %v2129_v8  ;;  %v969_v29 = vpack.c.bf16 %v2476_v16, %v2467_v25  ;;  %v1243_v35 = vshrl.u32 %v1083_v47, 16 }
 0x120   : > { %1142 = vrot.lane.b32.xlu1 %v1129_v49, %s1973_s17  ;;  %v2484_v7 = vsel %vm933_vm4, %v1087_v22, 0.0  ;;  %v1249_v41 = vrot.slane %v1968_v37, 1  ;;  %v966_v24 = vpack.c.bf16 %v2165_v28, %v1967_v6  ;;  %vm1280_vm7 = vcmask 392192  }
 0x121   : > { %v1100_v18 = vpack.c.bf16 %v2484_v7, %v2436_v23  ;;  %v1245_v8 = vor.u32 %v1243_v35, %v1241_v55  ;;  %vm1298_vm9 = vcmask 654336   ;;  %vm1307_vm5 = vcmask 785408  }
 0x122   : > { %vm1316_vm12 = vcmask 916480   ;;  %vm1580_vm14 = vcmask 123904  }
 0x123   : > { %1255 = vrot.lane.b32.xlu0 %v1242_v63, %s1975_s21  ;;  %v1250_v46 = vsel %vm1101_vm3, %v1245_v8, %v1249_v41  ;;  %vm1289_vm3 = vcmask 523264  }
 0x124   : > { %1168 = vrot.lane.b32.xlu1 %v1049_v50, %s1969_s29  ;;  %s454_s29 = scalar_lea.vmem %s2599_s7, %s1755_s11 }
 0x127   : > { %1212 = vrot.lane.b32.xlu0 %v1205_v31, %s1974_s20 }
 0x128   : > { %1210 = vrot.lane.b32.xlu1 %v1197_v20, %s1974_s20 }
 0x12b   : > { %1236 = vrot.lane.b32.xlu0 %v1082_v10, %s1971_s13 }
 0x12c   : > { %1144 = vrot.lane.b32.xlu1 %v1137_v15, %s1973_s17 }
 0x130   : > { %1224 = vrot.lane.b32.xlu1 %v1070_v30, %s1972_s14 }
 0x134   : > { %1257 = vrot.lane.b32.xlu1 %v1250_v46, %s1975_s21 }
 0x169   : > { %v1163_v5 = vpop.permute.xlu0 %1162 }
 0x16d   : > { %v1151_v17 = vpop.permute.xlu0 %1150 }
 0x171   : > { %v1231_v61 = vpop.permute.xlu0 %1230  ;;  %v1165_v38 = vpop.permute.xlu1 %1164 }
 0x175   : > { %v1219_v40 = vpop.permute.xlu0 %1218 }
 0x176   : > { %v1233_v19 = vpop.permute.xlu1 %1232 }
 0x179   : > { %v1139_v36 = vpop.permute.xlu0 %1138 }
 0x17a   : > { %v1221_v42 = vpop.permute.xlu1 %1220  ;;  %v1262_v43 = vsel %vm1259_vm0, %v966_v24, %v1139_v36 }
 0x17b   : > { %v1273_v60 = vsel %vm509_vm2, %v1262_v43, %v1151_v17 }
 0x17c   : > { %v1282_v49 = vsel %vm1280_vm7, %v1273_v60, %v1163_v5 }
 0x17d   : > { %v1153_v37 = vpop.permute.xlu0 %1152 }
 0x17e   : > { %v1167_v44 = vpop.permute.xlu1 %1166 }
 0x181   : > { %v1207_v47 = vpop.permute.xlu0 %1206 }
 0x182   : > { %v1155_v48 = vpop.permute.xlu1 %1154  ;;  %v1291_v50 = vsel %vm1289_vm3, %v1282_v49, %v1207_v47 }
 0x183   : > { %v1300_v53 = vsel %vm1298_vm9, %v1291_v50, %v1219_v40 }
 0x184   : > { %v1309_v62 = vsel %vm1307_vm5, %v1300_v53, %v1231_v61 }
 0x185   : > { %v1141_v21 = vpop.permute.xlu0 %1140 }
 0x186   : > { %v1209_v51 = vpop.permute.xlu1 %1208  ;;  %v1265_v6 = vsel %vm1259_vm0, %v967_v32, %v1141_v21 }
 0x187   : > { %v1275_v28 = vsel %vm509_vm2, %v1265_v6, %v1153_v37 }
 0x188   : > { %v1284_v58 = vsel %vm1280_vm7, %v1275_v28, %v1165_v38 }
 0x189   : > { %v1293_v13 = vsel %vm1289_vm3, %v1284_v58, %v1209_v51  ;;  %v1252_v54 = vpop.permute.xlu0 %1251 }
 0x18a   : > { %v1235_v45 = vpop.permute.xlu1 %1234  ;;  %v1302_v0 = vsel %vm1298_vm9, %v1293_v13, %v1221_v42  ;;  %v1318_v2 = vsel %vm1316_vm12, %v1309_v62, %v1252_v54 }
 0x18b   : > { %1446 = vmatmul.mubr.bf16.vlgmr.msra.gmra.mrb[24].mxu0 %v1318_v2  ;;  %v1311_v4 = vsel %vm1307_vm5, %v1302_v0, %v1233_v19 }
 0x18d   : > { %v1223_v55 = vpop.permute.xlu0 %1222 }
 0x18e   : > { %v1254_v1 = vpop.permute.xlu1 %1253 }
 0x18f   : > { %v1321_v9 = vsel %vm1316_vm12, %v1311_v4, %v1254_v1 }
 0x190   : > { %1454 = vmatmul.mubr.bf16.vlgmr.msra.gmra.mrb[0].mxu1 %v1321_v9 }
 0x191   : > { %1776 = vmatprep.mubr.msk.bf16.mxu1 %vm1259_vm0, %v1099_v33  ;;  %v1157_v10 = vpop.permute.xlu0 %1156 }
 0x192   : > { %v1143_v56 = vpop.permute.xlu1 %1142 }
 0x193   : > { %v1268_v57 = vsel %vm1259_vm0, %v968_v26, %v1143_v56 }
 0x194   : > { %v1277_v63 = vsel %vm509_vm2, %v1268_v57, %v1155_v48 }
 0x195   : > { %v1256_v14 = vpop.permute.xlu0 %1255  ;;  %v1286_v11 = vsel %vm1280_vm7, %v1277_v63, %v1167_v44 }
 0x196   : > { %v1169_v12 = vpop.permute.xlu1 %1168 }
 0x199   : > { %v1213_v32 = vpop.permute.xlu0 %1212 }
 0x19a   : > { %v1211_v3 = vpop.permute.xlu1 %1210 }
 0x19b   : > { %v1295_v20 = vsel %vm1289_vm3, %v1286_v11, %v1211_v3 }
 0x19c   : > { %v1304_v27 = vsel %vm1298_vm9, %v1295_v20, %v1223_v55 }
 0x19d   : > { %v1313_v30 = vsel %vm1307_vm5, %v1304_v27, %v1235_v45  ;;  %v1237_v22 = vpop.permute.xlu0 %1236 }
 0x19e   : > { %v1145_v15 = vpop.permute.xlu1 %1144  ;;  %v1324_v31 = vsel %vm1316_vm12, %v1313_v30, %v1256_v14 }
 0x19f   : > { %v1271_v59 = vsel %vm1259_vm0, %v969_v29, %v1145_v15  ;;  %1462 = vmatmul.mubr.bf16.gmra.mrb[4].mxu1 %v1324_v31 }
 0x1a0   : > { %v1279_v34 = vsel %vm509_vm2, %v1271_v59, %v1157_v10  ;;  %1777 = vmatprep.mubr.msk.bf16.mxu1 %vm1259_vm0, %v1100_v18  ;;  %vm1510_vm2 = vcmask 125952  }
 0x1a1   : > { %v1288_v33 = vsel %vm1280_vm7, %v1279_v34, %v1169_v12 }
 0x1a2   : > { %v1225_v39 = vpop.permute.xlu1 %1224  ;;  %v1297_v52 = vsel %vm1289_vm3, %v1288_v33, %v1213_v32 }
 0x1a3   : > { %v1306_v26 = vsel %vm1298_vm9, %v1297_v52, %v1225_v39 }
 0x1a4   : > { %v1315_v25 = vsel %vm1307_vm5, %v1306_v26, %v1237_v22 }
 0x1a6   : > { %v1258_v35 = vpop.permute.xlu1 %1257 }
 0x1a7   : > { %v1327_v16 = vsel %vm1316_vm12, %v1315_v25, %v1258_v35 }
 0x1a8   : > { %1470 = vmatmul.mubr.bf16.gmra.mrb[8].mxu1 %v1327_v16 }
 0x25e   : > { %v1447_v23 = vpop.f32.mrb[24].mxu0 }
 0x25f   : > { %v1790_v29 = vpack.c.bf16 %v1447_v23, %v1447_v23  ;;  %v1449_v7 = vpop.f32.mrb[25].mxu0  ;;  %v1519_v8 = vsel %vm1259_vm0, %v1447_v23, 0.0 }
 0x260   : > { %v1450_v18 = vpop.f32.mrb[26].mxu0 }
 0x261   : > { %1511 = vst.msk [vmem:[%s2544_s26] sm:$0xf] %vm1510_vm2, %v1790_v29  ;;  %v1791_v41 = vpack.c.bf16 %v1450_v18, %v1450_v18  ;;  %v1520_v46 = vsel %vm1259_vm0, %v1450_v18, 0.0  ;;  %v1452_v5 = vpop.f32.mrb[27].mxu0 }
 0x262   : > { %v1521_v17 = vadd.f32 %v1520_v46, %v1519_v8 }
 0x263   : > { %v1455_v61 = vpop.f32.mrb[0].mxu1  ;;  %1512 = vst.msk [vmem:[%s2544_s26 + $0x4] sm:$0xf] %vm1510_vm2, %v1791_v41 }
 0x264   : > { %v1792_v38 = vpack.c.bf16 %v1455_v61, %v1455_v61  ;;  %v1522_v40 = vsel %vm1259_vm0, %v1455_v61, 0.0  ;;  %v1457_v19 = vpop.f32.mrb[1].mxu1 }
 0x265   : > { %v1523_v36 = vadd.f32 %v1522_v40, %v1521_v17  ;;  %v1458_v42 = vpop.f32.mrb[2].mxu1 }
 0x266   : > { %1513 = vst.msk [vmem:[%s2544_s26 + $0x8] sm:$0xf] %vm1510_vm2, %v1792_v38  ;;  %v1793_v24 = vpack.c.bf16 %v1458_v42, %v1458_v42  ;;  %v1524_v43 = vsel %vm1259_vm0, %v1458_v42, 0.0  ;;  %v1460_v37 = vpop.f32.mrb[3].mxu1 }
 0x267   : > { %v1525_v44 = vadd.f32 %v1524_v43, %v1523_v36 }
 0x268   : > { %1514 = vst.msk [vmem:[%s2544_s26 + $0xc] sm:$0xf] %vm1510_vm2, %v1793_v24 }
 0x272   : > { %v1463_v60 = vpop.f32.mrb[4].mxu1 }
 0x273   : > { %v1794_v47 = vpack.c.bf16 %v1463_v60, %v1463_v60  ;;  %v1526_v48 = vsel %vm1259_vm0, %v1463_v60, 0.0  ;;  %v1465_v49 = vpop.f32.mrb[5].mxu1 }
 0x274   : > { %v1527_v50 = vadd.f32 %v1526_v48, %v1525_v44  ;;  %v1466_v21 = vpop.f32.mrb[6].mxu1 }
 0x275   : > { %1515 = vst.msk [vmem:[%s2544_s26 + $0x10] sm:$0xf] %vm1510_vm2, %v1794_v47  ;;  %v1795_v51 = vpack.c.bf16 %v1466_v21, %v1466_v21  ;;  %v1528_v53 = vsel %vm1259_vm0, %v1466_v21, 0.0  ;;  %v1468_v6 = vpop.f32.mrb[7].mxu1 }
 0x276   : > { %v1529_v28 = vadd.f32 %v1528_v53, %v1527_v50 }
 0x277   : > { %1516 = vst.msk [vmem:[%s2544_s26 + $0x14] sm:$0xf] %vm1510_vm2, %v1795_v51 }
 0x27b   : > { %v1471_v58 = vpop.f32.mrb[8].mxu1 }
 0x27c   : > { %v1796_v13 = vpack.c.bf16 %v1471_v58, %v1471_v58  ;;  %v1530_v62 = vsel %vm1259_vm0, %v1471_v58, 0.0  ;;  %v1473_v54 = vpop.f32.mrb[9].mxu1 }
 0x27d   : > { %v1531_v45 = vadd.f32 %v1530_v62, %v1529_v28  ;;  %v1474_v0 = vpop.f32.mrb[10].mxu1 }
 0x27e   : > { %1517 = vst.msk [vmem:[%s2544_s26 + $0x18] sm:$0xf] %vm1510_vm2, %v1796_v13  ;;  %v1797_v2 = vpack.c.bf16 %v1474_v0, %v1474_v0  ;;  %v1532_v55 = vsel %vm1259_vm0, %v1474_v0, 0.0  ;;  %v1476_v1 = vpop.f32.mrb[11].mxu1 }
 0x27f   : > { %v1533_v4 = vadd.f32 %v1532_v55, %v1531_v45 }
 0x280   : > { %1518 = vst.msk [vmem:[%s2544_s26 + $0x1c] sm:$0xf] %vm1510_vm2, %v1797_v2 }
 0x281   : > { %v1534_v9 = vrot.slane %v1533_v4, 4 }
 0x283   : > { %v1535_v56 = vadd.f32 %v1534_v9, %v1533_v4 }
 0x285   : > { %v1536_v10 = vrot.slane %v1535_v56, 2 }
 0x287   : > { %v1537_v57 = vadd.f32 %v1536_v10, %v1535_v56 }
 0x289   : > { %v1538_v12 = vrot.slane %v1537_v57, 1 }
 0x28b   : > { %v1539_v63 = vadd.f32 %v1538_v12, %v1537_v57 }
 0x28d   : > { %v1541_v14 = vmul.f32 0.015625, %v1539_v63 }
 0x28f   : > { %v1542_v11 = vsub.f32 %v1447_v23, %v1541_v14  ;;  %v1543_v3 = vsub.f32 %v1450_v18, %v1541_v14  ;;  %v1544_v20 = vsub.f32 %v1455_v61, %v1541_v14  ;;  %v1545_v27 = vsub.f32 %v1458_v42, %v1541_v14 }
 0x290   : > { %v1546_v30 = vsub.f32 %v1463_v60, %v1541_v14  ;;  %v1547_v15 = vsub.f32 %v1466_v21, %v1541_v14  ;;  %v1548_v31 = vsub.f32 %v1471_v58, %v1541_v14  ;;  %v1549_v32 = vsub.f32 %v1474_v0, %v1541_v14 }
 0x291   : > { %v1550_v59 = vmul.f32 %v1542_v11, %v1542_v11  ;;  %v1551_v34 = vmul.f32 %v1543_v3, %v1543_v3  ;;  %v1552_v33 = vmul.f32 %v1544_v20, %v1544_v20  ;;  %v1553_v39 = vmul.f32 %v1545_v27, %v1545_v27 }
 0x292   : > { %v1554_v35 = vmul.f32 %v1546_v30, %v1546_v30  ;;  %v1555_v23 = vmul.f32 %v1547_v15, %v1547_v15  ;;  %v1556_v18 = vmul.f32 %v1548_v31, %v1548_v31  ;;  %v1557_v46 = vmul.f32 %v1549_v32, %v1549_v32 }
 0x293   : > { %v1558_v52 = vsel %vm1259_vm0, %v1550_v59, 0.0  ;;  %v1559_v26 = vsel %vm1259_vm0, %v1551_v34, 0.0  ;;  %v1561_v25 = vsel %vm1259_vm0, %v1552_v33, 0.0  ;;  %v1563_v29 = vsel %vm1259_vm0, %v1553_v39, 0.0 }
 0x294   : > { %v1560_v22 = vadd.f32 %v1559_v26, %v1558_v52  ;;  %v1565_v8 = vsel %vm1259_vm0, %v1554_v35, 0.0  ;;  %v1567_v5 = vsel %vm1259_vm0, %v1555_v23, 0.0  ;;  %v1569_v61 = vsel %vm1259_vm0, %v1556_v18, 0.0 }
 0x295   : > { %v1571_v40 = vsel %vm1259_vm0, %v1557_v46, 0.0 }
 0x296   : > { %v1562_v16 = vadd.f32 %v1561_v25, %v1560_v22 }
 0x298   : > { %v1564_v7 = vadd.f32 %v1563_v29, %v1562_v16 }
 0x29a   : > { %v1566_v41 = vadd.f32 %v1565_v8, %v1564_v7 }
 0x29c   : > { %v1568_v17 = vadd.f32 %v1567_v5, %v1566_v41 }
 0x29e   : > { %v1570_v38 = vadd.f32 %v1569_v61, %v1568_v17 }
 0x2a0   : > { %v1572_v19 = vadd.f32 %v1571_v40, %v1570_v38 }
 0x2a2   : > { %v1573_v36 = vrot.slane %v1572_v19, 4 }
 0x2a4   : > { %v1574_v42 = vadd.f32 %v1573_v36, %v1572_v19 }
 0x2a6   : > { %v1575_v24 = vrot.slane %v1574_v42, 2 }
 0x2a8   : > { %v1576_v43 = vadd.f32 %v1575_v24, %v1574_v42 }
 0x2aa   : > { %v1577_v37 = vrot.slane %v1576_v43, 1 }
 0x2ac   : > { %v1578_v44 = vadd.f32 %v1577_v37, %v1576_v43 }
 0x2ae   : > { %v1579_v60 = vsel %vm480_vm1, %v1539_v63, %v1578_v44 }
 0x2af   : > { %1581 = vst.msk [vmem:[%s454_s29] sm:$0x3] %vm1580_vm14, %v1579_v60 }
 0x2b0 PF: > { %s18_s2 = sadd.s32 1, %s1963_s2   ;;  %s2600_s23 = smov %s1959_s24 }
 0x2b1   : > { %p15_p5 = scmp.ge.s32.totalorder %s18_s2, 4   ;;  %s2601_s24 = smov %s2603_s25 }
 0x2b3   :  { %17 = sbr.rel (!%p15_p5) target bundleno = 2 (0x2), region = 92 }

</bundles_post_ra>
